<compile_context>
chip_gen: v5e
topology: v5e:2x2
jax: 0.10.0
libtpu: 0.0.40
codegen_flags: <defaults>
</compile_context>

<pallas_src>
import jax
import jax.numpy as jnp
from jax import lax
from jax.experimental import pallas as pl
from jax.experimental.pallas import tpu as pltpu


_INV_SQRT2 = 0.7071067811865476


def _gelu_exact(x):
    # nn.GELU() default = exact erf-based GELU
    return 0.5 * x * (1.0 + lax.erf(x * _INV_SQRT2))


def _ffn_kernel(x_ref, w1_ref, b1_ref, wdw_ref, bdw_ref, w3_ref, b3_ref,
                o_ref, hp_ref):
    # x_ref / o_ref : (H, W, C)  NHWC tile (batch dim squeezed by BlockSpec)
    # w1_ref  : (C, C4)     b1_ref  : (1, C4)
    # wdw_ref : (9, C4)     depthwise taps, tap index = ky*3 + kx
    # bdw_ref : (1, C4)
    # w3_ref  : (C4, C)     b3_ref  : (1, C)
    # hp_ref  : VMEM scratch (H+2, W+2, C4); zero border == conv2 padding=1
    H, W, C = x_ref.shape
    C4 = w1_ref.shape[1]

    # --- zero only the padding border (interior is fully overwritten) -------
    hp_ref[0, :, :] = jnp.zeros((W + 2, C4), jnp.float32)
    hp_ref[H + 1, :, :] = jnp.zeros((W + 2, C4), jnp.float32)
    hp_ref[1:H + 1, 0:1, :] = jnp.zeros((H, 1, C4), jnp.float32)
    hp_ref[1:H + 1, W + 1:W + 2, :] = jnp.zeros((H, 1, C4), jnp.float32)

    # --- conv1: 1x1 pointwise conv == ONE (H*W, C) @ (C, C4) matmul ---------
    x = x_ref[...].reshape(H * W, C).astype(jnp.float32)
    h1 = jnp.dot(x, w1_ref[...], preferred_element_type=jnp.float32)
    h1 = h1 + b1_ref[...]
    hp_ref[1:H + 1, 1:W + 1, :] = h1.reshape(H, W, C4)      # one interior store

    # --- conv2: depthwise 3x3 (padding=1) as 9 whole-tile FMAs --------------
    wdw = wdw_ref[...]                                       # (9, C4), once
    acc = jnp.broadcast_to(bdw_ref[...].reshape(1, 1, C4), (H, W, C4))
    acc = acc.astype(jnp.float32)
    for ky in range(3):
        for kx in range(3):
            tap = wdw[ky * 3 + kx, :].reshape(1, 1, C4)      # hoisted slice
            acc = acc + hp_ref[ky:ky + H, kx:kx + W, :] * tap

    # --- GELU (exact erf) + conv3: ONE (H*W, C4) @ (C4, C) matmul -----------
    h2 = _gelu_exact(acc).reshape(H * W, C4)
    out = jnp.dot(h2, w3_ref[...], preferred_element_type=jnp.float32)
    out = out + b3_ref[...]
    o_ref[...] = out.reshape(H, W, C).astype(o_ref.dtype)    # one full-tile store


def ffn_pallas(x_nchw, params):
    """x_nchw: (B, C, H, W); params pre-packed channels-last (see __main__)."""
    w1, b1, wdw, bdw, w3, b3 = params
    B, C, H, W = x_nchw.shape
    C4 = w1.shape[1]

    # NCHW -> NHWC at the boundary (module interface stays NCHW like PyTorch).
    # TODO(synk): a deployment that keeps the surrounding model in NHWC should
    # drop these two transposes (each is an extra HBM round trip).
    x = jnp.transpose(x_nchw, (0, 2, 3, 1))

    def const_spec(shape):
        n = len(shape)
        return pl.BlockSpec(shape, lambda b, _n=n: (0,) * _n)

    out_nhwc = pl.pallas_call(
        _ffn_kernel,
        out_shape=jax.ShapeDtypeStruct((B, H, W, C), x.dtype),
        grid_spec=pltpu.PrefetchScalarGridSpec(
            num_scalar_prefetch=0,
            grid=(B,),
            in_specs=[
                pl.BlockSpec((None, H, W, C), lambda b: (b, 0, 0, 0)),
                const_spec(w1.shape),
                const_spec(b1.shape),
                const_spec(wdw.shape),
                const_spec(bdw.shape),
                const_spec(w3.shape),
                const_spec(b3.shape),
            ],
            out_specs=pl.BlockSpec((None, H, W, C), lambda b: (b, 0, 0, 0)),
            scratch_shapes=[pltpu.VMEM((H + 2, W + 2, C4), jnp.float32)],
        ),
        compiler_params=pltpu.CompilerParams(
            dimension_semantics=("parallel",)),   # megacore-shard batch (v7x)
    )(x, w1, b1, wdw, bdw, w3, b3)

    return jnp.transpose(out_nhwc, (0, 3, 1, 2))              # back to NCHW


def ffn_reference(x, wc1, bc1, wc2, bc2, wc3, bc3):
    """Pure-JAX NCHW reference matching the PyTorch module semantics."""
    dn = ('NCHW', 'OIHW', 'NCHW')
    hidden = wc2.shape[0]
    h = lax.conv_general_dilated(x, wc1, (1, 1), 'VALID', dimension_numbers=dn)
    h = h + bc1[None, :, None, None]
    h = lax.conv_general_dilated(h, wc2, (1, 1), ((1, 1), (1, 1)),
                                 dimension_numbers=dn,
                                 feature_group_count=hidden)
    h = h + bc2[None, :, None, None]
    h = jax.nn.gelu(h, approximate=False)
    h = lax.conv_general_dilated(h, wc3, (1, 1), 'VALID', dimension_numbers=dn)
    h = h + bc3[None, :, None, None]
    return h


if __name__ == "__main__":
    key = jax.random.PRNGKey(0)
    B, d_model, H, W = 2, 4, 16, 16
    hidden = d_model * 4

    ks = jax.random.split(key, 7)
    x = jax.random.normal(ks[0], (B, d_model, H, W), jnp.float32)
    # deterministic synthetic parameters (PyTorch Conv2d weight layouts)
    wc1 = jax.random.normal(ks[1], (hidden, d_model, 1, 1), jnp.float32) * 0.2
    bc1 = jax.random.normal(ks[2], (hidden,), jnp.float32) * 0.1
    wc2 = jax.random.normal(ks[3], (hidden, 1, 3, 3), jnp.float32) * 0.2
    bc2 = jax.random.normal(ks[4], (hidden,), jnp.float32) * 0.1
    wc3 = jax.random.normal(ks[5], (d_model, hidden, 1, 1), jnp.float32) * 0.2
    bc3 = jax.random.normal(ks[6], (d_model,), jnp.float32) * 0.1

    # repack PyTorch-layout weights into the kernel's channels-last layout
    w1 = jnp.transpose(wc1[:, :, 0, 0])                             # (C, 4C)
    b1 = bc1[None, :]                                               # (1, 4C)
    wdw = jnp.transpose(wc2[:, 0, :, :], (1, 2, 0)).reshape(9, hidden)  # (9, 4C)
    bdw = bc2[None, :]                                              # (1, 4C)
    w3 = jnp.transpose(wc3[:, :, 0, 0])                             # (4C, C)
    b3 = bc3[None, :]                                               # (1, C)

    out = ffn_pallas(x, (w1, b1, wdw, bdw, w3, b3))
    out = jax.block_until_ready(out)

    ref = ffn_reference(x, wc1, bc1, wc2, bc2, wc3, bc3)
    assert out.shape == ref.shape == (B, d_model, H, W)
    max_err = float(jnp.max(jnp.abs(out - ref)))
    assert jnp.allclose(out, ref, atol=2e-4, rtol=2e-4), max_err

    print("KERNEL_OK")
</pallas_src>

<mosaic_0001>
module attributes {stable_mosaic.version = 11 : i64} {
  func.func @_ffn_kernel(%arg0: i32, %arg1: memref<1x16x16x4xf32, #tpu.memory_space<vmem>>, %arg2: memref<4x16xf32, #tpu.memory_space<vmem>>, %arg3: memref<1x16xf32, #tpu.memory_space<vmem>>, %arg4: memref<9x16xf32, #tpu.memory_space<vmem>>, %arg5: memref<1x16xf32, #tpu.memory_space<vmem>>, %arg6: memref<16x4xf32, #tpu.memory_space<vmem>>, %arg7: memref<1x4xf32, #tpu.memory_space<vmem>>, %arg8: memref<1x16x16x4xf32, #tpu.memory_space<vmem>>, %arg9: memref<18x18x16xf32, #tpu.memory_space<vmem>>) attributes {dimension_semantics = [#tpu.dimension_semantics<parallel>], iteration_bounds = array<i64: 2>, scalar_prefetch = 0 : i64, scratch_operands = 1 : i64, tpu.core_type = #tpu.core_type<tc>, window_params = [{transform_indices = @transform_0, window_bounds = array<i64: 1, 16, 16, 4>}, {pipeline_mode = #tpu.pipeline_mode<synchronous>, transform_indices = @transform_1, window_bounds = array<i64: 4, 16>}, {pipeline_mode = #tpu.pipeline_mode<synchronous>, transform_indices = @transform_2, window_bounds = array<i64: 1, 16>}, {pipeline_mode = #tpu.pipeline_mode<synchronous>, transform_indices = @transform_3, window_bounds = array<i64: 9, 16>}, {pipeline_mode = #tpu.pipeline_mode<synchronous>, transform_indices = @transform_4, window_bounds = array<i64: 1, 16>}, {pipeline_mode = #tpu.pipeline_mode<synchronous>, transform_indices = @transform_5, window_bounds = array<i64: 16, 4>}, {pipeline_mode = #tpu.pipeline_mode<synchronous>, transform_indices = @transform_6, window_bounds = array<i64: 1, 4>}, {transform_indices = @transform_7, window_bounds = array<i64: 1, 16, 16, 4>}]} {
    %cst = arith.constant 0.000000e+00 : f32
    %0 = vector.broadcast %cst : f32 to vector<18x16xf32>
    %c0 = arith.constant 0 : index
    %c0_0 = arith.constant 0 : index
    %c0_1 = arith.constant 0 : index
    %1 = vector.load %arg9[%c0, %c0_0, %c0_1] : memref<18x18x16xf32, #tpu.memory_space<vmem>>, vector<1x18x16xf32>
    %2 = vector.shape_cast %1 : vector<1x18x16xf32> to vector<18x16xf32>
    %3 = vector.shape_cast %0 : vector<18x16xf32> to vector<1x18x16xf32>
    tpu.vector_store %arg9[%c0, %c0_0, %c0_1], %3 {strides = array<i32>} : memref<18x18x16xf32, #tpu.memory_space<vmem>>, vector<1x18x16xf32>,
    %cst_2 = arith.constant 0.000000e+00 : f32
    %4 = vector.broadcast %cst_2 : f32 to vector<18x16xf32>
    %c17 = arith.constant 17 : index
    %c0_3 = arith.constant 0 : index
    %c0_4 = arith.constant 0 : index
    %5 = vector.load %arg9[%c17, %c0_3, %c0_4] : memref<18x18x16xf32, #tpu.memory_space<vmem>>, vector<1x18x16xf32>
    %6 = vector.shape_cast %5 : vector<1x18x16xf32> to vector<18x16xf32>
    %7 = vector.shape_cast %4 : vector<18x16xf32> to vector<1x18x16xf32>
    tpu.vector_store %arg9[%c17, %c0_3, %c0_4], %7 {strides = array<i32>} : memref<18x18x16xf32, #tpu.memory_space<vmem>>, vector<1x18x16xf32>,
    %cst_5 = arith.constant 0.000000e+00 : f32
    %8 = vector.broadcast %cst_5 : f32 to vector<16x1x16xf32>
    %c1 = arith.constant 1 : index
    %c0_6 = arith.constant 0 : index
    %c0_7 = arith.constant 0 : index
    %9 = vector.load %arg9[%c1, %c0_6, %c0_7] : memref<18x18x16xf32, #tpu.memory_space<vmem>>, vector<16x1x16xf32>
    tpu.vector_store %arg9[%c1, %c0_6, %c0_7], %8 {strides = array<i32>} : memref<18x18x16xf32, #tpu.memory_space<vmem>>, vector<16x1x16xf32>,
    %cst_8 = arith.constant 0.000000e+00 : f32
    %10 = vector.broadcast %cst_8 : f32 to vector<16x1x16xf32>
    %c1_9 = arith.constant 1 : index
    %c17_10 = arith.constant 17 : index
    %c0_11 = arith.constant 0 : index
    %11 = vector.load %arg9[%c1_9, %c17_10, %c0_11] : memref<18x18x16xf32, #tpu.memory_space<vmem>>, vector<16x1x16xf32>
    tpu.vector_store %arg9[%c1_9, %c17_10, %c0_11], %10 {strides = array<i32>} : memref<18x18x16xf32, #tpu.memory_space<vmem>>, vector<16x1x16xf32>,
    %c0_12 = arith.constant 0 : index
    %c0_13 = arith.constant 0 : index
    %c0_14 = arith.constant 0 : index
    %c0_15 = arith.constant 0 : index
    %12 = vector.load %arg1[%c0_12, %c0_13, %c0_14, %c0_15] : memref<1x16x16x4xf32, #tpu.memory_space<vmem>>, vector<1x16x16x4xf32>
    %13 = vector.shape_cast %12 : vector<1x16x16x4xf32> to vector<16x16x4xf32>
    %14 = vector.shape_cast %13 : vector<16x16x4xf32> to vector<256x4xf32>
    %c0_16 = arith.constant 0 : index
    %c0_17 = arith.constant 0 : index
    %15 = vector.load %arg2[%c0_16, %c0_17] : memref<4x16xf32, #tpu.memory_space<vmem>>, vector<4x16xf32>
    %cst_18 = arith.constant dense<0.000000e+00> : vector<256x16xf32>
    %16 = tpu.matmul %14, %15, %cst_18 {dimension_numbers = #tpu.dot_dimension_numbers<[1], [0], [0], [1], [0, 0, 1, 1], [], []>} : vector<256x4xf32>, vector<4x16xf32>, vector<256x16xf32> -> vector<256x16xf32>
    %c0_19 = arith.constant 0 : index
    %c0_20 = arith.constant 0 : index
    %17 = vector.load %arg3[%c0_19, %c0_20] : memref<1x16xf32, #tpu.memory_space<vmem>>, vector<1x16xf32>
    %18 = vector.broadcast %17 : vector<1x16xf32> to vector<256x16xf32>
    %19 = arith.addf %16, %18 : vector<256x16xf32>
    %20 = vector.shape_cast %19 : vector<256x16xf32> to vector<16x16x16xf32>
    %c1_21 = arith.constant 1 : index
    %c1_22 = arith.constant 1 : index
    %c0_23 = arith.constant 0 : index
    %21 = vector.load %arg9[%c1_21, %c1_22, %c0_23] : memref<18x18x16xf32, #tpu.memory_space<vmem>>, vector<16x16x16xf32>
    tpu.vector_store %arg9[%c1_21, %c1_22, %c0_23], %20 {strides = array<i32>} : memref<18x18x16xf32, #tpu.memory_space<vmem>>, vector<16x16x16xf32>,
    %c0_24 = arith.constant 0 : index
    %c0_25 = arith.constant 0 : index
    %22 = vector.load %arg4[%c0_24, %c0_25] : memref<9x16xf32, #tpu.memory_space<vmem>>, vector<9x16xf32>
    %c0_26 = arith.constant 0 : index
    %c0_27 = arith.constant 0 : index
    %23 = vector.load %arg5[%c0_26, %c0_27] : memref<1x16xf32, #tpu.memory_space<vmem>>, vector<1x16xf32>
    %24 = vector.shape_cast %23 : vector<1x16xf32> to vector<1x1x16xf32>
    %25 = vector.shape_cast %24 : vector<1x1x16xf32> to vector<1x1x16xf32>
    %26 = vector.broadcast %25 : vector<1x1x16xf32> to vector<16x16x16xf32>
    %27 = vector.extract_strided_slice %22 {offsets = [0, 0], sizes = [1, 16], strides = [1, 1]} : vector<9x16xf32> to vector<1x16xf32>
    %28 = vector.shape_cast %27 : vector<1x16xf32> to vector<16xf32>
    %29 = vector.shape_cast %28 : vector<16xf32> to vector<1x1x16xf32>
    %c0_28 = arith.constant 0 : index
    %c0_29 = arith.constant 0 : index
    %c0_30 = arith.constant 0 : index
    %30 = vector.load %arg9[%c0_28, %c0_29, %c0_30] : memref<18x18x16xf32, #tpu.memory_space<vmem>>, vector<16x16x16xf32>
    %31 = vector.broadcast %29 : vector<1x1x16xf32> to vector<16x16x16xf32>
    %32 = arith.mulf %30, %31 : vector<16x16x16xf32>
    %33 = arith.addf %26, %32 : vector<16x16x16xf32>
    %34 = vector.extract_strided_slice %22 {offsets = [1, 0], sizes = [1, 16], strides = [1, 1]} : vector<9x16xf32> to vector<1x16xf32>
    %35 = vector.shape_cast %34 : vector<1x16xf32> to vector<16xf32>
    %36 = vector.shape_cast %35 : vector<16xf32> to vector<1x1x16xf32>
    %c0_31 = arith.constant 0 : index
    %c1_32 = arith.constant 1 : index
    %c0_33 = arith.constant 0 : index
    %37 = vector.load %arg9[%c0_31, %c1_32, %c0_33] : memref<18x18x16xf32, #tpu.memory_space<vmem>>, vector<16x16x16xf32>
    %38 = vector.broadcast %36 : vector<1x1x16xf32> to vector<16x16x16xf32>
    %39 = arith.mulf %37, %38 : vector<16x16x16xf32>
    %40 = arith.addf %33, %39 : vector<16x16x16xf32>
    %41 = vector.extract_strided_slice %22 {offsets = [2, 0], sizes = [1, 16], strides = [1, 1]} : vector<9x16xf32> to vector<1x16xf32>
    %42 = vector.shape_cast %41 : vector<1x16xf32> to vector<16xf32>
    %43 = vector.shape_cast %42 : vector<16xf32> to vector<1x1x16xf32>
    %c0_34 = arith.constant 0 : index
    %c2 = arith.constant 2 : index
    %c0_35 = arith.constant 0 : index
    %44 = vector.load %arg9[%c0_34, %c2, %c0_35] : memref<18x18x16xf32, #tpu.memory_space<vmem>>, vector<16x16x16xf32>
    %45 = vector.broadcast %43 : vector<1x1x16xf32> to vector<16x16x16xf32>
    %46 = arith.mulf %44, %45 : vector<16x16x16xf32>
    %47 = arith.addf %40, %46 : vector<16x16x16xf32>
    %48 = vector.extract_strided_slice %22 {offsets = [3, 0], sizes = [1, 16], strides = [1, 1]} : vector<9x16xf32> to vector<1x16xf32>
    %49 = vector.shape_cast %48 : vector<1x16xf32> to vector<16xf32>
    %50 = vector.shape_cast %49 : vector<16xf32> to vector<1x1x16xf32>
    %c1_36 = arith.constant 1 : index
    %c0_37 = arith.constant 0 : index
    %c0_38 = arith.constant 0 : index
    %51 = vector.load %arg9[%c1_36, %c0_37, %c0_38] : memref<18x18x16xf32, #tpu.memory_space<vmem>>, vector<16x16x16xf32>
    %52 = vector.broadcast %50 : vector<1x1x16xf32> to vector<16x16x16xf32>
    %53 = arith.mulf %51, %52 : vector<16x16x16xf32>
    %54 = arith.addf %47, %53 : vector<16x16x16xf32>
    %55 = vector.extract_strided_slice %22 {offsets = [4, 0], sizes = [1, 16], strides = [1, 1]} : vector<9x16xf32> to vector<1x16xf32>
    %56 = vector.shape_cast %55 : vector<1x16xf32> to vector<16xf32>
    %57 = vector.shape_cast %56 : vector<16xf32> to vector<1x1x16xf32>
    %c1_39 = arith.constant 1 : index
    %c1_40 = arith.constant 1 : index
    %c0_41 = arith.constant 0 : index
    %58 = vector.load %arg9[%c1_39, %c1_40, %c0_41] : memref<18x18x16xf32, #tpu.memory_space<vmem>>, vector<16x16x16xf32>
    %59 = vector.broadcast %57 : vector<1x1x16xf32> to vector<16x16x16xf32>
    %60 = arith.mulf %58, %59 : vector<16x16x16xf32>
    %61 = arith.addf %54, %60 : vector<16x16x16xf32>
    %62 = vector.extract_strided_slice %22 {offsets = [5, 0], sizes = [1, 16], strides = [1, 1]} : vector<9x16xf32> to vector<1x16xf32>
    %63 = vector.shape_cast %62 : vector<1x16xf32> to vector<16xf32>
    %64 = vector.shape_cast %63 : vector<16xf32> to vector<1x1x16xf32>
    %c1_42 = arith.constant 1 : index
    %c2_43 = arith.constant 2 : index
    %c0_44 = arith.constant 0 : index
    %65 = vector.load %arg9[%c1_42, %c2_43, %c0_44] : memref<18x18x16xf32, #tpu.memory_space<vmem>>, vector<16x16x16xf32>
    %66 = vector.broadcast %64 : vector<1x1x16xf32> to vector<16x16x16xf32>
    %67 = arith.mulf %65, %66 : vector<16x16x16xf32>
    %68 = arith.addf %61, %67 : vector<16x16x16xf32>
    %69 = vector.extract_strided_slice %22 {offsets = [6, 0], sizes = [1, 16], strides = [1, 1]} : vector<9x16xf32> to vector<1x16xf32>
    %70 = vector.shape_cast %69 : vector<1x16xf32> to vector<16xf32>
    %71 = vector.shape_cast %70 : vector<16xf32> to vector<1x1x16xf32>
    %c2_45 = arith.constant 2 : index
    %c0_46 = arith.constant 0 : index
    %c0_47 = arith.constant 0 : index
    %72 = vector.load %arg9[%c2_45, %c0_46, %c0_47] : memref<18x18x16xf32, #tpu.memory_space<vmem>>, vector<16x16x16xf32>
    %73 = vector.broadcast %71 : vector<1x1x16xf32> to vector<16x16x16xf32>
    %74 = arith.mulf %72, %73 : vector<16x16x16xf32>
    %75 = arith.addf %68, %74 : vector<16x16x16xf32>
    %76 = vector.extract_strided_slice %22 {offsets = [7, 0], sizes = [1, 16], strides = [1, 1]} : vector<9x16xf32> to vector<1x16xf32>
    %77 = vector.shape_cast %76 : vector<1x16xf32> to vector<16xf32>
    %78 = vector.shape_cast %77 : vector<16xf32> to vector<1x1x16xf32>
    %c2_48 = arith.constant 2 : index
    %c1_49 = arith.constant 1 : index
    %c0_50 = arith.constant 0 : index
    %79 = vector.load %arg9[%c2_48, %c1_49, %c0_50] : memref<18x18x16xf32, #tpu.memory_space<vmem>>, vector<16x16x16xf32>
    %80 = vector.broadcast %78 : vector<1x1x16xf32> to vector<16x16x16xf32>
    %81 = arith.mulf %79, %80 : vector<16x16x16xf32>
    %82 = arith.addf %75, %81 : vector<16x16x16xf32>
    %83 = vector.extract_strided_slice %22 {offsets = [8, 0], sizes = [1, 16], strides = [1, 1]} : vector<9x16xf32> to vector<1x16xf32>
    %84 = vector.shape_cast %83 : vector<1x16xf32> to vector<16xf32>
    %85 = vector.shape_cast %84 : vector<16xf32> to vector<1x1x16xf32>
    %c2_51 = arith.constant 2 : index
    %c2_52 = arith.constant 2 : index
    %c0_53 = arith.constant 0 : index
    %86 = vector.load %arg9[%c2_51, %c2_52, %c0_53] : memref<18x18x16xf32, #tpu.memory_space<vmem>>, vector<16x16x16xf32>
    %87 = vector.broadcast %85 : vector<1x1x16xf32> to vector<16x16x16xf32>
    %88 = arith.mulf %86, %87 : vector<16x16x16xf32>
    %89 = arith.addf %82, %88 : vector<16x16x16xf32>
    %cst_54 = arith.constant 5.000000e-01 : f32
    %90 = vector.broadcast %cst_54 : f32 to vector<16x16x16xf32>
    %91 = arith.mulf %90, %89 : vector<16x16x16xf32>
    %cst_55 = arith.constant 0.707106769 : f32
    %92 = vector.broadcast %cst_55 : f32 to vector<16x16x16xf32>
    %93 = arith.mulf %89, %92 : vector<16x16x16xf32>
    %94 = math.erf %93 : vector<16x16x16xf32>
    %cst_56 = arith.constant 1.000000e+00 : f32
    %95 = vector.broadcast %cst_56 : f32 to vector<16x16x16xf32>
    %96 = arith.addf %95, %94 : vector<16x16x16xf32>
    %97 = arith.mulf %91, %96 : vector<16x16x16xf32>
    %98 = vector.shape_cast %97 : vector<16x16x16xf32> to vector<256x16xf32>
    %c0_57 = arith.constant 0 : index
    %c0_58 = arith.constant 0 : index
    %99 = vector.load %arg6[%c0_57, %c0_58] : memref<16x4xf32, #tpu.memory_space<vmem>>, vector<16x4xf32>
    %cst_59 = arith.constant dense<0.000000e+00> : vector<256x4xf32>
    %100 = tpu.matmul %98, %99, %cst_59 {dimension_numbers = #tpu.dot_dimension_numbers<[1], [0], [0], [1], [0, 0, 1, 1], [], []>} : vector<256x16xf32>, vector<16x4xf32>, vector<256x4xf32> -> vector<256x4xf32>
    %c0_60 = arith.constant 0 : index
    %c0_61 = arith.constant 0 : index
    %101 = vector.load %arg7[%c0_60, %c0_61] : memref<1x4xf32, #tpu.memory_space<vmem>>, vector<1x4xf32>
    %102 = vector.broadcast %101 : vector<1x4xf32> to vector<256x4xf32>
    %103 = arith.addf %100, %102 : vector<256x4xf32>
    %104 = vector.shape_cast %103 : vector<256x4xf32> to vector<16x16x4xf32>
    %c0_62 = arith.constant 0 : index
    %c0_63 = arith.constant 0 : index
    %c0_64 = arith.constant 0 : index
    %c0_65 = arith.constant 0 : index
    %105 = vector.load %arg8[%c0_62, %c0_63, %c0_64, %c0_65] : memref<1x16x16x4xf32, #tpu.memory_space<vmem>>, vector<1x16x16x4xf32>
    %106 = vector.shape_cast %105 : vector<1x16x16x4xf32> to vector<16x16x4xf32>
    %107 = vector.shape_cast %104 : vector<16x16x4xf32> to vector<1x16x16x4xf32>
    tpu.vector_store %arg8[%c0_62, %c0_63, %c0_64, %c0_65], %107 {strides = array<i32>} : memref<1x16x16x4xf32, #tpu.memory_space<vmem>>, vector<1x16x16x4xf32>,
    return
  }
  func.func @transform_0(%arg0: i32) -> (i32, i32, i32, i32) {
    %c0_i32 = arith.constant 0 : i32
    %c0_i32_0 = arith.constant 0 : i32
    %c0_i32_1 = arith.constant 0 : i32
    %c0_i32_2 = arith.constant 0 : i32
    return %arg0, %c0_i32, %c0_i32_0, %c0_i32_1 : i32, i32, i32, i32
  }
  func.func @transform_1(%arg0: i32) -> (i32, i32) {
    %c0_i32 = arith.constant 0 : i32
    %c0_i32_0 = arith.constant 0 : i32
    %c0_i32_1 = arith.constant 0 : i32
    return %c0_i32, %c0_i32_0 : i32, i32
  }
  func.func @transform_2(%arg0: i32) -> (i32, i32) {
    %c0_i32 = arith.constant 0 : i32
    %c0_i32_0 = arith.constant 0 : i32
    %c0_i32_1 = arith.constant 0 : i32
    return %c0_i32, %c0_i32_0 : i32, i32
  }
  func.func @transform_3(%arg0: i32) -> (i32, i32) {
    %c0_i32 = arith.constant 0 : i32
    %c0_i32_0 = arith.constant 0 : i32
    %c0_i32_1 = arith.constant 0 : i32
    return %c0_i32, %c0_i32_0 : i32, i32
  }
  func.func @transform_4(%arg0: i32) -> (i32, i32) {
    %c0_i32 = arith.constant 0 : i32
    %c0_i32_0 = arith.constant 0 : i32
    %c0_i32_1 = arith.constant 0 : i32
    return %c0_i32, %c0_i32_0 : i32, i32
  }
  func.func @transform_5(%arg0: i32) -> (i32, i32) {
    %c0_i32 = arith.constant 0 : i32
    %c0_i32_0 = arith.constant 0 : i32
    %c0_i32_1 = arith.constant 0 : i32
    return %c0_i32, %c0_i32_0 : i32, i32
  }
  func.func @transform_6(%arg0: i32) -> (i32, i32) {
    %c0_i32 = arith.constant 0 : i32
    %c0_i32_0 = arith.constant 0 : i32
    %c0_i32_1 = arith.constant 0 : i32
    return %c0_i32, %c0_i32_0 : i32, i32
  }
  func.func @transform_7(%arg0: i32) -> (i32, i32, i32, i32) {
    %c0_i32 = arith.constant 0 : i32
    %c0_i32_0 = arith.constant 0 : i32
    %c0_i32_1 = arith.constant 0 : i32
    %c0_i32_2 = arith.constant 0 : i32
    return %arg0, %c0_i32, %c0_i32_0, %c0_i32_1 : i32, i32, i32, i32
  }
}

</mosaic_0001>

<bundles_post_ra>
// kernel: tpu_custom_call.1
= control target key start
LH: loop header
LB: loop body
LE: loop exit
PB: predicated region body
PF: predicated region fallthrough
CT: control target
= control target key end

     0   :  { %s3444_s24 = smov 0   ;;  %s5816_s0 = inlined_call_operand.vmem [shape: f32[2,16,16,4], index: 0, kind: input, shape index: {}]   ;;  %s5817_s1 = inlined_call_operand.vmem [shape: f32[4,16], index: 1, kind: input, shape index: {}]   ;;  %s5818_s2 = inlined_call_operand.vmem [shape: f32[1,16], index: 2, kind: input, shape index: {}]   ;;  %s5819_s3 = inlined_call_operand.vmem [shape: f32[9,16], index: 3, kind: input, shape index: {}]   ;;  %s5820_s4 = inlined_call_operand.vmem [shape: f32[1,16], index: 4, kind: input, shape index: {}]   ;;  %s5821_s5 = inlined_call_operand.vmem [shape: f32[16,4], index: 5, kind: input, shape index: {}]   ;;  %s5822_s6 = inlined_call_operand.vmem [shape: f32[1,4], index: 6, kind: input, shape index: {}]   ;;  %s5823_s7 = inlined_call_operand.vmem [shape: f32[2,16,16,4], index: 7, kind: output, shape index: {}]  }
   0x1 LB: > { %s3195_s25 = sadd.s32 4294967295, %s3401_s24   ;;  %p3199_p0 = scmp.ge.s32.totalorder %s3401_s24, 1  ;;  %s3401_s24 = sphi %s3444_s24, %s17_s24  }
   0x2   : > { %p237_p1 = scmp.lt.s32.totalorder %s3401_s24, 3 }
   0x4   : > { %p238_p2 = pnand %p3199_p0, %p237_p1 }
   0x5   : > { %p269_p3 = scmp.lt.s32.totalorder (!%p238_p2), %s3195_s25, 1 }
   0x6   : > { %241 = sbr.rel (%p238_p2) target bundleno = 820 (0x334), region = 48 }
   0xb   : > { %v354_v0 = vld [vmem:[%s5817_s1] sm:$0xf]  ;;  %vm456_vm0 = vcmask 1043456   ;;  %s5879_s25 = smov (!%p269_p3, %s3195_s25), 1  ;;  %vm359_vm1 = vcmask 31744   ;;  %vm279_vm2 = vcmask 130048  }
   0xc   : > { %3204 = vmatpush.msk.msra.mxu0 %vm456_vm0, %v354_v0  ;;  %3305 = vmatpush.msk.msra.mxu3 %vm456_vm0, %v354_v0  ;;  %s3303_s28 = sshll.u32 %s5879_s25, 8  ;;  %v3403_v24 = vmov 0.0   ;;  %vm289_vm3 = vcmask 122880   ;;  %v3590_v33 = vld [vmem:[%s5818_s2] ss:$0 sm:$0xff]  ;;  %vm282_vm4 = vcmask 123904  }
   0xd   : > { %s3463_s8 = scalar_lea.vmem %s5816_s0, %s3303_s28  ;;  %280 = vst.msk [vmem:[#allocation2] sm:$0xff] %vm279_vm2, %v3403_v24  ;;  %v3599_v34 = vld [vmem:[%s5819_s3] sm:$0xff]  ;;  %s4885_s15 = scalar_lea.vmem %s5823_s7, %s3303_s28 }
   0xe   : > { %v322_v1 = vld [vmem:[%s3463_s8] sm:$0xff]  ;;  %v323_v2 = vld [vmem:[%s3463_s8 + $0x8] sm:$0xff]  ;;  %v324_v4 = vld [vmem:[%s3463_s8 + $0x10] sm:$0xff]  ;;  %281 = vst.msk [vmem:[#allocation2 + $0x8] sm:$0xff] %vm279_vm2, %v3403_v24  ;;  %v3610_v38 = vperm.slane %v3599_v34, 0  ;;  %v3625_v42 = vperm.slane %v3599_v34, 1 }
   0xf   : > { %3205 = vmatmul.msk.f32.vlgmr.msra.gmra.mxu0 %vm359_vm1, %v322_v1  ;;  %v339_v3 = vld [vmem:[%s3463_s8 + $0x88] sm:$0xff]  ;;  %v340_v5 = vld [vmem:[%s3463_s8 + $0x90] sm:$0xff]  ;;  %v325_v6 = vld [vmem:[%s3463_s8 + $0x18] sm:$0xff]  ;;  %285 = vst.msk [vmem:[#allocation2 + $0x198] sm:$0xff] %vm279_vm2, %v3403_v24  ;;  %v3632_v49 = vperm.slane %v3599_v34, 2  ;;  %v3637_v56 = vperm.slane %v3599_v34, 3 }
  0x10   : > { %3222 = vmatmul.msk.f32.vlgmr.msra.gmra.mxu3 %vm359_vm1, %v339_v3  ;;  %v341_v7 = vld [vmem:[%s3463_s8 + $0x98] sm:$0xff]  ;;  %v326_v8 = vld [vmem:[%s3463_s8 + $0x20] sm:$0xff]  ;;  %v327_v10 = vld [vmem:[%s3463_s8 + $0x28] sm:$0xff]  ;;  %286 = vst.msk [vmem:[#allocation2 + $0x1a0] sm:$0xff] %vm279_vm2, %v3403_v24 }
  0x11   : > { %v342_v9 = vld [vmem:[%s3463_s8 + $0xa0] sm:$0xff]  ;;  %v343_v11 = vld [vmem:[%s3463_s8 + $0xa8] sm:$0xff]  ;;  %v328_v12 = vld [vmem:[%s3463_s8 + $0x30] sm:$0xff]  ;;  %290 = vst.msk [vmem:[#allocation2 + $0x18] sm:$0x1] %vm289_vm3, %v3403_v24 }
  0x12   : > { %v344_v13 = vld [vmem:[%s3463_s8 + $0xb0] sm:$0xff]  ;;  %v329_v14 = vld [vmem:[%s3463_s8 + $0x38] sm:$0xff]  ;;  %v330_v16 = vld [vmem:[%s3463_s8 + $0x40] sm:$0xff]  ;;  %291 = vst.msk [vmem:[#allocation2 + $0x30] sm:$0x1] %vm289_vm3, %v3403_v24 }
  0x13   : > { %v345_v15 = vld [vmem:[%s3463_s8 + $0xb8] sm:$0xff]  ;;  %v346_v17 = vld [vmem:[%s3463_s8 + $0xc0] sm:$0xff]  ;;  %v331_v18 = vld [vmem:[%s3463_s8 + $0x48] sm:$0xff]  ;;  %292 = vst.msk [vmem:[#allocation2 + $0x48] sm:$0x1] %vm289_vm3, %v3403_v24 }
  0x14   : > { %v347_v19 = vld [vmem:[%s3463_s8 + $0xc8] sm:$0xff]  ;;  %v332_v20 = vld [vmem:[%s3463_s8 + $0x50] sm:$0xff]  ;;  %v333_v22 = vld [vmem:[%s3463_s8 + $0x58] sm:$0xff]  ;;  %293 = vst.msk [vmem:[#allocation2 + $0x60] sm:$0x1] %vm289_vm3, %v3403_v24 }
  0x15   : > { %v348_v21 = vld [vmem:[%s3463_s8 + $0xd0] sm:$0xff]  ;;  %v349_v23 = vld [vmem:[%s3463_s8 + $0xd8] sm:$0xff]  ;;  %v334_v25 = vld [vmem:[%s3463_s8 + $0x60] sm:$0xff]  ;;  %294 = vst.msk [vmem:[#allocation2 + $0x78] sm:$0x1] %vm289_vm3, %v3403_v24 }
  0x16   : > { %v350_v26 = vld [vmem:[%s3463_s8 + $0xe0] sm:$0xff]  ;;  %v335_v27 = vld [vmem:[%s3463_s8 + $0x68] sm:$0xff]  ;;  %295 = vst.msk [vmem:[#allocation2 + $0x90] sm:$0x1] %vm289_vm3, %v3403_v24  ;;  %v336_v29 = vld [vmem:[%s3463_s8 + $0x70] sm:$0xff] }
  0x17   : > { %3206 = vmatmul.msk.f32.gmra.mxu0 %vm359_vm1, %v323_v2  ;;  %296 = vst.msk [vmem:[#allocation2 + $0xa8] sm:$0x1] %vm289_vm3, %v3403_v24  ;;  %v351_v28 = vld [vmem:[%s3463_s8 + $0xe8] sm:$0xff]  ;;  %v352_v30 = vld [vmem:[%s3463_s8 + $0xf0] sm:$0xff]  ;;  %v337_v31 = vld [vmem:[%s3463_s8 + $0x78] sm:$0xff] }
  0x18   : > { %3223 = vmatmul.msk.f32.gmra.mxu3 %vm359_vm1, %v340_v5  ;;  %297 = vst.msk [vmem:[#allocation2 + $0xc0] sm:$0x1] %vm289_vm3, %v3403_v24  ;;  %v353_v32 = vld [vmem:[%s3463_s8 + $0xf8] sm:$0xff]  ;;  %v338_v36 = vld [vmem:[%s3463_s8 + $0x80] sm:$0xff]  ;;  %v612_v45 = vld [vmem:[#allocation2 + $0x8] sm:$0xff]  ;;  %v3648_v5 = vperm.slane %v3599_v34, 4 }
  0x19   : > { %298 = vst.msk [vmem:[#allocation2 + $0xd8] sm:$0x1] %vm289_vm3, %v3403_v24  ;;  %v611_v39 = vld [vmem:[#allocation2] sm:$0xff]  ;;  %v645_v50 = vmul.f32 %v3610_v38, %v612_v45 }
  0x1a   : > { %299 = vst.msk [vmem:[#allocation2 + $0xf0] sm:$0x1] %vm289_vm3, %v3403_v24  ;;  %v3621_v40 = vld [vmem:[%s5820_s4] ss:$0 sm:$0xff]  ;;  %v644_v41 = vmul.f32 %v3610_v38, %v611_v39  ;;  %v708_v43 = vld [vmem:[#allocation2 + $0x1] sm:$0xff] }
  0x1b   : > { %300 = vst.msk [vmem:[#allocation2 + $0x108] sm:$0x1] %vm289_vm3, %v3403_v24  ;;  %v741_v48 = vmul.f32 %v3625_v42, %v708_v43  ;;  %v805_v51 = vld [vmem:[#allocation2 + $0x2] sm:$0xff]  ;;  %v677_v57 = vadd.f32 %v3621_v40, %v645_v50 }
  0x1c   : > { %301 = vst.msk [vmem:[#allocation2 + $0x120] sm:$0x1] %vm289_vm3, %v3403_v24  ;;  %v676_v47 = vadd.f32 %v3621_v40, %v644_v41  ;;  %v838_v55 = vmul.f32 %v3632_v49, %v805_v51 }
  0x1d   : > { %302 = vst.msk [vmem:[#allocation2 + $0x138] sm:$0x1] %vm289_vm3, %v3403_v24 }
  0x1e   : > { %303 = vst.msk [vmem:[#allocation2 + $0x150] sm:$0x1] %vm289_vm3, %v3403_v24  ;;  %v773_v53 = vadd.f32 %v741_v48, %v676_v47 }
  0x1f   : > { %3207 = vmatmul.msk.f32.gmra.mxu0 %vm359_vm1, %v324_v4  ;;  %304 = vst.msk [vmem:[#allocation2 + $0x168] sm:$0x1] %vm289_vm3, %v3403_v24 }
  0x20   : > { %3224 = vmatmul.msk.f32.gmra.mxu3 %vm359_vm1, %v341_v7  ;;  %305 = vst.msk [vmem:[#allocation2 + $0x180] sm:$0x1] %vm289_vm3, %v3403_v24  ;;  %v870_v0 = vadd.f32 %v838_v55, %v773_v53 }
  0x21   : > { %306 = vst.msk [vmem:[#allocation2 + $0x29] sm:$0x1] %vm289_vm3, %v3403_v24 }
  0x22   : > { %307 = vst.msk [vmem:[#allocation2 + $0x41] sm:$0x1] %vm289_vm3, %v3403_v24 }
  0x23   : > { %308 = vst.msk [vmem:[#allocation2 + $0x59] sm:$0x1] %vm289_vm3, %v3403_v24 }
  0x24   : > { %309 = vst.msk [vmem:[#allocation2 + $0x71] sm:$0x1] %vm289_vm3, %v3403_v24 }
  0x25   : > { %310 = vst.msk [vmem:[#allocation2 + $0x89] sm:$0x1] %vm289_vm3, %v3403_v24 }
  0x26   : > { %311 = vst.msk [vmem:[#allocation2 + $0xa1] sm:$0x1] %vm289_vm3, %v3403_v24 }
  0x27   : > { %3208 = vmatmul.msk.f32.gmra.mxu0 %vm359_vm1, %v325_v6  ;;  %312 = vst.msk [vmem:[#allocation2 + $0xb9] sm:$0x1] %vm289_vm3, %v3403_v24  ;;  %v3651_v6 = vperm.slane %v3599_v34, 5 }
  0x28   : > { %3225 = vmatmul.msk.f32.gmra.mxu3 %vm359_vm1, %v342_v9  ;;  %313 = vst.msk [vmem:[#allocation2 + $0xd1] sm:$0x1] %vm289_vm3, %v3403_v24 }
  0x29   : > { %314 = vst.msk [vmem:[#allocation2 + $0xe9] sm:$0x1] %vm289_vm3, %v3403_v24 }
  0x2a   : > { %315 = vst.msk [vmem:[#allocation2 + $0x101] sm:$0x1] %vm289_vm3, %v3403_v24 }
  0x2b   : > { %316 = vst.msk [vmem:[#allocation2 + $0x119] sm:$0x1] %vm289_vm3, %v3403_v24 }
  0x2c   : > { %317 = vst.msk [vmem:[#allocation2 + $0x131] sm:$0x1] %vm289_vm3, %v3403_v24 }
  0x2d   : > { %318 = vst.msk [vmem:[#allocation2 + $0x149] sm:$0x1] %vm289_vm3, %v3403_v24 }
  0x2e   : > { %319 = vst.msk [vmem:[#allocation2 + $0x161] sm:$0x1] %vm289_vm3, %v3403_v24 }
  0x2f   : > { %3209 = vmatmul.msk.f32.gmra.mxu0 %vm359_vm1, %v326_v8  ;;  %320 = vst.msk [vmem:[#allocation2 + $0x179] sm:$0x1] %vm289_vm3, %v3403_v24 }
  0x30   : > { %3226 = vmatmul.msk.f32.gmra.mxu3 %vm359_vm1, %v343_v11  ;;  %321 = vst.msk [vmem:[#allocation2 + $0x191] sm:$0x1] %vm289_vm3, %v3403_v24  ;;  %v3654_v11 = vperm.slane %v3599_v34, 6 }
  0x31   : > { %283 = vst.msk [vmem:[#allocation2 + $0x10] sm:$0x3] %vm282_vm4, %v3403_v24 }
  0x32   : > { %287 = vst.msk [vmem:[#allocation2 + $0x1a8] sm:$0x3] %vm282_vm4, %v3403_v24 }
  0x37   : > { %3210 = vmatmul.msk.f32.gmra.mxu0 %vm359_vm1, %v327_v10 }
  0x38   : > { %3227 = vmatmul.msk.f32.gmra.mxu3 %vm359_vm1, %v344_v13  ;;  %v709_v52 = vld [vmem:[#allocation2 + $0x9] sm:$0xff] }
  0x39   : > { %v742_v58 = vmul.f32 %v3625_v42, %v709_v52  ;;  %v806_v62 = vld [vmem:[#allocation2 + $0xa] sm:$0xff] }
  0x3a   : > { %v839_v3 = vmul.f32 %v3632_v49, %v806_v62 }
  0x3b   : > { %v774_v2 = vadd.f32 %v742_v58, %v677_v57 }
  0x3f   : > { %3211 = vmatmul.msk.f32.gmra.mxu0 %vm359_vm1, %v328_v12  ;;  %v871_v12 = vadd.f32 %v839_v3, %v774_v2 }
  0x40   : > { %3228 = vmatmul.msk.f32.gmra.mxu3 %vm359_vm1, %v345_v15 }
  0x47   : > { %3212 = vmatmul.msk.f32.gmra.mxu0 %vm359_vm1, %v329_v14 }
  0x48   : > { %3229 = vmatmul.msk.f32.gmra.mxu3 %vm359_vm1, %v346_v17 }
  0x4f   : > { %3213 = vmatmul.msk.f32.gmra.mxu0 %vm359_vm1, %v330_v16 }
  0x50   : > { %3230 = vmatmul.msk.f32.gmra.mxu3 %vm359_vm1, %v347_v19 }
  0x57   : > { %3214 = vmatmul.msk.f32.gmra.mxu0 %vm359_vm1, %v331_v18 }
  0x58   : > { %3231 = vmatmul.msk.f32.gmra.mxu3 %vm359_vm1, %v348_v21 }
  0x5f   : > { %3215 = vmatmul.msk.f32.gmra.mxu0 %vm359_vm1, %v332_v20 }
  0x60   : > { %3232 = vmatmul.msk.f32.gmra.mxu3 %vm359_vm1, %v349_v23 }
  0x67   : > { %3216 = vmatmul.msk.f32.gmra.mxu0 %vm359_vm1, %v333_v22 }
  0x68   : > { %3233 = vmatmul.msk.f32.gmra.mxu3 %vm359_vm1, %v350_v26 }
  0x6f   : > { %3217 = vmatmul.msk.f32.gmra.mxu0 %vm359_vm1, %v334_v25 }
  0x70   : > { %3234 = vmatmul.msk.f32.gmra.mxu3 %vm359_vm1, %v351_v28 }
  0x77   : > { %3218 = vmatmul.msk.f32.gmra.mxu0 %vm359_vm1, %v335_v27  ;;  %v3667_v27 = vperm.slane %v3599_v34, 7 }
  0x78   : > { %3235 = vmatmul.msk.f32.gmra.mxu3 %vm359_vm1, %v352_v30 }
  0x7f   : > { %3219 = vmatmul.msk.f32.gmra.mxu0 %vm359_vm1, %v336_v29 }
  0x80   : > { %3236 = vmatmul.msk.f32.gmra.mxu3 %vm359_vm1, %v353_v32 }
  0x87   : > { %3220 = vmatmul.msk.f32.gmra.mxu0 %vm359_vm1, %v337_v31 }
  0x8c   : > { %v477_v35 = vpop.f32.mrf.mxu0 }
  0x8d   : > { %v478_v37 = vadd.f32 %v3590_v33, %v477_v35 }
  0x8f   : > { %573 = vst.msk [vmem:[#allocation2 + $0x19] sm:$0xff] %vm279_vm2, %v478_v37  ;;  %3221 = vmatmul.msk.f32.gmra.mxu0 %vm359_vm1, %v338_v36  ;;  %v3675_v37 = vld [vmem:[%s5819_s3 + $0x8] ss:$0 sm:$0xff] }
  0x93   : > { %v528_v54 = vpop.f32.mrf.mxu3 }
  0x94   : > { %v480_v44 = vpop.f32.mrf.mxu0  ;;  %v529_v60 = vadd.f32 %v3590_v33, %v528_v54 }
  0x95   : > { %v481_v46 = vadd.f32 %v3590_v33, %v480_v44 }
  0x96   : > { %v902_v61 = vld [vmem:[#allocation2 + $0x18] sm:$0xff]  ;;  %590 = vst.msk [vmem:[#allocation2 + $0xe1] sm:$0xff] %vm279_vm2, %v529_v60 }
  0x97   : > { %574 = vst.msk [vmem:[#allocation2 + $0x21] sm:$0xff] %vm279_vm2, %v481_v46  ;;  %v935_v1 = vmul.f32 %v3637_v56, %v902_v61  ;;  %v999_v7 = vld [vmem:[#allocation2 + $0x19] sm:$0xff]  ;;  %v646_v21 = vmul.f32 %v902_v61, %v3610_v38 }
  0x98   : > { %v1032_v17 = vmul.f32 %v3648_v5, %v999_v7  ;;  %v743_v43 = vmul.f32 %v999_v7, %v3625_v42 }
  0x99   : > { %v967_v10 = vadd.f32 %v935_v1, %v870_v0  ;;  %v678_v31 = vadd.f32 %v3621_v40, %v646_v21 }
  0x9b   : > { %v531_v9 = vpop.f32.mrf.mxu3  ;;  %v1064_v23 = vadd.f32 %v1032_v17, %v967_v10  ;;  %v775_v53 = vadd.f32 %v743_v43, %v678_v31 }
  0x9c   : > { %v483_v59 = vpop.f32.mrf.mxu0  ;;  %v532_v15 = vadd.f32 %v3590_v33, %v531_v9 }
  0x9d   : > { %v484_v63 = vadd.f32 %v3590_v33, %v483_v59 }
  0x9e   : > { %v903_v4 = vld [vmem:[#allocation2 + $0x20] sm:$0xff]  ;;  %591 = vst.msk [vmem:[#allocation2 + $0xf1] sm:$0xff] %vm279_vm2, %v532_v15 }
  0x9f   : > { %575 = vst.msk [vmem:[#allocation2 + $0x31] sm:$0xff] %vm279_vm2, %v484_v63  ;;  %v1096_v8 = vld [vmem:[#allocation2 + $0x1a] sm:$0xff]  ;;  %v936_v13 = vmul.f32 %v3637_v56, %v903_v4  ;;  %v647_v22 = vmul.f32 %v903_v4, %v3610_v38  ;;  %v1097_v30 = vld [vmem:[#allocation2 + $0x22] sm:$0xff] }
  0xa0   : > { %v1129_v18 = vmul.f32 %v3651_v6, %v1096_v8  ;;  %v1000_v20 = vld [vmem:[#allocation2 + $0x21] sm:$0xff]  ;;  %v840_v44 = vmul.f32 %v1096_v8, %v3632_v49  ;;  %v1130_v48 = vmul.f32 %v3651_v6, %v1097_v30  ;;  %v841_v63 = vmul.f32 %v1097_v30, %v3632_v49 }
  0xa1   : > { %v968_v25 = vadd.f32 %v936_v13, %v871_v12  ;;  %v1033_v28 = vmul.f32 %v3648_v5, %v1000_v20  ;;  %v679_v32 = vadd.f32 %v3621_v40, %v647_v22  ;;  %v744_v45 = vmul.f32 %v1000_v20, %v3625_v42 }
  0xa2   : > { %v1161_v26 = vadd.f32 %v1129_v18, %v1064_v23  ;;  %v872_v62 = vadd.f32 %v840_v44, %v775_v53 }
  0xa3   : > { %v534_v35 = vpop.f32.mrf.mxu3  ;;  %v1065_v39 = vadd.f32 %v1033_v28, %v968_v25  ;;  %v776_v55 = vadd.f32 %v744_v45, %v679_v32 }
  0xa4   : > { %v486_v14 = vpop.f32.mrf.mxu0  ;;  %v535_v34 = vadd.f32 %v3590_v33, %v534_v35 }
  0xa5   : > { %v487_v16 = vadd.f32 %v3590_v33, %v486_v14  ;;  %v1162_v59 = vadd.f32 %v1130_v48, %v1065_v39  ;;  %v873_v8 = vadd.f32 %v841_v63, %v776_v55 }
  0xa6   : > { %v1194_v19 = vld [vmem:[#allocation2 + $0x30] sm:$0xff]  ;;  %592 = vst.msk [vmem:[#allocation2 + $0xf9] sm:$0xff] %vm279_vm2, %v535_v34 }
  0xa7   : > { %576 = vst.msk [vmem:[#allocation2 + $0x39] sm:$0xff] %vm279_vm2, %v487_v16  ;;  %v1227_v24 = vmul.f32 %v3654_v11, %v1194_v19  ;;  %v1291_v29 = vld [vmem:[#allocation2 + $0x31] sm:$0xff]  ;;  %v937_v54 = vmul.f32 %v1194_v19, %v3637_v56  ;;  %v648_v1 = vmul.f32 %v1194_v19, %v3610_v38 }
  0xa8   : > { %v1324_v47 = vmul.f32 %v3667_v27, %v1291_v29  ;;  %v1034_v14 = vmul.f32 %v1291_v29, %v3648_v5 }
  0xa9   : > { %v1259_v36 = vadd.f32 %v1227_v24, %v1161_v26  ;;  %v969_v7 = vadd.f32 %v937_v54, %v872_v62  ;;  %v680_v19 = vadd.f32 %v3621_v40, %v648_v1  ;;  %v745_v26 = vmul.f32 %v1291_v29, %v3625_v42 }
  0xab   : > { %v1356_v57 = vadd.f32 %v1324_v47, %v1259_v36  ;;  %v537_v9 = vpop.f32.mrf.mxu3  ;;  %v1066_v23 = vadd.f32 %v1034_v14, %v969_v7  ;;  %v777_v39 = vadd.f32 %v745_v26, %v680_v19 }
  0xac   : > { %v489_v41 = vpop.f32.mrf.mxu0  ;;  %v538_v16 = vadd.f32 %v3590_v33, %v537_v9 }
  0xad   : > { %v490_v46 = vadd.f32 %v3590_v33, %v489_v41 }
  0xae   : > { %v1388_v50 = vld [vmem:[#allocation2 + $0x32] sm:$0xff]  ;;  %v1389_v61 = vld [vmem:[#allocation2 + $0x3a] sm:$0xff]  ;;  %593 = vst.msk [vmem:[#allocation2 + $0x109] sm:$0xff] %vm279_vm2, %v538_v16 }
  0xaf   : > { %v1195_v51 = vld [vmem:[#allocation2 + $0x38] sm:$0xff]  ;;  %577 = vst.msk [vmem:[#allocation2 + $0x49] sm:$0xff] %vm279_vm2, %v490_v46  ;;  %v1421_v58 = vmul.f32 %v3675_v37, %v1388_v50  ;;  %v1422_v13 = vmul.f32 %v3675_v37, %v1389_v61  ;;  %v1131_v17 = vmul.f32 %v1388_v50, %v3651_v6  ;;  %v842_v41 = vmul.f32 %v1388_v50, %v3632_v49 }
  0xb0   : > { %v1292_v52 = vld [vmem:[#allocation2 + $0x39] sm:$0xff]  ;;  %v1228_v60 = vmul.f32 %v3654_v11, %v1195_v51  ;;  %v938_v0 = vmul.f32 %v1195_v51, %v3637_v56  ;;  %v649_v28 = vmul.f32 %v1195_v51, %v3610_v38  ;;  %v1132_v45 = vmul.f32 %v1389_v61, %v3651_v6 }
  0xb1   : > { %v1453_v2 = vadd.f32 %v1421_v58, %v1356_v57  ;;  %v1325_v4 = vmul.f32 %v3667_v27, %v1292_v52  ;;  %v1035_v25 = vmul.f32 %v1292_v52, %v3648_v5  ;;  %v1163_v35 = vadd.f32 %v1131_v17, %v1066_v23 }
  0xb2   : > { %v1260_v3 = vadd.f32 %v1228_v60, %v1162_v59  ;;  %v970_v18 = vadd.f32 %v938_v0, %v873_v8  ;;  %v681_v47 = vadd.f32 %v3621_v40, %v649_v28  ;;  %v746_v48 = vmul.f32 %v1292_v52, %v3625_v42 }
  0xb3   : > { %v3693_v10 = vmul.f32 0.70710677, %v1453_v2  ;;  %v843_v51 = vmul.f32 %v1389_v61, %v3632_v49  ;;  %v540_v53 = vpop.f32.mrf.mxu3  ;;  %v3727_v50 = vmul.f32 0.5, %v1453_v2  ;;  %v874_v63 = vadd.f32 %v842_v41, %v777_v39 }
  0xb4   : > { %v1357_v12 = vadd.f32 %v1325_v4, %v1260_v3  ;;  %v492_v15 = vpop.f32.mrf.mxu0  ;;  %v1067_v36 = vadd.f32 %v1035_v25, %v970_v18  ;;  %v541_v59 = vadd.f32 %v3590_v33, %v540_v53 }
  0xb5   : > { %v493_v20 = vadd.f32 %v3590_v33, %v492_v15  ;;  %v1549_v21 = vmul.f32 %v3693_v10, %v3693_v10 }
  0xb6   : > { %v1454_v22 = vadd.f32 %v1422_v13, %v1357_v12  ;;  %v3704_v24 = vld [vmem:[#allocation2 + $0x48] sm:$0xff]  ;;  %v1164_v62 = vadd.f32 %v1132_v45, %v1067_v36  ;;  %594 = vst.msk [vmem:[#allocation2 + $0x111] sm:$0xff] %vm279_vm2, %v541_v59  ;;  %v778_v12 = vadd.f32 %v746_v48, %v681_v47  ;;  %v2893_v48 = vld [vmem:[%s5821_s5] sm:$0xff] }
  0xb7   : > { %578 = vst.msk [vmem:[#allocation2 + $0x51] sm:$0xff] %vm279_vm2, %v493_v20  ;;  %v3710_v30 = vmin.f32 %v1549_v21, 16.0  ;;  %v1229_v32 = vmul.f32 %v3654_v11, %v3704_v24  ;;  %v3721_v44 = vld [vmem:[#allocation2 + $0x49] sm:$0xff]  ;;  %v939_v9 = vmul.f32 %v3704_v24, %v3637_v56 }
  0xb8   : > { %v3712_v31 = vmul.f32 0.70710677, %v1454_v22  ;;  %v1326_v60 = vmul.f32 %v3667_v27, %v3721_v44  ;;  %v2894_v13 = vld [vmem:[%s5821_s5 + $0x8] sm:$0xff]  ;;  %v3756_v18 = vmul.f32 0.5, %v1454_v22  ;;  %v1036_v36 = vmul.f32 %v3721_v44, %v3648_v5 }
  0xb9   : > { %v1551_v34 = vmul.f32 2.1237322e-06, %v3710_v30  ;;  %v1562_v29 = vmul.f32 3.8918573e-05, %v3710_v30  ;;  %v1261_v46 = vadd.f32 %v1229_v32, %v1163_v35  ;;  %3009 = vmatpush.msra.mxu1 %v2894_v13  ;;  %3306 = vmatpush.msra.mxu2 %v2894_v13  ;;  %v3770_v39 = vadd.f32 %v843_v51, %v778_v12 }
  0xba   : > { %v1589_v43 = vmul.f32 %v3712_v31, %v3712_v31  ;;  %v971_v45 = vadd.f32 %v939_v9, %v874_v63  ;;  %v650_v9 = vmul.f32 %v3704_v24, %v3610_v38 }
  0xbb   : > { %v1552_v54 = vadd.f32 0.00028619796, %v1551_v34  ;;  %v1563_v55 = vadd.f32 0.001143296, %v1562_v29  ;;  %v1358_v3 = vadd.f32 %v1326_v60, %v1261_v46  ;;  %v543_v41 = vpop.f32.mrf.mxu3  ;;  %3010 = vmatpush.msra.mxu1 %v2893_v48  ;;  %3307 = vmatpush.msra.mxu2 %v2893_v48 }
  0xbc   : > { %v3729_v57 = vmin.f32 %v1589_v43, 16.0  ;;  %v495_v58 = vpop.f32.mrf.mxu0  ;;  %v544_v47 = vadd.f32 %v3590_v33, %v543_v41  ;;  %v3827_v48 = vadd.f32 %v3621_v40, %v650_v9 }
  0xbd   : > { %v496_v0 = vadd.f32 %v3590_v33, %v495_v58  ;;  %v1553_v52 = vmul.f32 %v1552_v54, %v3710_v30  ;;  %v1564_v61 = vmul.f32 %v1563_v55, %v3710_v30 }
  0xbe   : > { %v1591_v1 = vmul.f32 2.1237322e-06, %v3729_v57  ;;  %v1602_v2 = vmul.f32 3.8918573e-05, %v3729_v57  ;;  %v3740_v4 = vld [vmem:[#allocation2 + $0x4a] sm:$0xff]  ;;  %v3764_v32 = vld [vmem:[#allocation2 + $0x52] sm:$0xff] }
  0xbf   : > { %v3742_v7 = vld [vmem:[#allocation2 + $0x50] sm:$0xff]  ;;  %579 = vst.msk [vmem:[#allocation2 + $0x61] sm:$0xff] %vm279_vm2, %v496_v0  ;;  %v1554_v14 = vadd.f32 0.0036580483, %v1553_v52  ;;  %v1565_v15 = vadd.f32 0.014752088, %v1564_v61  ;;  %v1423_v16 = vmul.f32 %v3675_v37, %v3740_v4  ;;  %v1424_v55 = vmul.f32 %v3675_v37, %v3764_v32 }
  0xc0   : > { %v3744_v8 = vld [vmem:[#allocation2 + $0x51] sm:$0xff]  ;;  %v1230_v17 = vmul.f32 %v3654_v11, %v3742_v7  ;;  %v1592_v19 = vadd.f32 0.00028619796, %v1591_v1  ;;  %v1603_v20 = vadd.f32 0.001143296, %v1602_v2  ;;  %595 = vst.msk [vmem:[#allocation2 + $0x121] sm:$0xff] %vm279_vm2, %v544_v47  ;;  %v1133_v52 = vmul.f32 %v3740_v4, %v3651_v6 }
  0xc1   : > { %v1327_v21 = vmul.f32 %v3667_v27, %v3744_v8  ;;  %v1555_v23 = vmul.f32 %v1554_v14, %v3710_v30  ;;  %v1566_v25 = vmul.f32 %v1565_v15, %v3710_v30  ;;  %v3762_v26 = vadd.f32 %v1423_v16, %v1358_v3 }
  0xc2   : > { %v1262_v28 = vadd.f32 %v1230_v17, %v1164_v62  ;;  %v1593_v35 = vmul.f32 %v1592_v19, %v3729_v57  ;;  %v1604_v22 = vmul.f32 %v1603_v20, %v3729_v57  ;;  %v1068_v14 = vadd.f32 %v1036_v36, %v971_v45 }
  0xc3   : > { %v1556_v34 = vadd.f32 0.05243302, %v1555_v23  ;;  %v1567_v29 = vadd.f32 0.112945676, %v1566_v25  ;;  %v3782_v60 = vmul.f32 0.70710677, %v3762_v26  ;;  %v3800_v15 = vmul.f32 %v3721_v44, %v3625_v42  ;;  %v546_v44 = vpop.f32.mrf.mxu3 }
  0xc4   : > { %v1359_v43 = vadd.f32 %v1327_v21, %v1262_v28  ;;  %v498_v46 = vpop.f32.mrf.mxu0  ;;  %v1594_v53 = vadd.f32 0.0036580483, %v1593_v35  ;;  %v1605_v54 = vadd.f32 0.014752088, %v1604_v22  ;;  %v1165_v23 = vadd.f32 %v1133_v52, %v1068_v14 }
  0xc5   : > { %v499_v51 = vadd.f32 %v3590_v33, %v498_v46  ;;  %v1557_v58 = vmul.f32 %v1556_v34, %v3710_v30  ;;  %v1568_v59 = vmul.f32 %v1567_v29, %v3710_v30  ;;  %v1629_v2 = vmul.f32 %v3782_v60, %v3782_v60 }
  0xc6   : > { %v1595_v62 = vmul.f32 %v1594_v53, %v3729_v57  ;;  %v1606_v63 = vmul.f32 %v1605_v54, %v3729_v57  ;;  %v3787_v0 = vadd.f32 %v1424_v55, %v1359_v43  ;;  %v3794_v3 = vld [vmem:[#allocation2 + $0x60] sm:$0xff]  ;;  %v940_v22 = vmul.f32 %v3742_v7, %v3637_v56 }
  0xc7   : > { %580 = vst.msk [vmem:[#allocation2 + $0x69] sm:$0xff] %vm279_vm2, %v499_v51  ;;  %v1558_v61 = vadd.f32 0.18741608, %v1557_v58  ;;  %v1569_v1 = vadd.f32 0.4994258, %v1568_v59  ;;  %v3804_v19 = vmin.f32 %v1629_v2, 16.0  ;;  %v1231_v25 = vmul.f32 %v3654_v11, %v3794_v3 }
  0xc8   : > { %v1596_v12 = vadd.f32 0.05243302, %v1595_v62  ;;  %v1607_v13 = vadd.f32 0.112945676, %v1606_v63  ;;  %v3807_v20 = vmul.f32 0.70710677, %v3787_v0  ;;  %v547_v41 = vadd.f32 %v3590_v33, %v546_v44 }
  0xc9   : > { %v1559_v16 = vmul.f32 %v1558_v61, %v3710_v30  ;;  %v1570_v17 = vmul.f32 %v1569_v1, %v3710_v30  ;;  %v1631_v35 = vmul.f32 2.1237322e-06, %v3804_v19  ;;  %v1642_v43 = vmul.f32 3.8918573e-05, %v3804_v19  ;;  %v3824_v47 = vld [vmem:[#allocation2 + $0x61] sm:$0xff] }
  0xca   : > { %v1597_v21 = vmul.f32 %v1596_v12, %v3729_v57  ;;  %v1608_v24 = vmul.f32 %v1607_v13, %v3729_v57  ;;  %v1669_v30 = vmul.f32 %v3807_v20, %v3807_v20  ;;  %596 = vst.msk [vmem:[#allocation2 + $0x129] sm:$0xff] %vm279_vm2, %v547_v41  ;;  %v1263_v51 = vadd.f32 %v1231_v25, %v1165_v23 }
  0xcb   : > { %v3813_v28 = vadd.f32 1.0, %v1570_v17  ;;  %v1560_v46 = vadd.f32 1.1283791, %v1559_v16  ;;  %v1632_v58 = vadd.f32 0.00028619796, %v1631_v35  ;;  %v972_v63 = vadd.f32 %v940_v22, %v3770_v39 }
  0xcc   : > { %v501_v36 = vpop.f32.mrf.mxu0  ;;  %v1598_v34 = vadd.f32 0.18741608, %v1597_v21  ;;  %v1609_v29 = vadd.f32 0.4994258, %v1608_v24  ;;  %v1643_v59 = vadd.f32 0.001143296, %v1642_v43  ;;  %v1328_v2 = vmul.f32 %v3667_v27, %v3824_v47 }
  0xcd   : > { %v502_v45 = vadd.f32 %v3590_v33, %v501_v36  ;;  %3321 = vrcp.f32 %v3813_v28  ;;  %v1583_v53 = vand.u32 2147483648, %v3813_v28  ;;  %v3834_v62 = vmin.f32 %v1669_v30, 16.0 }
  0xce   : > { %v1599_v54 = vmul.f32 %v1598_v34, %v3729_v57  ;;  %v1610_v55 = vmul.f32 %v1609_v29, %v3729_v57  ;;  %v1581_v52 = vand.u32 2147483647, %v3813_v28  ;;  %v3842_v9 = vld [vmem:[#allocation2 + $0x62] sm:$0xff]  ;;  %v3845_v57 = vmul.f32 %v1560_v46, %v3693_v10  ;;  %v549_v10 = vpop.f32.mrf.mxu3 }
  0xcf   : > { %581 = vst.msk [vmem:[#allocation2 + $0x79] sm:$0xff] %vm279_vm2, %v502_v45  ;;  %v1633_v12 = vmul.f32 %v1632_v58, %v3804_v19  ;;  %v1644_v13 = vmul.f32 %v1643_v59, %v3804_v19  ;;  %v1037_v39 = vmul.f32 %v3744_v8, %v3648_v5  ;;  %vm1577_vm5 = vweird.f32 %v3813_v28 }
  0xd0   : > { %v1600_v61 = vadd.f32 1.1283791, %v1599_v54  ;;  %v3838_v1 = vadd.f32 1.0, %v1610_v55  ;;  %v1671_v14 = vmul.f32 2.1237322e-06, %v3834_v62  ;;  %v1360_v17 = vadd.f32 %v1328_v2, %v1263_v51 }
  0xd1   : > { %v1682_v16 = vmul.f32 3.8918573e-05, %v3834_v62  ;;  %v1584_v24 = vor.u32 1.1754944e-38, %v1583_v53  ;;  %v1634_v23 = vadd.f32 0.0036580483, %v1633_v12  ;;  %v1425_v44 = vmul.f32 %v3675_v37, %v3842_v9 }
  0xd2   : > { %3323 = vrcp.f32 %v3838_v1  ;;  %v1645_v25 = vadd.f32 0.014752088, %v1644_v13  ;;  %vm3858_vm6 = vcmp.eq.f32.partialorder %v1581_v52, 8.507059e+37  ;;  %v3863_v36 = vmul.f32 %v1600_v61, %v3712_v31 }
  0xd3   : > { %v3322_v21 = vpop.eup %3321  ;;  %v1623_v41 = vand.u32 2147483648, %v3838_v1  ;;  %v550_v34 = vadd.f32 %v3590_v33, %v549_v10  ;;  %v1621_v43 = vand.u32 2147483647, %v3838_v1  ;;  %v1635_v45 = vmul.f32 %v1634_v23, %v3804_v19 }
  0xd4   : > { %v504_v35 = vpop.f32.mrf.mxu0  ;;  %v1573_v30 = vmul.f32 %v3322_v21, %v3813_v28  ;;  %v1646_v46 = vmul.f32 %v1645_v25, %v3804_v19  ;;  %v1672_v54 = vadd.f32 0.00028619796, %v1671_v14  ;;  %v1683_v55 = vadd.f32 0.001143296, %v1682_v16 }
  0xd5   : > { %v505_v29 = vadd.f32 %v3590_v33, %v504_v35  ;;  %597 = vst.msk [vmem:[#allocation2 + $0x139] sm:$0xff] %vm279_vm2, %v550_v34  ;;  %v3872_v51 = vadd.f32 %v1425_v44, %v1360_v17  ;;  %vm1578_vm7 = vweird.f32 %v3322_v21  ;;  %vm1617_vm8 = vweird.f32 %v3838_v1 }
  0xd6   : > { %v1574_v53 = vsub.f32 1.0, %v1573_v30  ;;  %v1636_v31 = vadd.f32 0.05243302, %v1635_v45  ;;  %v1647_v58 = vadd.f32 0.112945676, %v1646_v46  ;;  %v1624_v61 = vor.u32 1.1754944e-38, %v1623_v41  ;;  %vm1579_vm9 = vmor %vm1577_vm5, %vm1578_vm7  ;;  %v552_v34 = vpop.f32.mrf.mxu3 }
  0xd7   : > { %582 = vst.msk [vmem:[#allocation2 + $0x81] sm:$0xff] %vm279_vm2, %v505_v29  ;;  %v1673_v2 = vmul.f32 %v1672_v54, %v3834_v62  ;;  %v1684_v12 = vmul.f32 %v1683_v55, %v3834_v62  ;;  %v1069_v17 = vadd.f32 %v1037_v39, %v972_v63  ;;  %v3882_v44 = vmul.f32 0.70710677, %v3872_v51  ;;  %v3892_v54 = vld [vmem:[#allocation2 + $0x68] sm:$0xff] }
  0xd8   : > { %v3324_v59 = vpop.eup %3323  ;;  %v1575_v52 = vmul.f32 %v3322_v21, %v1574_v53  ;;  %v1637_v14 = vmul.f32 %v1636_v31, %v3804_v19  ;;  %v1648_v16 = vmul.f32 %v1647_v58, %v3804_v19  ;;  %v1134_v29 = vmul.f32 %v3764_v32, %v3651_v6 }
  0xd9   : > { %v1613_v13 = vmul.f32 %v3324_v59, %v3838_v1  ;;  %v1674_v23 = vadd.f32 0.0036580483, %v1673_v2  ;;  %v1685_v25 = vadd.f32 0.014752088, %v1684_v12  ;;  %v553_v63 = vadd.f32 %v3590_v33, %v552_v34 }
  0xda   : > { %v1576_v10 = vadd.f32 %v3322_v21, %v1575_v52  ;;  %v1638_v30 = vadd.f32 0.18741608, %v1637_v14  ;;  %v1649_v41 = vadd.f32 0.4994258, %v1648_v16  ;;  %vm1618_vm10 = vweird.f32 %v3324_v59 }
  0xdb   : > { %v1614_v35 = vsub.f32 1.0, %v1613_v13  ;;  %v1675_v39 = vmul.f32 %v1674_v23, %v3834_v62  ;;  %v1686_v53 = vmul.f32 %v1685_v25, %v3834_v62  ;;  %598 = vst.msk [vmem:[#allocation2 + $0x141] sm:$0xff] %vm279_vm2, %v553_v63  ;;  %v1709_v14 = vmul.f32 %v3882_v44, %v3882_v44  ;;  %vm1619_vm11 = vmor %vm1617_vm8, %vm1618_vm10 }
  0xdc   : > { %v507_v45 = vpop.f32.mrf.mxu0  ;;  %v1580_v46 = vsel %vm1579_vm9, %v3322_v21, %v1576_v10  ;;  %v1650_v52 = vmul.f32 %v1649_v41, %v3804_v19  ;;  %v1639_v13 = vmul.f32 %v1638_v30, %v3804_v19  ;;  %vm1622_vm12 = vcmp.eq.f32.partialorder %v1621_v43, 8.507059e+37 }
  0xdd   : > { %v508_v28 = vadd.f32 %v3590_v33, %v507_v45  ;;  %v1585_v55 = vsel %vm3858_vm6, %v1584_v24, %v1580_v46  ;;  %v1615_v31 = vmul.f32 %v3324_v59, %v1614_v35  ;;  %v1676_v21 = vadd.f32 0.05243302, %v1675_v39 }
  0xde   : > { %v1586_v58 = vmul.f32 %v1585_v55, %v3845_v57  ;;  %v1687_v2 = vadd.f32 0.112945676, %v1686_v53  ;;  %v1232_v24 = vmul.f32 %v3654_v11, %v3892_v54  ;;  %v3908_v57 = vadd.f32 1.0, %v1650_v52  ;;  %v555_v46 = vpop.f32.mrf.mxu3 }
  0xdf   : > { %583 = vst.msk [vmem:[#allocation2 + $0x91] sm:$0xff] %vm279_vm2, %v508_v28  ;;  %v1616_v12 = vadd.f32 %v3324_v59, %v1615_v31  ;;  %v1677_v16 = vmul.f32 %v1676_v21, %v3834_v62  ;;  %v3912_v25 = vmin.f32 %v1709_v14, 16.0  ;;  %v1166_v19 = vadd.f32 %v1134_v29, %v1069_v17 }
  0xe0   : > { %v3237_v22 = vclamps-f32 %v1586_v58, 1.0  ;;  %v1688_v10 = vmul.f32 %v1687_v2, %v3834_v62  ;;  %3325 = vrcp.f32 %v3908_v57  ;;  %v779_v41 = vadd.f32 %v3800_v15, %v3827_v48 }
  0xe1   : > { %v1620_v23 = vsel %vm1619_vm11, %v3324_v59, %v1616_v12  ;;  %v1640_v34 = vadd.f32 1.1283791, %v1639_v13  ;;  %v1678_v45 = vadd.f32 0.18741608, %v1677_v16  ;;  %v1264_v63 = vadd.f32 %v1232_v24, %v1166_v19  ;;  %v3938_v12 = vld [vmem:[#allocation2 + $0x6a] sm:$0xff] }
  0xe2   : > { %v2829_v35 = vadd.f32 1.0, %v3237_v22  ;;  %v1625_v30 = vsel %vm1622_vm12, %v1624_v61, %v1620_v23  ;;  %v1689_v43 = vadd.f32 0.4994258, %v1688_v10  ;;  %v556_v53 = vadd.f32 %v3590_v33, %v555_v46  ;;  %v3921_v61 = vld [vmem:[#allocation2 + $0x69] sm:$0xff] }
  0xe3   : > { %v1626_v1 = vmul.f32 %v1625_v30, %v3863_v36  ;;  %v1711_v17 = vmul.f32 2.1237322e-06, %v3912_v25  ;;  %v1661_v15 = vand.u32 2147483647, %v3908_v57  ;;  %v1663_v48 = vand.u32 2147483648, %v3908_v57 }
  0xe4   : > { %v510_v39 = vpop.f32.mrf.mxu0  ;;  %v2861_v59 = vmul.f32 %v2829_v35, %v3727_v50  ;;  %v1679_v36 = vmul.f32 %v1678_v45, %v3834_v62  ;;  %v1690_v50 = vmul.f32 %v1689_v43, %v3834_v62  ;;  %599 = vst.msk [vmem:[#allocation2 + $0x151] sm:$0xff] %vm279_vm2, %v556_v53  ;;  %v1722_v31 = vmul.f32 3.8918573e-05, %v3912_v25 }
  0xe5   : > { %v511_v29 = vadd.f32 %v3590_v33, %v510_v39  ;;  %v3238_v28 = vclamps-f32 %v1626_v1, 1.0  ;;  %v1712_v55 = vadd.f32 0.00028619796, %v1711_v17  ;;  %v3933_v52 = vmul.f32 0.5, %v3762_v26  ;;  %v3964_v17 = vld [vmem:[#allocation2 + $0x78] sm:$0xff] }
  0xe6   : > { %3269 = vmatmul.msk.f32.vlgmr.msra.gmra.mxu1 %vm279_vm2, %v2861_v59  ;;  %v1641_v21 = vmul.f32 %v1640_v34, %v3782_v60  ;;  %v1329_v2 = vmul.f32 %v3667_v27, %v3921_v61  ;;  %v3326_v13 = vpop.eup %3325  ;;  %vm1657_vm13 = vweird.f32 %v3908_v57  ;;  %v3941_v62 = vadd.f32 1.0, %v1690_v50 }
  0xe7   : > { %584 = vst.msk [vmem:[#allocation2 + $0x99] sm:$0xff] %vm279_vm2, %v511_v29  ;;  %v2830_v58 = vadd.f32 1.0, %v3238_v28  ;;  %v1713_v14 = vmul.f32 %v1712_v55, %v3912_v25  ;;  %v1723_v24 = vadd.f32 0.001143296, %v1722_v31  ;;  %v1653_v22 = vmul.f32 %v3326_v13, %v3908_v57 }
  0xe8   : > { %vm3945_vm14 = vcmp.eq.f32.partialorder %v1661_v15, 8.507059e+37  ;;  %v1664_v60 = vor.u32 1.1754944e-38, %v1663_v48  ;;  %v1361_v16 = vadd.f32 %v1329_v2, %v1264_v63  ;;  %v844_v10 = vmul.f32 %v3740_v4, %v3632_v49 }
  0xe9   : > { %v2862_v23 = vmul.f32 %v2830_v58, %v3756_v18  ;;  %v1680_v19 = vadd.f32 1.1283791, %v1679_v36  ;;  %3327 = vrcp.f32 %v3941_v62  ;;  %v1426_v35 = vmul.f32 %v3675_v37, %v3938_v12  ;;  %v3973_v36 = vld [vmem:[#allocation2 + $0x79] sm:$0xff] }
  0xea   : > { %v1654_v30 = vsub.f32 1.0, %v1653_v22  ;;  %v1703_v1 = vand.u32 2147483648, %v3941_v62  ;;  %v1714_v34 = vadd.f32 0.0036580483, %v1713_v14  ;;  %v1724_v45 = vmul.f32 %v1723_v24, %v3912_v25 }
  0xeb   : > { %vm1658_vm15 = vweird.f32 %v3326_v13  ;;  %v1701_v63 = vand.u32 2147483647, %v3941_v62  ;;  %v3958_v39 = vadd.f32 %v1426_v35, %v1361_v16  ;;  %v941_v4 = vmul.f32 %v3794_v3, %v3637_v56 }
  0xec   : > { %v513_v46 = vpop.f32.mrf.mxu0  ;;  %v1655_v59 = vmul.f32 %v3326_v13, %v1654_v30  ;;  %v1715_v43 = vmul.f32 %v1714_v34, %v3912_v25  ;;  %v876_v53 = vadd.f32 %v844_v10, %v779_v41  ;;  %v3968_v29 = vmul.f32 %v1680_v19, %v3807_v20  ;;  %vm1659_vm3 = vmor %vm1657_vm13, %vm1658_vm15 }
  0xed   : > { %v514_v18 = vadd.f32 %v3590_v33, %v513_v46  ;;  %v1704_v28 = vor.u32 1.1754944e-38, %v1703_v1  ;;  %v1725_v15 = vadd.f32 0.014752088, %v1724_v45  ;;  %v3971_v48 = vmul.f32 0.70710677, %v3958_v39 }
  0xee   : > { %3270 = vmatmul.msk.f32.gmra.mxu1 %vm279_vm2, %v2862_v23  ;;  %v1656_v50 = vadd.f32 %v3326_v13, %v1655_v59  ;;  %vm1697_vm0 = vweird.f32 %v3941_v62  ;;  %v1716_v41 = vadd.f32 0.05243302, %v1715_v43  ;;  %v973_v55 = vadd.f32 %v941_v4, %v876_v53  ;;  %v3993_v23 = vld [vmem:[#allocation2 + $0x7a] sm:$0xff] }
  0xef   : > { %585 = vst.msk [vmem:[#allocation2 + $0xa9] sm:$0xff] %vm279_vm2, %v514_v18  ;;  %v1038_v31 = vmul.f32 %v3824_v47, %v3648_v5  ;;  %v3328_v58 = vpop.eup %3327  ;;  %v1726_v20 = vmul.f32 %v1725_v15, %v3912_v25  ;;  %v1749_v2 = vmul.f32 %v3971_v48, %v3971_v48  ;;  %v1135_v14 = vmul.f32 %v3842_v9, %v3651_v6  ;;  %v558_v15 = vpop.f32.mrf.mxu3 }
  0xf0   : > { %v1233_v24 = vmul.f32 %v3654_v11, %v3964_v17  ;;  %v1660_v22 = vsel %vm1659_vm3, %v3326_v13, %v1656_v50  ;;  %v1693_v16 = vmul.f32 %v3328_v58, %v3941_v62  ;;  %v1717_v10 = vmul.f32 %v1716_v41, %v3912_v25 }
  0xf1   : > { %v1330_v57 = vmul.f32 %v3667_v27, %v3973_v36  ;;  %v1665_v19 = vsel %vm3945_vm14, %v1664_v60, %v1660_v22  ;;  %vm1698_vm4 = vweird.f32 %v3328_v58  ;;  %v1727_v35 = vadd.f32 0.112945676, %v1726_v20 }
  0xf2   : > { %v3997_v30 = vmin.f32 %v1749_v2, 16.0  ;;  %v1666_v1 = vmul.f32 %v1665_v19, %v1641_v21  ;;  %v1694_v34 = vsub.f32 1.0, %v1693_v16  ;;  %v1718_v45 = vadd.f32 0.18741608, %v1717_v10  ;;  %vm1699_vm5 = vmor %vm1697_vm0, %vm1698_vm4 }
  0xf3   : > { %v1070_v13 = vadd.f32 %v1038_v31, %v973_v55  ;;  %v1728_v4 = vmul.f32 %v1727_v35, %v3912_v25  ;;  %v1427_v43 = vmul.f32 %v3675_v37, %v3993_v23  ;;  %v559_v41 = vadd.f32 %v3590_v33, %v558_v15 }
  0xf4   : > { %v516_v46 = vpop.f32.mrf.mxu0  ;;  %v1751_v18 = vmul.f32 2.1237322e-06, %v3997_v30  ;;  %v1762_v59 = vmul.f32 3.8918573e-05, %v3997_v30  ;;  %v3239_v60 = vclamps-f32 %v1666_v1, 1.0  ;;  %v1695_v53 = vmul.f32 %v3328_v58, %v1694_v34 }
  0xf5   : > { %v517_v26 = vadd.f32 %v3590_v33, %v516_v46  ;;  %v1167_v50 = vadd.f32 %v1135_v14, %v1070_v13  ;;  %v1729_v21 = vadd.f32 0.4994258, %v1728_v4  ;;  %v1719_v22 = vmul.f32 %v1718_v45, %v3912_v25  ;;  %600 = vst.msk [vmem:[#allocation2 + $0x159] sm:$0xff] %vm279_vm2, %v559_v41 }
  0xf6   : > { %v1752_v55 = vadd.f32 0.00028619796, %v1751_v18  ;;  %v1763_v31 = vadd.f32 0.001143296, %v1762_v59  ;;  %v2831_v20 = vadd.f32 1.0, %v3239_v60  ;;  %v1696_v2 = vadd.f32 %v3328_v58, %v1695_v53 }
  0xf7   : > { %586 = vst.msk [vmem:[#allocation2 + $0xb1] sm:$0xff] %vm279_vm2, %v517_v26  ;;  %v1265_v16 = vadd.f32 %v1233_v24, %v1167_v50  ;;  %v1730_v10 = vmul.f32 %v1729_v21, %v3912_v25  ;;  %v651_v35 = vmul.f32 %v3742_v7, %v3610_v38  ;;  %vm1702_vm6 = vcmp.eq.f32.partialorder %v1701_v63, 8.507059e+37 }
  0xf8   : > { %v1753_v14 = vmul.f32 %v1752_v55, %v3997_v30  ;;  %v1764_v19 = vmul.f32 %v1763_v31, %v3997_v30  ;;  %v2863_v1 = vmul.f32 %v2831_v20, %v3933_v52  ;;  %v1700_v34 = vsel %vm1699_vm5, %v3328_v58, %v1696_v2 }
  0xf9   : > { %v1362_v24 = vadd.f32 %v1330_v57, %v1265_v16  ;;  %v1705_v45 = vsel %vm1702_vm6, %v1704_v28, %v1700_v34  ;;  %v4020_v13 = vadd.f32 1.0, %v1730_v10  ;;  %v683_v7 = vadd.f32 %v3621_v40, %v651_v35 }
  0xfa   : > { %v1754_v25 = vadd.f32 0.0036580483, %v1753_v14  ;;  %v1765_v46 = vadd.f32 0.014752088, %v1764_v19  ;;  %3271 = vmatmul.msk.f32.gmra.mxu1 %vm279_vm2, %v2863_v1  ;;  %v1706_v4 = vmul.f32 %v1705_v45, %v3968_v29  ;;  %v1720_v52 = vadd.f32 1.1283791, %v1719_v22  ;;  %v561_v19 = vpop.f32.mrf.mxu3 }
  0xfb   : > { %v4024_v18 = vadd.f32 %v1427_v43, %v1362_v24  ;;  %3329 = vrcp.f32 %v4020_v13  ;;  %v748_v62 = vmul.f32 %v3744_v8, %v3625_v42  ;;  %v1488_v29 = vmul.f32 0.5, %v3787_v0  ;;  %v4063_v1 = vld [vmem:[#allocation2 + $0x80] sm:$0xff] }
  0xfc   : > { %v519_v59 = vpop.f32.mrf.mxu0  ;;  %v3240_v28 = vclamps-f32 %v1706_v4, 1.0  ;;  %v1755_v58 = vmul.f32 %v1754_v25, %v3997_v30  ;;  %v1766_v57 = vmul.f32 %v1765_v46, %v3997_v30  ;;  %v4035_v43 = vmul.f32 0.5, %v3872_v51  ;;  %v4071_v4 = vld [vmem:[%s5818_s2] ss:$0 sm:$0xff] }
  0xfd   : > { %v520_v63 = vadd.f32 %v3590_v33, %v519_v59  ;;  %v4038_v40 = vmul.f32 0.70710677, %v4024_v18  ;;  %v780_v53 = vadd.f32 %v748_v62, %v683_v7  ;;  %v4042_v15 = vmul.f32 %v1720_v52, %v3882_v44 }
  0xfe   : > { %v2832_v26 = vadd.f32 1.0, %v3240_v28  ;;  %v1756_v60 = vadd.f32 0.05243302, %v1755_v58  ;;  %v1767_v8 = vadd.f32 0.112945676, %v1766_v57  ;;  %v845_v0 = vmul.f32 %v3764_v32, %v3632_v49 }
  0xff   : > { %587 = vst.msk [vmem:[#allocation2 + $0xc1] sm:$0xff] %vm279_vm2, %v520_v63  ;;  %v1789_v50 = vmul.f32 %v4038_v40, %v4038_v40  ;;  %v942_v51 = vmul.f32 %v3892_v54, %v3637_v56  ;;  %vm1737_vm7 = vweird.f32 %v4020_v13  ;;  %v1741_v41 = vand.u32 2147483647, %v4020_v13 }
 0x100   : > { %v2864_v21 = vmul.f32 %v2832_v26, %v1488_v29  ;;  %v1757_v55 = vmul.f32 %v1756_v60, %v3997_v30  ;;  %v1768_v31 = vmul.f32 %v1767_v8, %v3997_v30  ;;  %v1743_v20 = vand.u32 2147483648, %v4020_v13  ;;  %v4082_v26 = vld [vmem:[#allocation2 + $0x81] sm:$0xff] }
 0x101   : > { %v3330_v44 = vpop.eup %3329  ;;  %v4055_v2 = vmin.f32 %v1789_v50, 16.0  ;;  %v877_v22 = vadd.f32 %v845_v0, %v780_v53  ;;  %v1039_v32 = vmul.f32 %v3921_v61, %v3648_v5  ;;  %v1136_v35 = vmul.f32 %v3938_v12, %v3651_v6  ;;  %v4084_v60 = vld [vmem:[#allocation2 + $0x82] sm:$0xff] }
 0x102   : > { %3272 = vmatmul.msk.f32.gmra.mxu1 %vm279_vm2, %v2864_v21  ;;  %v1733_v16 = vmul.f32 %v3330_v44, %v4020_v13  ;;  %v1758_v10 = vadd.f32 0.18741608, %v1757_v55  ;;  %v1769_v14 = vadd.f32 0.4994258, %v1768_v31  ;;  %v562_v24 = vadd.f32 %v3590_v33, %v561_v19 }
 0x103   : > { %v1791_v45 = vmul.f32 2.1237322e-06, %v4055_v2  ;;  %v1802_v25 = vmul.f32 3.8918573e-05, %v4055_v2  ;;  %v974_v46 = vadd.f32 %v942_v51, %v877_v22  ;;  %v1234_v58 = vmul.f32 %v3654_v11, %v4063_v1 }
 0x104   : > { %v522_v34 = vpop.f32.mrf.mxu0  ;;  %v1734_v59 = vsub.f32 1.0, %v1733_v16  ;;  %v1759_v52 = vmul.f32 %v1758_v10, %v3997_v30  ;;  %v1770_v62 = vmul.f32 %v1769_v14, %v3997_v30  ;;  %601 = vst.msk [vmem:[#allocation2 + $0x169] sm:$0xff] %vm279_vm2, %v562_v24  ;;  %vm1738_vm8 = vweird.f32 %v3330_v44 }
 0x105   : > { %v523_v7 = vadd.f32 %v4071_v4, %v522_v34  ;;  %v1792_v33 = vadd.f32 0.00028619796, %v1791_v45  ;;  %v1803_v63 = vadd.f32 0.001143296, %v1802_v25  ;;  %v1071_v28 = vadd.f32 %v1039_v32, %v974_v46  ;;  %vm1739_vm10 = vmor %vm1737_vm7, %vm1738_vm8 }
 0x106   : > { %v1735_v57 = vmul.f32 %v3330_v44, %v1734_v59  ;;  %v4080_v29 = vadd.f32 1.0, %v1770_v62  ;;  %v652_v30 = vmul.f32 %v3794_v3, %v3610_v38  ;;  %v1760_v8 = vadd.f32 1.1283791, %v1759_v52 }
 0x107   : > { %588 = vst.msk [vmem:[#allocation2 + $0xc9] sm:$0xff] %vm279_vm2, %v523_v7  ;;  %v1793_v53 = vmul.f32 %v1792_v33, %v4055_v2  ;;  %v1804_v50 = vmul.f32 %v1803_v63, %v4055_v2  ;;  %v1168_v0 = vadd.f32 %v1136_v35, %v1071_v28  ;;  %vm1742_vm9 = vcmp.eq.f32.partialorder %v1741_v41, 8.507059e+37  ;;  %v4100_v41 = vld [vmem:[%s5820_s4] ss:$0 sm:$0xff] }
 0x108   : > { %v1736_v51 = vadd.f32 %v3330_v44, %v1735_v57  ;;  %v1744_v21 = vor.u32 1.1754944e-38, %v1743_v20  ;;  %3331 = vrcp.f32 %v4080_v29  ;;  %v1331_v22 = vmul.f32 %v3667_v27, %v4082_v26 }
 0x109   : > { %v1794_v55 = vadd.f32 0.0036580483, %v1793_v53  ;;  %v1266_v31 = vadd.f32 %v1234_v58, %v1168_v0  ;;  %v1428_v3 = vmul.f32 %v3675_v37, %v4084_v60  ;;  %v1805_v16 = vadd.f32 0.014752088, %v1804_v50  ;;  %v564_v0 = vpop.f32.mrf.mxu3 }
 0x10a   : > { %v1740_v32 = vsel %vm1739_vm10, %v3330_v44, %v1736_v51  ;;  %v684_v20 = vadd.f32 %v4100_v41, %v652_v30  ;;  %v749_v13 = vmul.f32 %v3824_v47, %v3625_v42  ;;  %v4106_v19 = vmul.f32 %v1760_v8, %v3971_v48  ;;  %v4130_v8 = vld [vmem:[#allocation2 + $0x90] sm:$0xff] }
 0x10b   : > { %v1745_v10 = vsel %vm1742_vm9, %v1744_v21, %v1740_v32  ;;  %v1795_v35 = vmul.f32 %v1794_v55, %v4055_v2  ;;  %v846_v37 = vmul.f32 %v3842_v9, %v3632_v49  ;;  %v1806_v24 = vmul.f32 %v1805_v16, %v4055_v2 }
 0x10c   : > { %v525_v14 = vpop.f32.mrf.mxu0  ;;  %v1746_v44 = vmul.f32 %v1745_v10, %v4042_v15  ;;  %v1363_v45 = vadd.f32 %v1331_v22, %v1266_v31  ;;  %vm1777_vm11 = vweird.f32 %v4080_v29  ;;  %v781_v25 = vadd.f32 %v749_v13, %v684_v20 }
 0x10d   : > { %v526_v34 = vadd.f32 %v4071_v4, %v525_v14  ;;  %v1796_v47 = vadd.f32 0.05243302, %v1795_v35  ;;  %v943_v48 = vmul.f32 %v3964_v17, %v3637_v56  ;;  %v1781_v9 = vand.u32 2147483647, %v4080_v29  ;;  %v4146_v14 = vld [vmem:[#allocation2 + $0x91] sm:$0xff] }
 0x10e   : > { %v3332_v46 = vpop.eup %3331  ;;  %v3241_v7 = vclamps-f32 %v1746_v44, 1.0  ;;  %v1807_v59 = vadd.f32 0.112945676, %v1806_v24  ;;  %v4119_v15 = vadd.f32 %v1428_v3, %v1363_v45  ;;  %v1783_v62 = vand.u32 2147483648, %v4080_v29  ;;  %v4148_v35 = vld [vmem:[#allocation2 + $0x92] sm:$0xff] }
 0x10f   : > { %589 = vst.msk [vmem:[#allocation2 + $0xd9] sm:$0xff] %vm279_vm2, %v526_v34  ;;  %v1773_v52 = vmul.f32 %v3332_v46, %v4080_v29  ;;  %v1797_v33 = vmul.f32 %v1796_v47, %v4055_v2  ;;  %v878_v63 = vadd.f32 %v846_v37, %v781_v25  ;;  %v1040_v30 = vmul.f32 %v3973_v36, %v3648_v5 }
 0x110   : > { %v2833_v28 = vadd.f32 1.0, %v3241_v7  ;;  %v1808_v58 = vmul.f32 %v1807_v59, %v4055_v2  ;;  %v4126_v57 = vmul.f32 0.70710677, %v4119_v15  ;;  %v1137_v21 = vmul.f32 %v3993_v23, %v3651_v6 }
 0x111   : > { %v1774_v53 = vsub.f32 1.0, %v1773_v52  ;;  %v1798_v50 = vadd.f32 0.18741608, %v1797_v33  ;;  %v975_v51 = vadd.f32 %v943_v48, %v878_v63  ;;  %v565_v22 = vadd.f32 %v4071_v4, %v564_v0 }
 0x112   : > { %v2865_v55 = vmul.f32 %v2833_v28, %v4035_v43  ;;  %v1809_v31 = vadd.f32 0.4994258, %v1808_v58  ;;  %v1829_v3 = vmul.f32 %v4126_v57, %v4126_v57  ;;  %vm1778_vm12 = vweird.f32 %v3332_v46 }
 0x113   : > { %v1775_v32 = vmul.f32 %v3332_v46, %v1774_v53  ;;  %v1072_v16 = vadd.f32 %v1040_v30, %v975_v51  ;;  %v1235_v20 = vmul.f32 %v3654_v11, %v4130_v8  ;;  %v1799_v13 = vmul.f32 %v1798_v50, %v4055_v2  ;;  %602 = vst.msk [vmem:[#allocation2 + $0x171] sm:$0xff] %vm279_vm2, %v565_v22  ;;  %vm1779_vm14 = vmor %vm1777_vm11, %vm1778_vm12 }
 0x114   : > { %3273 = vmatmul.msk.f32.gmra.mxu1 %vm279_vm2, %v2865_v55  ;;  %v1810_v10 = vmul.f32 %v1809_v31, %v4055_v2  ;;  %v4144_v43 = vmin.f32 %v1829_v3, 16.0  ;;  %v653_v37 = vmul.f32 %v3892_v54, %v3610_v38  ;;  %vm1782_vm13 = vcmp.eq.f32.partialorder %v1781_v9, 8.507059e+37  ;;  %v4165_v9 = vld [vmem:[%s5819_s3 + $0x8] ss:$0 sm:$0xff]  ;;  %v4185_v3 = vld [vmem:[#allocation2 + $0x98] sm:$0xff] }
 0x115   : > { %v1776_v44 = vadd.f32 %v3332_v46, %v1775_v32  ;;  %v1784_v34 = vor.u32 1.1754944e-38, %v1783_v62  ;;  %v1169_v24 = vadd.f32 %v1137_v21, %v1072_v16  ;;  %v1332_v54 = vmul.f32 %v3667_v27, %v4146_v14 }
 0x116   : > { %v4155_v2 = vadd.f32 1.0, %v1810_v10  ;;  %v1831_v45 = vmul.f32 2.1237322e-06, %v4144_v43  ;;  %v1842_v47 = vmul.f32 3.8918573e-05, %v4144_v43  ;;  %v685_v25 = vadd.f32 %v4100_v41, %v653_v37 }
 0x117   : > { %v1780_v48 = vsel %vm1779_vm14, %v3332_v46, %v1776_v44  ;;  %v1267_v7 = vadd.f32 %v1235_v20, %v1169_v24  ;;  %v1429_v29 = vmul.f32 %v4165_v9, %v4148_v35  ;;  %v1800_v52 = vadd.f32 1.1283791, %v1799_v13 }
 0x118   : > { %v1785_v59 = vsel %vm1782_vm13, %v1784_v34, %v1780_v48  ;;  %3333 = vrcp.f32 %v4155_v2  ;;  %v750_v62 = vmul.f32 %v3921_v61, %v3625_v42  ;;  %v1823_v33 = vand.u32 2147483648, %v4155_v2 }
 0x119   : > { %v1786_v46 = vmul.f32 %v1785_v59, %v4106_v19  ;;  %v1832_v63 = vadd.f32 0.00028619796, %v1831_v45  ;;  %v1843_v28 = vadd.f32 0.001143296, %v1842_v47  ;;  %v1364_v58 = vadd.f32 %v1332_v54, %v1267_v7 }
 0x11a   : > { %v782_v30 = vadd.f32 %v750_v62, %v685_v25  ;;  %v847_v53 = vmul.f32 %v3938_v12, %v3632_v49  ;;  %v944_v50 = vmul.f32 %v4063_v1, %v3637_v56  ;;  %v1821_v51 = vand.u32 2147483647, %v4155_v2  ;;  %v4187_v12 = vld [vmem:[#allocation2 + $0x99] sm:$0xff] }
 0x11b   : > { %v3242_v0 = vclamps-f32 %v1786_v46, 1.0  ;;  %v1833_v21 = vmul.f32 %v1832_v63, %v4144_v43  ;;  %v1844_v61 = vmul.f32 %v1843_v28, %v4144_v43  ;;  %v1490_v19 = vmul.f32 0.5, %v3958_v39 }
 0x11c   : > { %v1801_v55 = vmul.f32 %v1800_v52, %v4038_v40  ;;  %v4183_v31 = vadd.f32 %v1429_v29, %v1364_v58  ;;  %v879_v22 = vadd.f32 %v847_v53, %v782_v30  ;;  %vm1817_vm15 = vweird.f32 %v4155_v2 }
 0x11d   : > { %v2834_v32 = vadd.f32 1.0, %v3242_v0  ;;  %v1824_v16 = vor.u32 1.1754944e-38, %v1823_v33  ;;  %v1834_v20 = vadd.f32 0.0036580483, %v1833_v21  ;;  %v1845_v13 = vadd.f32 0.014752088, %v1844_v61 }
 0x11e   : > { %v3334_v10 = vpop.eup %3333  ;;  %v4191_v37 = vmul.f32 0.70710677, %v4183_v31  ;;  %v976_v39 = vadd.f32 %v944_v50, %v879_v22  ;;  %v1041_v40 = vmul.f32 %v4082_v26, %v3648_v5  ;;  %v1138_v44 = vmul.f32 %v4084_v60, %v3651_v6  ;;  %v4224_v61 = vld [vmem:[#allocation2 + $0x9a] sm:$0xff] }
 0x11f   : > { %v2866_v34 = vmul.f32 %v2834_v32, %v1490_v19  ;;  %v1813_v24 = vmul.f32 %v3334_v10, %v4155_v2  ;;  %vm4198_vm0 = vcmp.eq.f32.partialorder %v1821_v51, 8.507059e+37  ;;  %v1835_v47 = vmul.f32 %v1834_v20, %v4144_v43 }
 0x120   : > { %v1236_v25 = vmul.f32 %v3654_v11, %v4185_v3  ;;  %v1846_v48 = vmul.f32 %v1845_v13, %v4144_v43  ;;  %v1869_v7 = vmul.f32 %v4191_v37, %v4191_v37  ;;  %v1073_v54 = vadd.f32 %v1041_v40, %v976_v39 }
 0x121   : > { %v1333_v29 = vmul.f32 %v3667_v27, %v4187_v12  ;;  %3274 = vmatmul.msk.f32.gmra.mxu1 %vm279_vm2, %v2866_v34  ;;  %v1814_v59 = vsub.f32 1.0, %v1813_v24  ;;  %vm1818_vm3 = vweird.f32 %v3334_v10  ;;  %v1836_v52 = vadd.f32 0.05243302, %v1835_v47 }
 0x122   : > { %v654_v62 = vmul.f32 %v3964_v17, %v3610_v38  ;;  %v1847_v46 = vadd.f32 0.112945676, %v1846_v48  ;;  %v4213_v33 = vmin.f32 %v1869_v7, 16.0  ;;  %v1170_v63 = vadd.f32 %v1138_v44, %v1073_v54  ;;  %vm1819_vm4 = vmor %vm1817_vm15, %vm1818_vm3 }
 0x123   : > { %v751_v28 = vmul.f32 %v3973_v36, %v3625_v42  ;;  %v1815_v58 = vmul.f32 %v3334_v10, %v1814_v59  ;;  %v1837_v30 = vmul.f32 %v1836_v52, %v4144_v43  ;;  %v848_v50 = vmul.f32 %v3993_v23, %v3632_v49  ;;  %v567_v36 = vpop.f32.mrf.mxu3 }
 0x124   : > { %v686_v53 = vadd.f32 %v4100_v41, %v654_v62  ;;  %v1848_v0 = vmul.f32 %v1847_v46, %v4144_v43  ;;  %v1871_v51 = vmul.f32 2.1237322e-06, %v4213_v33  ;;  %v1882_v17 = vmul.f32 3.8918573e-05, %v4213_v33 }
 0x125   : > { %v1268_v21 = vadd.f32 %v1236_v25, %v1170_v63  ;;  %v1816_v19 = vadd.f32 %v3334_v10, %v1815_v58  ;;  %v1838_v22 = vadd.f32 0.18741608, %v1837_v30  ;;  %v945_v20 = vmul.f32 %v4130_v8, %v3637_v56 }
 0x126   : > { %v783_v32 = vadd.f32 %v751_v28, %v686_v53  ;;  %v1849_v23 = vadd.f32 0.4994258, %v1848_v0  ;;  %v568_v13 = vadd.f32 %v4071_v4, %v567_v36  ;;  %v1872_v39 = vadd.f32 0.00028619796, %v1871_v51  ;;  %v4249_v28 = vld [vmem:[#allocation2 + $0xa8] sm:$0xff] }
 0x127   : > { %v1883_v40 = vadd.f32 0.001143296, %v1882_v17  ;;  %v1820_v44 = vsel %vm1819_vm4, %v3334_v10, %v1816_v19  ;;  %v1365_v34 = vadd.f32 %v1333_v29, %v1268_v21  ;;  %v1430_v24 = vmul.f32 %v4165_v9, %v4224_v61  ;;  %v4268_v21 = vld [vmem:[#allocation2 + $0xa9] sm:$0xff] }
 0x128   : > { %v880_v47 = vadd.f32 %v848_v50, %v783_v32  ;;  %v1825_v25 = vsel %vm4198_vm0, %v1824_v16, %v1820_v44  ;;  %v1850_v48 = vmul.f32 %v1849_v23, %v4144_v43  ;;  %603 = vst.msk [vmem:[#allocation2 + $0x181] sm:$0xff] %vm279_vm2, %v568_v13  ;;  %v1873_v2 = vmul.f32 %v1872_v39, %v4213_v33 }
 0x129   : > { %v1884_v7 = vmul.f32 %v1883_v40, %v4213_v33  ;;  %v1826_v54 = vmul.f32 %v1825_v25, %v1801_v55  ;;  %v1839_v59 = vmul.f32 %v1838_v22, %v4144_v43  ;;  %v4241_v10 = vadd.f32 %v1430_v24, %v1365_v34 }
 0x12a   : > { %v4243_v29 = vadd.f32 1.0, %v1850_v48  ;;  %v1874_v52 = vadd.f32 0.0036580483, %v1873_v2  ;;  %v977_v46 = vadd.f32 %v945_v20, %v880_v47  ;;  %v1491_v16 = vmul.f32 0.5, %v4024_v18  ;;  %v4272_v20 = vld [vmem:[#allocation2 + $0xaa] sm:$0xff] }
 0x12b   : > { %v1885_v62 = vadd.f32 0.014752088, %v1884_v7  ;;  %v3243_v45 = vclamps-f32 %v1826_v54, 1.0  ;;  %v4247_v63 = vmul.f32 0.70710677, %v4241_v10  ;;  %v4252_v58 = vmul.f32 0.5, %v4119_v15  ;;  %v570_v25 = vpop.f32.mrf.mxu3 }
 0x12c   : > { %3335 = vrcp.f32 %v4243_v29  ;;  %v1042_v43 = vmul.f32 %v4146_v14, %v3648_v5  ;;  %v1139_v55 = vmul.f32 %v4148_v35, %v3651_v6  ;;  %v1875_v18 = vmul.f32 %v1874_v52, %v4213_v33 }
 0x12d   : > { %v2835_v30 = vadd.f32 1.0, %v3243_v45  ;;  %v1886_v53 = vmul.f32 %v1885_v62, %v4213_v33  ;;  %v1909_v50 = vmul.f32 %v4247_v63, %v4247_v63  ;;  %v1840_v0 = vadd.f32 1.1283791, %v1839_v59 }
 0x12e   : > { %v4264_v15 = vmul.f32 0.5, %v4183_v31  ;;  %v1074_v51 = vadd.f32 %v1042_v43, %v977_v46  ;;  %v1237_v17 = vmul.f32 %v3654_v11, %v4249_v28  ;;  %v1876_v22 = vadd.f32 0.05243302, %v1875_v18 }
 0x12f   : > { %v2867_v19 = vmul.f32 %v2835_v30, %v1491_v16  ;;  %v1887_v36 = vadd.f32 0.112945676, %v1886_v53  ;;  %v4270_v32 = vmin.f32 %v1909_v50, 16.0  ;;  %v1861_v23 = vand.u32 2147483647, %v4243_v29 }
 0x130   : > { %v1863_v13 = vand.u32 2147483648, %v4243_v29  ;;  %v1171_v39 = vadd.f32 %v1139_v55, %v1074_v51  ;;  %v655_v31 = vmul.f32 %v4063_v1, %v3610_v38  ;;  %v1877_v40 = vmul.f32 %v1876_v22, %v4213_v33 }
 0x131   : > { %3275 = vmatmul.msk.f32.gmra.mxu1 %vm279_vm2, %v2867_v19  ;;  %v1888_v44 = vmul.f32 %v1887_v36, %v4213_v33  ;;  %v1911_v34 = vmul.f32 2.1237322e-06, %v4270_v32  ;;  %v1922_v24 = vmul.f32 3.8918573e-05, %v4270_v32  ;;  %v1334_v2 = vmul.f32 %v3667_v27, %v4268_v21 }
 0x132   : > { %v3336_v47 = vpop.eup %3335  ;;  %v1269_v48 = vadd.f32 %v1237_v17, %v1171_v39  ;;  %v1431_v7 = vmul.f32 %v4165_v9, %v4272_v20  ;;  %v687_v1 = vadd.f32 %v4100_v41, %v655_v31  ;;  %v1878_v59 = vadd.f32 0.18741608, %v1877_v40 }
 0x133   : > { %v1853_v54 = vmul.f32 %v3336_v47, %v4243_v29  ;;  %v1889_v52 = vadd.f32 0.4994258, %v1888_v44  ;;  %v752_v62 = vmul.f32 %v4082_v26, %v3625_v42  ;;  %v571_v46 = vadd.f32 %v4071_v4, %v570_v25 }
 0x134   : > { %v1912_v16 = vadd.f32 0.00028619796, %v1911_v34  ;;  %v1923_v45 = vadd.f32 0.001143296, %v1922_v24  ;;  %v1366_v43 = vadd.f32 %v1334_v2, %v1269_v48  ;;  %v1879_v30 = vmul.f32 %v1878_v59, %v4213_v33 }
 0x135   : > { %v1854_v55 = vsub.f32 1.0, %v1853_v54  ;;  %v1890_v18 = vmul.f32 %v1889_v52, %v4213_v33  ;;  %v784_v53 = vadd.f32 %v752_v62, %v687_v1  ;;  %vm1858_vm5 = vweird.f32 %v3336_v47  ;;  %604 = vst.msk [vmem:[#allocation2 + $0x189] sm:$0xff] %vm279_vm2, %v571_v46  ;;  %v4323_v52 = vld [vmem:[#allocation2 + $0xb1] sm:$0xff] }
 0x136   : > { %v1913_v50 = vmul.f32 %v1912_v16, %v4270_v32  ;;  %v1924_v51 = vmul.f32 %v1923_v45, %v4270_v32  ;;  %v849_v26 = vmul.f32 %v4084_v60, %v3632_v49  ;;  %v4301_v19 = vadd.f32 %v1431_v7, %v1366_v43 }
 0x137   : > { %v1855_v4 = vmul.f32 %v3336_v47, %v1854_v55  ;;  %v4299_v17 = vadd.f32 1.0, %v1890_v18  ;;  %v946_v22 = vmul.f32 %v4185_v3, %v3637_v56  ;;  %v1841_v33 = vmul.f32 %v1840_v0, %v4126_v57 }
 0x138   : > { %v1880_v36 = vadd.f32 1.1283791, %v1879_v30  ;;  %v1914_v39 = vadd.f32 0.0036580483, %v1913_v50  ;;  %v1925_v31 = vadd.f32 0.014752088, %v1924_v51  ;;  %vm1857_vm6 = vweird.f32 %v4243_v29 }
 0x139   : > { %v1856_v40 = vadd.f32 %v3336_v47, %v1855_v4  ;;  %3337 = vrcp.f32 %v4299_v17  ;;  %v881_v44 = vadd.f32 %v849_v26, %v784_v53  ;;  %vm1859_vm7 = vmor %vm1857_vm6, %vm1858_vm5  ;;  %vm1862_vm8 = vcmp.eq.f32.partialorder %v1861_v23, 8.507059e+37  ;;  %v4316_v29 = vld [vmem:[#allocation2 + $0xb0] sm:$0xff] }
 0x13a   : > { %v1864_v60 = vor.u32 1.1754944e-38, %v1863_v13  ;;  %v1915_v34 = vmul.f32 %v1914_v39, %v4270_v32  ;;  %v1926_v24 = vmul.f32 %v1925_v31, %v4270_v32  ;;  %v4312_v57 = vmul.f32 0.70710677, %v4301_v19  ;;  %v4333_v53 = vld [vmem:[#allocation2 + $0xb2] sm:$0xff] }
 0x13b   : > { %v1860_v25 = vsel %vm1859_vm7, %v3336_v47, %v1856_v40  ;;  %v978_v0 = vadd.f32 %v946_v22, %v881_v44  ;;  %v1043_v48 = vmul.f32 %v4187_v12, %v3648_v5  ;;  %v1881_v7 = vmul.f32 %v1880_v36, %v4191_v37 }
 0x13c   : > { %v1865_v2 = vsel %vm1862_vm8, %v1864_v60, %v1860_v25  ;;  %v1916_v1 = vadd.f32 0.05243302, %v1915_v34  ;;  %v1140_v23 = vmul.f32 %v4224_v61, %v3651_v6  ;;  %v1927_v54 = vadd.f32 0.112945676, %v1926_v24 }
 0x13d   : > { %v1866_v13 = vmul.f32 %v1865_v2, %v1841_v33  ;;  %v1949_v47 = vmul.f32 %v4312_v57, %v4312_v57  ;;  %v1075_v59 = vadd.f32 %v1043_v48, %v978_v0  ;;  %v1901_v62 = vand.u32 2147483647, %v4299_v17 }
 0x13e   : > { %v1903_v46 = vand.u32 2147483648, %v4299_v17  ;;  %v1917_v16 = vmul.f32 %v1916_v1, %v4270_v32  ;;  %v1238_v37 = vmul.f32 %v3654_v11, %v4316_v29  ;;  %v1928_v55 = vmul.f32 %v1927_v54, %v4270_v32 }
 0x13f   : > { %v3338_v45 = vpop.eup %3337  ;;  %v3244_v43 = vclamps-f32 %v1866_v13, 1.0  ;;  %v4331_v30 = vmin.f32 %v1949_v47, 16.0  ;;  %v1172_v18 = vadd.f32 %v1140_v23, %v1075_v59  ;;  %v1335_v26 = vmul.f32 %v3667_v27, %v4323_v52 }
 0x140   : > { %v1893_v50 = vmul.f32 %v3338_v45, %v4299_v17  ;;  %v1918_v51 = vadd.f32 0.18741608, %v1917_v16  ;;  %v656_v4 = vmul.f32 %v4130_v8, %v3610_v38  ;;  %v1929_v33 = vadd.f32 0.4994258, %v1928_v55 }
 0x141   : > { %v2836_v22 = vadd.f32 1.0, %v3244_v43  ;;  %v1951_v36 = vmul.f32 2.1237322e-06, %v4331_v30  ;;  %v1270_v39 = vadd.f32 %v1238_v37, %v1172_v18  ;;  %v1962_v44 = vmul.f32 3.8918573e-05, %v4331_v30 }
 0x142   : > { %v1894_v31 = vsub.f32 1.0, %v1893_v50  ;;  %v1919_v40 = vmul.f32 %v1918_v51, %v4270_v32  ;;  %v1432_v60 = vmul.f32 %v4165_v9, %v4333_v53  ;;  %v1930_v24 = vmul.f32 %v1929_v33, %v4270_v32 }
 0x143   : > { %v2868_v34 = vmul.f32 %v2836_v22, %v4252_v58  ;;  %v1952_v25 = vadd.f32 0.00028619796, %v1951_v36  ;;  %v1367_v0 = vadd.f32 %v1335_v26, %v1270_v39  ;;  %vm1898_vm9 = vweird.f32 %v3338_v45 }
 0x144   : > { %v1895_v8 = vmul.f32 %v3338_v45, %v1894_v31  ;;  %v1963_v48 = vadd.f32 0.001143296, %v1962_v44  ;;  %v688_v2 = vadd.f32 %v4100_v41, %v656_v4  ;;  %v1920_v1 = vadd.f32 1.1283791, %v1919_v40 }
 0x145   : > { %3276 = vmatmul.msk.f32.gmra.mxu1 %vm279_vm2, %v2868_v34  ;;  %v4349_v23 = vadd.f32 1.0, %v1930_v24  ;;  %v1953_v13 = vmul.f32 %v1952_v25, %v4331_v30  ;;  %v4352_v54 = vadd.f32 %v1432_v60, %v1367_v0  ;;  %vm1897_vm10 = vweird.f32 %v4299_v17 }
 0x146   : > { %v1896_v47 = vadd.f32 %v3338_v45, %v1895_v8  ;;  %v1904_v58 = vor.u32 1.1754944e-38, %v1903_v46  ;;  %v1964_v32 = vmul.f32 %v1963_v48, %v4331_v30  ;;  %vm1899_vm11 = vmor %vm1897_vm10, %vm1898_vm9  ;;  %v753_v16 = vmul.f32 %v4146_v14, %v3625_v42 }
 0x147   : > { %3339 = vrcp.f32 %v4349_v23  ;;  %v1943_v59 = vand.u32 2147483648, %v4349_v23  ;;  %v850_v37 = vmul.f32 %v4148_v35, %v3632_v49  ;;  %vm1902_vm12 = vcmp.eq.f32.partialorder %v1901_v62, 8.507059e+37  ;;  %v4371_v35 = vld [vmem:[#allocation2 + $0xc0] sm:$0xff] }
 0x148   : > { %v1900_v43 = vsel %vm1899_vm11, %v3338_v45, %v1896_v47  ;;  %v1954_v55 = vadd.f32 0.0036580483, %v1953_v13  ;;  %v1965_v18 = vadd.f32 0.014752088, %v1964_v32  ;;  %v4363_v17 = vmul.f32 %v1920_v1, %v4247_v63 }
 0x149   : > { %v1905_v50 = vsel %vm1902_vm12, %v1904_v58, %v1900_v43  ;;  %v4366_v46 = vmul.f32 0.70710677, %v4352_v54  ;;  %v785_v51 = vadd.f32 %v753_v16, %v688_v2  ;;  %v1941_v4 = vand.u32 2147483647, %v4349_v23  ;;  %v4394_v16 = vld [vmem:[#allocation2 + $0xc2] sm:$0xff] }
 0x14a   : > { %v1906_v26 = vmul.f32 %v1905_v50, %v1881_v7  ;;  %v1955_v14 = vmul.f32 %v1954_v55, %v4331_v30  ;;  %v1966_v22 = vmul.f32 %v1965_v18, %v4331_v30  ;;  %v1944_v62 = vor.u32 1.1754944e-38, %v1943_v59  ;;  %v4392_v59 = vld [vmem:[#allocation2 + $0xc1] sm:$0xff] }
 0x14b   : > { %v1989_v45 = vmul.f32 %v4366_v46, %v4366_v46  ;;  %v882_v33 = vadd.f32 %v850_v37, %v785_v51  ;;  %v947_v63 = vmul.f32 %v4249_v28, %v3637_v56  ;;  %vm1937_vm13 = vweird.f32 %v4349_v23 }
 0x14c   : > { %v3245_v36 = vclamps-f32 %v1906_v26, 1.0  ;;  %v1956_v7 = vadd.f32 0.05243302, %v1955_v14  ;;  %v1967_v39 = vadd.f32 0.112945676, %v1966_v22  ;;  %v1044_v31 = vmul.f32 %v4268_v21, %v3648_v5 }
 0x14d   : > { %v3340_v40 = vpop.eup %3339  ;;  %v4380_v44 = vmin.f32 %v1989_v45, 16.0  ;;  %v979_v60 = vadd.f32 %v947_v63, %v882_v33  ;;  %v1141_v34 = vmul.f32 %v4272_v20, %v3651_v6  ;;  %v1239_v24 = vmul.f32 %v3654_v11, %v4371_v35 }
 0x14e   : > { %v2837_v25 = vadd.f32 1.0, %v3245_v36  ;;  %v1933_v0 = vmul.f32 %v3340_v40, %v4349_v23  ;;  %vm1938_vm14 = vweird.f32 %v3340_v40  ;;  %v1957_v8 = vmul.f32 %v1956_v7, %v4331_v30 }
 0x14f   : > { %v1968_v48 = vmul.f32 %v1967_v39, %v4331_v30  ;;  %v1991_v2 = vmul.f32 2.1237322e-06, %v4380_v44  ;;  %v2002_v1 = vmul.f32 3.8918573e-05, %v4380_v44  ;;  %v1076_v13 = vadd.f32 %v1044_v31, %v979_v60  ;;  %vm1939_vm15 = vmor %vm1937_vm13, %vm1938_vm14 }
 0x150   : > { %v2869_v47 = vmul.f32 %v2837_v25, %v4264_v15  ;;  %v1934_v58 = vsub.f32 1.0, %v1933_v0  ;;  %v1958_v32 = vadd.f32 0.18741608, %v1957_v8  ;;  %v657_v37 = vmul.f32 %v4185_v3, %v3610_v38 }
 0x151   : > { %v1969_v43 = vadd.f32 0.4994258, %v1968_v48  ;;  %v1992_v55 = vadd.f32 0.00028619796, %v1991_v2  ;;  %v2003_v18 = vadd.f32 0.001143296, %v2002_v1  ;;  %v1173_v50 = vadd.f32 %v1141_v34, %v1076_v13 }
 0x152   : > { %3277 = vmatmul.msk.f32.gmra.mxu1 %vm279_vm2, %v2869_v47  ;;  %v1935_v51 = vmul.f32 %v3340_v40, %v1934_v58  ;;  %v1959_v26 = vmul.f32 %v1958_v32, %v4331_v30  ;;  %v689_v15 = vadd.f32 %v4100_v41, %v657_v37  ;;  %v754_v14 = vmul.f32 %v4187_v12, %v3625_v42  ;;  %v4429_v47 = vld [vmem:[#allocation2 + $0xc8] sm:$0xff] }
 0x153   : > { %v1970_v22 = vmul.f32 %v1969_v43, %v4331_v30  ;;  %v1993_v45 = vmul.f32 %v1992_v55, %v4380_v44  ;;  %v2004_v3 = vmul.f32 %v2003_v18, %v4380_v44  ;;  %v1271_v33 = vadd.f32 %v1239_v24, %v1173_v50  ;;  %v4440_v50 = vld [vmem:[#allocation2 + $0xc9] sm:$0xff] }
 0x154   : > { %v1936_v63 = vadd.f32 %v3340_v40, %v1935_v51  ;;  %v1336_v36 = vmul.f32 %v3667_v27, %v4392_v59  ;;  %v1433_v7 = vmul.f32 %v4165_v9, %v4394_v16  ;;  %v786_v39 = vadd.f32 %v754_v14, %v689_v15 }
 0x155   : > { %v4413_v12 = vadd.f32 1.0, %v1970_v22  ;;  %v1994_v30 = vadd.f32 0.0036580483, %v1993_v45  ;;  %v2005_v31 = vadd.f32 0.014752088, %v2004_v3  ;;  %v851_v60 = vmul.f32 %v4224_v61, %v3632_v49  ;;  %v4450_v3 = vld [vmem:[#allocation2 + $0xca] sm:$0xff] }
 0x156   : > { %v1940_v34 = vsel %vm1939_vm15, %v3340_v40, %v1936_v63  ;;  %vm1942_vm0 = vcmp.eq.f32.partialorder %v1941_v4, 8.507059e+37  ;;  %v1960_v24 = vadd.f32 1.1283791, %v1959_v26  ;;  %v948_v25 = vmul.f32 %v4316_v29, %v3637_v56 }
 0x157   : > { %v1945_v0 = vsel %vm1942_vm0, %v1944_v62, %v1940_v34  ;;  %3341 = vrcp.f32 %v4413_v12  ;;  %v1368_v8 = vadd.f32 %v1336_v36, %v1271_v33  ;;  %v883_v48 = vadd.f32 %v851_v60, %v786_v39 }
 0x158   : > { %v1494_v23 = vmul.f32 0.5, %v4241_v10  ;;  %v1946_v2 = vmul.f32 %v1945_v0, %v4363_v17  ;;  %v1995_v1 = vmul.f32 %v1994_v30, %v4380_v44  ;;  %v2006_v13 = vmul.f32 %v2005_v31, %v4380_v44 }
 0x159   : > { %v1981_v61 = vand.u32 2147483647, %v4413_v12  ;;  %v4425_v4 = vadd.f32 %v1433_v7, %v1368_v8  ;;  %v980_v40 = vadd.f32 %v948_v25, %v883_v48  ;;  %v1045_v62 = vmul.f32 %v4323_v52, %v3648_v5 }
 0x15a   : > { %v3246_v58 = vclamps-f32 %v1946_v2, 1.0  ;;  %v4432_v32 = vmul.f32 0.5, %v4301_v19  ;;  %v1996_v10 = vadd.f32 0.05243302, %v1995_v1  ;;  %v2007_v17 = vadd.f32 0.112945676, %v2006_v13 }
 0x15b   : > { %v1961_v37 = vmul.f32 %v1960_v24, %v4312_v57  ;;  %v4436_v43 = vmul.f32 0.70710677, %v4425_v4  ;;  %v1077_v55 = vadd.f32 %v1045_v62, %v980_v40  ;;  %v1142_v18 = vmul.f32 %v4333_v53, %v3651_v6 }
 0x15c   : > { %v2838_v51 = vadd.f32 1.0, %v3246_v58  ;;  %v1997_v26 = vmul.f32 %v1996_v10, %v4380_v44  ;;  %v2008_v15 = vmul.f32 %v2007_v17, %v4380_v44  ;;  %v1240_v19 = vmul.f32 %v3654_v11, %v4429_v47 }
 0x15d   : > { %v3342_v14 = vpop.eup %3341  ;;  %vm1977_vm3 = vweird.f32 %v4413_v12  ;;  %v1983_v57 = vand.u32 2147483648, %v4413_v12  ;;  %v2029_v22 = vmul.f32 %v4436_v43, %v4436_v43  ;;  %v1174_v45 = vadd.f32 %v1142_v18, %v1077_v55 }
 0x15e   : > { %v2870_v33 = vmul.f32 %v2838_v51, %v1494_v23  ;;  %v1973_v63 = vmul.f32 %v3342_v14, %v4413_v12  ;;  %vm4453_vm4 = vcmp.eq.f32.partialorder %v1981_v61, 8.507059e+37  ;;  %v1998_v7 = vadd.f32 0.18741608, %v1997_v26  ;;  %v4495_v12 = vld [vmem:[#allocation2 + $0xd9] sm:$0xff] }
 0x15f   : > { %v1337_v39 = vmul.f32 %v3667_v27, %v4440_v50  ;;  %v2009_v30 = vadd.f32 0.4994258, %v2008_v15  ;;  %v4459_v31 = vmin.f32 %v2029_v22, 16.0  ;;  %v1272_v60 = vadd.f32 %v1240_v19, %v1174_v45  ;;  %v4493_v22 = vld [vmem:[#allocation2 + $0xd8] sm:$0xff] }
 0x160   : > { %v658_v34 = vmul.f32 %v4249_v28, %v3610_v38  ;;  %3278 = vmatmul.msk.f32.gmra.mxu1 %vm279_vm2, %v2870_v33  ;;  %v1974_v24 = vsub.f32 1.0, %v1973_v63  ;;  %vm1978_vm5 = vweird.f32 %v3342_v14  ;;  %v1999_v25 = vmul.f32 %v1998_v7, %v4380_v44 }
 0x161   : > { %v1434_v0 = vmul.f32 %v4165_v9, %v4450_v3  ;;  %v2010_v8 = vmul.f32 %v2009_v30, %v4380_v44  ;;  %v2031_v48 = vmul.f32 2.1237322e-06, %v4459_v31  ;;  %v2042_v23 = vmul.f32 3.8918573e-05, %v4459_v31  ;;  %vm1979_vm6 = vmor %vm1977_vm3, %vm1978_vm5 }
 0x162   : > { %v1369_v2 = vadd.f32 %v1337_v39, %v1272_v60  ;;  %v1975_v1 = vmul.f32 %v3342_v14, %v1974_v24  ;;  %v2000_v13 = vadd.f32 1.1283791, %v1999_v25  ;;  %v690_v28 = vadd.f32 %v4100_v41, %v658_v34  ;;  %v4503_v60 = vld [vmem:[#allocation2 + $0xda] sm:$0xff] }
 0x163   : > { %v755_v61 = vmul.f32 %v4268_v21, %v3625_v42  ;;  %v4473_v40 = vadd.f32 1.0, %v2010_v8  ;;  %v2032_v62 = vadd.f32 0.00028619796, %v2031_v48  ;;  %v2043_v58 = vadd.f32 0.001143296, %v2042_v23 }
 0x164   : > { %v4475_v10 = vadd.f32 %v1434_v0, %v1369_v2  ;;  %v1976_v17 = vadd.f32 %v3342_v14, %v1975_v1  ;;  %v1984_v44 = vor.u32 1.1754944e-38, %v1983_v57  ;;  %v852_v55 = vmul.f32 %v4272_v20, %v3632_v49 }
 0x165   : > { %v949_v18 = vmul.f32 %v4371_v35, %v3637_v56  ;;  %v4485_v21 = vmul.f32 %v2000_v13, %v4366_v46  ;;  %3343 = vrcp.f32 %v4473_v40  ;;  %v2023_v51 = vand.u32 2147483648, %v4473_v40 }
 0x166   : > { %v787_v26 = vadd.f32 %v755_v61, %v690_v28  ;;  %v1980_v15 = vsel %vm1979_vm6, %v3342_v14, %v1976_v17  ;;  %v2033_v19 = vmul.f32 %v2032_v62, %v4459_v31  ;;  %v2044_v20 = vmul.f32 %v2043_v58, %v4459_v31 }
 0x167   : > { %v1046_v57 = vmul.f32 %v4392_v59, %v3648_v5  ;;  %v1985_v46 = vsel %vm4453_vm4, %v1984_v44, %v1980_v15  ;;  %v2021_v45 = vand.u32 2147483647, %v4473_v40  ;;  %v2024_v33 = vor.u32 1.1754944e-38, %v2023_v51 }
 0x168   : > { %v4501_v63 = vmul.f32 0.70710677, %v4475_v10  ;;  %v1986_v14 = vmul.f32 %v1985_v46, %v1961_v37  ;;  %v2034_v7 = vadd.f32 0.0036580483, %v2033_v19  ;;  %v2045_v39 = vadd.f32 0.014752088, %v2044_v20 }
 0x169   : > { %v884_v30 = vadd.f32 %v852_v55, %v787_v26  ;;  %v1143_v24 = vmul.f32 %v4394_v16, %v3651_v6  ;;  %v1241_v36 = vmul.f32 %v3654_v11, %v4493_v22  ;;  %v1338_v25 = vmul.f32 %v3667_v27, %v4495_v12 }
 0x16a   : > { %v2069_v34 = vmul.f32 %v4501_v63, %v4501_v63  ;;  %v3247_v0 = vclamps-f32 %v1986_v14, 1.0  ;;  %vm2017_vm7 = vweird.f32 %v4473_v40  ;;  %v2035_v37 = vmul.f32 %v2034_v7, %v4459_v31 }
 0x16b   : > { %v2046_v8 = vmul.f32 %v2045_v39, %v4459_v31  ;;  %v981_v48 = vadd.f32 %v949_v18, %v884_v30  ;;  %v3344_v23 = vpop.eup %3343  ;;  %v1435_v1 = vmul.f32 %v4165_v9, %v4503_v60  ;;  %v660_v13 = vmul.f32 %v4371_v35, %v3610_v38 }
 0x16c   : > { %v4516_v2 = vmin.f32 %v2069_v34, 16.0  ;;  %v757_v28 = vmul.f32 %v4392_v59, %v3625_v42  ;;  %v2839_v61 = vadd.f32 1.0, %v3247_v0  ;;  %v2013_v62 = vmul.f32 %v3344_v23, %v4473_v40 }
 0x16d   : > { %vm2018_vm8 = vweird.f32 %v3344_v23  ;;  %vm4525_vm9 = vcmp.eq.f32.partialorder %v2021_v45, 8.507059e+37  ;;  %v2036_v17 = vadd.f32 0.05243302, %v2035_v37  ;;  %v2047_v44 = vadd.f32 0.112945676, %v2046_v8 }
 0x16e   : > { %v2071_v55 = vmul.f32 2.1237322e-06, %v4516_v2  ;;  %v2082_v18 = vmul.f32 3.8918573e-05, %v4516_v2  ;;  %v1078_v51 = vadd.f32 %v1046_v57, %v981_v48  ;;  %v2871_v35 = vmul.f32 %v2839_v61, %v4432_v32  ;;  %vm2019_vm10 = vmor %vm2017_vm7, %vm2018_vm8 }
 0x16f   : > { %v2014_v26 = vsub.f32 1.0, %v2013_v62  ;;  %v2037_v59 = vmul.f32 %v2036_v17, %v4459_v31  ;;  %v692_v15 = vadd.f32 %v4100_v41, %v660_v13  ;;  %v2048_v19 = vmul.f32 %v2047_v44, %v4459_v31 }
 0x170   : > { %v2072_v20 = vadd.f32 0.00028619796, %v2071_v55  ;;  %v2083_v46 = vadd.f32 0.001143296, %v2082_v18  ;;  %v1175_v45 = vadd.f32 %v1143_v24, %v1078_v51  ;;  %3279 = vmatmul.msk.f32.gmra.mxu1 %vm279_vm2, %v2871_v35  ;;  %v854_v57 = vmul.f32 %v4394_v16, %v3632_v49 }
 0x171   : > { %v2015_v14 = vmul.f32 %v3344_v23, %v2014_v26  ;;  %v2038_v7 = vadd.f32 0.18741608, %v2037_v59  ;;  %v789_v39 = vadd.f32 %v757_v28, %v692_v15  ;;  %v2049_v30 = vadd.f32 0.4994258, %v2048_v19 }
 0x172   : > { %v2073_v32 = vmul.f32 %v2072_v20, %v4516_v2  ;;  %v2084_v34 = vmul.f32 %v2083_v46, %v4516_v2  ;;  %v1273_v0 = vadd.f32 %v1241_v36, %v1175_v45  ;;  %v951_v24 = vmul.f32 %v4493_v22, %v3637_v56  ;;  %v4574_v46 = vld [vmem:[#allocation2 + $0xf0] sm:$0xff] }
 0x173   : > { %v2016_v41 = vadd.f32 %v3344_v23, %v2015_v14  ;;  %v2039_v37 = vmul.f32 %v2038_v7, %v4459_v31  ;;  %v886_v8 = vadd.f32 %v854_v57, %v789_v39  ;;  %v2050_v48 = vmul.f32 %v2049_v30, %v4459_v31  ;;  %v4582_v30 = vld [vmem:[#allocation2 + $0xf1] sm:$0xff] }
 0x174   : > { %v2074_v16 = vadd.f32 0.0036580483, %v2073_v32  ;;  %v2085_v13 = vadd.f32 0.014752088, %v2084_v34  ;;  %v1370_v28 = vadd.f32 %v1338_v25, %v1273_v0  ;;  %v1048_v36 = vmul.f32 %v4495_v12, %v3648_v5  ;;  %v4584_v32 = vld [vmem:[#allocation2 + $0xf2] sm:$0xff] }
 0x175   : > { %v2020_v61 = vsel %vm2019_vm10, %v3344_v23, %v2016_v41  ;;  %v2040_v62 = vadd.f32 1.1283791, %v2039_v37  ;;  %v983_v17 = vadd.f32 %v951_v24, %v886_v8  ;;  %v4551_v55 = vadd.f32 1.0, %v2050_v48 }
 0x176   : > { %v2025_v44 = vsel %vm4525_vm9, %v2024_v33, %v2020_v61  ;;  %v2075_v18 = vmul.f32 %v2074_v16, %v4516_v2  ;;  %v2086_v40 = vmul.f32 %v2085_v13, %v4516_v2  ;;  %v4556_v51 = vadd.f32 %v1435_v1, %v1370_v28 }
 0x177   : > { %v2026_v31 = vmul.f32 %v2025_v44, %v4485_v21  ;;  %3345 = vrcp.f32 %v4551_v55  ;;  %v1080_v25 = vadd.f32 %v1048_v36, %v983_v17  ;;  %v1496_v23 = vmul.f32 0.5, %v4352_v54 }
 0x178   : > { %v2076_v26 = vadd.f32 0.05243302, %v2075_v18  ;;  %v2087_v59 = vadd.f32 0.112945676, %v2086_v40  ;;  %v4561_v33 = vmul.f32 0.5, %v4425_v4  ;;  %v4564_v58 = vmul.f32 %v2040_v62, %v4436_v43 }
 0x179   : > { %v3248_v35 = vclamps-f32 %v2026_v31, 1.0  ;;  %v4567_v15 = vmul.f32 0.70710677, %v4556_v51  ;;  %v1145_v21 = vmul.f32 %v4503_v60, %v3651_v6  ;;  %v2061_v19 = vand.u32 2147483647, %v4551_v55 }
 0x17a   : > { %v2077_v54 = vmul.f32 %v2076_v26, %v4516_v2  ;;  %v2088_v20 = vmul.f32 %v2087_v59, %v4516_v2  ;;  %v2063_v4 = vand.u32 2147483648, %v4551_v55  ;;  %v1243_v14 = vmul.f32 %v3654_v11, %v4574_v46 }
 0x17b   : > { %v2840_v1 = vadd.f32 1.0, %v3248_v35  ;;  %v2109_v43 = vmul.f32 %v4567_v15, %v4567_v15  ;;  %v1177_v45 = vadd.f32 %v1145_v21, %v1080_v25  ;;  %vm2057_vm11 = vweird.f32 %v4551_v55 }
 0x17c   : > { %v2078_v39 = vadd.f32 0.18741608, %v2077_v54  ;;  %v2089_v57 = vadd.f32 0.4994258, %v2088_v20  ;;  %v659_v34 = vmul.f32 %v4316_v29, %v3610_v38  ;;  %v1340_v8 = vmul.f32 %v3667_v27, %v4582_v30 }
 0x17d   : > { %v2872_v7 = vmul.f32 %v2840_v1, %v1496_v23  ;;  %v3346_v0 = vpop.eup %3345  ;;  %v4588_v41 = vmin.f32 %v2109_v43, 16.0  ;;  %v1275_v37 = vadd.f32 %v1243_v14, %v1177_v45  ;;  %v1437_v24 = vmul.f32 %v4165_v9, %v4584_v32  ;;  %v4605_v9 = vld [vmem:[%s5820_s4] ss:$0 sm:$0xff] }
 0x17e   : > { %v2053_v48 = vmul.f32 %v3346_v0, %v4551_v55  ;;  %v2079_v16 = vmul.f32 %v2078_v39, %v4516_v2  ;;  %v2090_v13 = vmul.f32 %v2089_v57, %v4516_v2  ;;  %v756_v29 = vmul.f32 %v4323_v52, %v3625_v42 }
 0x17f   : > { %3280 = vmatmul.msk.f32.gmra.mxu1 %vm279_vm2, %v2872_v7  ;;  %v2111_v28 = vmul.f32 2.1237322e-06, %v4588_v41  ;;  %v2122_v61 = vmul.f32 3.8918573e-05, %v4588_v41  ;;  %v1372_v62 = vadd.f32 %v1340_v8, %v1275_v37  ;;  %v691_v17 = vadd.f32 %v4605_v9, %v659_v34  ;;  %v4633_v7 = vld [vmem:[#allocation2 + $0xe0] sm:$0xff] }
 0x180   : > { %v2054_v36 = vsub.f32 1.0, %v2053_v48  ;;  %v2080_v44 = vadd.f32 1.1283791, %v2079_v16  ;;  %v4608_v18 = vadd.f32 1.0, %v2090_v13  ;;  %v853_v2 = vmul.f32 %v4333_v53, %v3632_v49 }
 0x181   : > { %v2112_v52 = vadd.f32 0.00028619796, %v2111_v28  ;;  %v2123_v40 = vadd.f32 0.001143296, %v2122_v61  ;;  %v4612_v31 = vadd.f32 %v1437_v24, %v1372_v62  ;;  %v788_v25 = vadd.f32 %v756_v29, %v691_v17  ;;  %v4651_v28 = vld [vmem:[#allocation2 + $0xe1] sm:$0xff] }
 0x182   : > { %v2055_v23 = vmul.f32 %v3346_v0, %v2054_v36  ;;  %vm2058_vm12 = vweird.f32 %v3346_v0  ;;  %3347 = vrcp.f32 %v4608_v18  ;;  %v950_v35 = vmul.f32 %v4429_v47, %v3637_v56 }
 0x183   : > { %vm4617_vm13 = vcmp.eq.f32.partialorder %v2061_v19, 8.507059e+37  ;;  %v2064_v59 = vor.u32 1.1754944e-38, %v2063_v4  ;;  %v2113_v21 = vmul.f32 %v2112_v52, %v4588_v41  ;;  %v2124_v53 = vmul.f32 %v2123_v40, %v4588_v41  ;;  %vm2059_vm14 = vmor %vm2057_vm11, %vm2058_vm12  ;;  %v4660_v40 = vld [vmem:[#allocation2 + $0xe2] sm:$0xff] }
 0x184   : > { %v2056_v1 = vadd.f32 %v3346_v0, %v2055_v23  ;;  %v2101_v54 = vand.u32 2147483647, %v4608_v18  ;;  %v4625_v20 = vmul.f32 0.70710677, %v4612_v31  ;;  %v885_v43 = vadd.f32 %v853_v2, %v788_v25 }
 0x185   : > { %v4630_v19 = vmul.f32 %v2080_v44, %v4501_v63  ;;  %v2103_v45 = vand.u32 2147483648, %v4608_v18  ;;  %v2114_v4 = vadd.f32 0.0036580483, %v2113_v21  ;;  %v2125_v14 = vadd.f32 0.014752088, %v2124_v53 }
 0x186   : > { %v2060_v39 = vsel %vm2059_vm14, %v3346_v0, %v2056_v1  ;;  %v2189_v57 = vmul.f32 %v4625_v20, %v4625_v20  ;;  %v982_v34 = vadd.f32 %v950_v35, %v885_v43  ;;  %v1047_v37 = vmul.f32 %v4440_v50, %v3648_v5 }
 0x187   : > { %v2065_v55 = vsel %vm4617_vm13, %v2064_v59, %v2060_v39  ;;  %vm2097_vm15 = vweird.f32 %v4608_v18  ;;  %v2115_v63 = vmul.f32 %v2114_v4, %v4588_v41  ;;  %v2126_v8 = vmul.f32 %v2125_v14, %v4588_v41  ;;  %v4669_v14 = vld [vmem:[%s5819_s3 + $0x8] ss:$0 sm:$0xff] }
 0x188   : > { %v1144_v24 = vmul.f32 %v4450_v3, %v3651_v6  ;;  %v3348_v0 = vpop.eup %3347  ;;  %v2066_v48 = vmul.f32 %v2065_v55, %v4564_v58  ;;  %v4647_v16 = vmin.f32 %v2189_v57, 16.0  ;;  %v1079_v13 = vadd.f32 %v1047_v37, %v982_v34 }
 0x189   : > { %v1242_v29 = vmul.f32 %v3654_v11, %v4633_v7  ;;  %v2093_v61 = vmul.f32 %v3348_v0, %v4608_v18  ;;  %vm2098_vm0 = vweird.f32 %v3348_v0  ;;  %vm4654_vm3 = vcmp.eq.f32.partialorder %v2101_v54, 8.507059e+37 }
 0x18a   : > { %v2116_v17 = vadd.f32 0.05243302, %v2115_v63  ;;  %v2127_v36 = vadd.f32 0.112945676, %v2126_v8  ;;  %v3249_v44 = vclamps-f32 %v2066_v48, 1.0  ;;  %v1176_v52 = vadd.f32 %v1144_v24, %v1079_v13  ;;  %vm2099_vm4 = vmor %vm2097_vm15, %vm2098_vm0 }
 0x18b   : > { %v2191_v58 = vmul.f32 2.1237322e-06, %v4647_v16  ;;  %v2202_v2 = vmul.f32 3.8918573e-05, %v4647_v16  ;;  %v2094_v25 = vsub.f32 1.0, %v2093_v61  ;;  %v1339_v26 = vmul.f32 %v3667_v27, %v4651_v28 }
 0x18c   : > { %v2117_v23 = vmul.f32 %v2116_v17, %v4588_v41  ;;  %v2128_v35 = vmul.f32 %v2127_v36, %v4588_v41  ;;  %v2841_v59 = vadd.f32 1.0, %v3249_v44  ;;  %v1274_v1 = vadd.f32 %v1242_v29, %v1176_v52 }
 0x18d   : > { %v2192_v21 = vadd.f32 0.00028619796, %v2191_v58  ;;  %v2203_v53 = vadd.f32 0.001143296, %v2202_v2  ;;  %v2095_v54 = vmul.f32 %v3348_v0, %v2094_v25  ;;  %v1436_v39 = vmul.f32 %v4669_v14, %v4660_v40 }
 0x18e   : > { %v2118_v43 = vadd.f32 0.18741608, %v2117_v23  ;;  %v2129_v4 = vadd.f32 0.4994258, %v2128_v35  ;;  %v2873_v57 = vmul.f32 %v2841_v59, %v4561_v33  ;;  %v1371_v55 = vadd.f32 %v1339_v26, %v1274_v1 }
 0x18f   : > { %v2193_v34 = vmul.f32 %v2192_v21, %v4647_v16  ;;  %v2204_v37 = vmul.f32 %v2203_v53, %v4647_v16  ;;  %v2096_v63 = vadd.f32 %v3348_v0, %v2095_v54  ;;  %v661_v48 = vmul.f32 %v4429_v47, %v3610_v38 }
 0x190   : > { %v2119_v8 = vmul.f32 %v2118_v43, %v4588_v41  ;;  %v2130_v24 = vmul.f32 %v2129_v4, %v4588_v41  ;;  %3281 = vmatmul.msk.f32.gmra.mxu1 %vm279_vm2, %v2873_v57  ;;  %v2104_v33 = vor.u32 1.1754944e-38, %v2103_v45  ;;  %v4684_v61 = vadd.f32 %v1436_v39, %v1371_v55 }
 0x191   : > { %v2194_v13 = vadd.f32 0.0036580483, %v2193_v34  ;;  %v2205_v29 = vadd.f32 0.014752088, %v2204_v37  ;;  %v2100_v17 = vsel %vm2099_vm4, %v3348_v0, %v2096_v63  ;;  %v693_v44 = vadd.f32 %v4605_v9, %v661_v48 }
 0x192   : > { %v4686_v36 = vadd.f32 1.0, %v2130_v24  ;;  %v758_v41 = vmul.f32 %v4440_v50, %v3625_v42  ;;  %v2105_v47 = vsel %vm4654_vm3, %v2104_v33, %v2100_v17  ;;  %v2120_v58 = vadd.f32 1.1283791, %v2119_v8  ;;  %v4732_v17 = vld [vmem:[#allocation2 + $0xf8] sm:$0xff] }
 0x193   : > { %v2195_v18 = vmul.f32 %v2194_v13, %v4647_v16  ;;  %v2206_v45 = vmul.f32 %v2205_v29, %v4647_v16  ;;  %v2106_v2 = vmul.f32 %v2105_v47, %v4630_v19  ;;  %v1498_v0 = vmul.f32 0.5, %v4475_v10 }
 0x194   : > { %3349 = vrcp.f32 %v4686_v36  ;;  %v4699_v52 = vmul.f32 0.5, %v4556_v51  ;;  %v790_v23 = vadd.f32 %v758_v41, %v693_v44  ;;  %v4702_v62 = vmul.f32 0.70710677, %v4684_v61 }
 0x195   : > { %v2196_v25 = vadd.f32 0.05243302, %v2195_v18  ;;  %v3250_v50 = vclamps-f32 %v2106_v2, 1.0  ;;  %v2207_v35 = vadd.f32 0.112945676, %v2206_v45  ;;  %v855_v26 = vmul.f32 %v4450_v3, %v3632_v49 }
 0x196   : > { %v2121_v59 = vmul.f32 %v2120_v58, %v4567_v15  ;;  %v2141_v19 = vand.u32 2147483647, %v4686_v36  ;;  %v952_v10 = vmul.f32 %v4633_v7, %v3637_v56  ;;  %v2149_v1 = vmul.f32 %v4702_v62, %v4702_v62 }
 0x197   : > { %v2197_v21 = vmul.f32 %v2196_v25, %v4647_v16  ;;  %v2842_v51 = vadd.f32 1.0, %v3250_v50  ;;  %v2208_v53 = vmul.f32 %v2207_v35, %v4647_v16  ;;  %v887_v54 = vadd.f32 %v855_v26, %v790_v23  ;;  %v4744_v50 = vld [vmem:[#allocation2 + $0xfa] sm:$0xff] }
 0x198   : > { %vm2137_vm5 = vweird.f32 %v4686_v36  ;;  %v2143_v3 = vand.u32 2147483648, %v4686_v36  ;;  %v1049_v15 = vmul.f32 %v4651_v28, %v3648_v5  ;;  %v4718_v34 = vmin.f32 %v2149_v1, 16.0 }
 0x199   : > { %v2198_v43 = vadd.f32 0.18741608, %v2197_v21  ;;  %v2874_v39 = vmul.f32 %v2842_v51, %v1498_v0  ;;  %v2209_v57 = vadd.f32 0.4994258, %v2208_v53  ;;  %v984_v37 = vadd.f32 %v952_v10, %v887_v54  ;;  %v4740_v0 = vld [vmem:[#allocation2 + $0xf9] sm:$0xff] }
 0x19a   : > { %v3350_v4 = vpop.eup %3349  ;;  %vm4721_vm6 = vcmp.eq.f32.partialorder %v2141_v19, 8.507059e+37  ;;  %v1146_v24 = vmul.f32 %v4660_v40, %v3651_v6  ;;  %v2151_v33 = vmul.f32 2.1237322e-06, %v4718_v34  ;;  %v2162_v13 = vmul.f32 3.8918573e-05, %v4718_v34 }
 0x19b   : > { %v2133_v55 = vmul.f32 %v3350_v4, %v4686_v36  ;;  %v2199_v8 = vmul.f32 %v2198_v43, %v4647_v16  ;;  %3282 = vmatmul.msk.f32.gmra.mxu1 %vm279_vm2, %v2874_v39  ;;  %v2210_v48 = vmul.f32 %v2209_v57, %v4647_v16  ;;  %v1081_v29 = vadd.f32 %v1049_v15, %v984_v37 }
 0x19c   : > { %v2144_v41 = vor.u32 1.1754944e-38, %v2143_v3  ;;  %v1244_v47 = vmul.f32 %v3654_v11, %v4732_v17  ;;  %v662_v58 = vmul.f32 %v4493_v22, %v3610_v38  ;;  %v2152_v45 = vadd.f32 0.00028619796, %v2151_v33 }
 0x19d   : > { %v2134_v44 = vsub.f32 1.0, %v2133_v55  ;;  %v4738_v18 = vadd.f32 1.0, %v2210_v48  ;;  %v2163_v2 = vadd.f32 0.001143296, %v2162_v13  ;;  %v1178_v16 = vadd.f32 %v1146_v24, %v1081_v29 }
 0x19e   : > { %vm2138_vm7 = vweird.f32 %v3350_v4  ;;  %v1341_v23 = vmul.f32 %v3667_v27, %v4740_v0  ;;  %v694_v35 = vadd.f32 %v4605_v9, %v662_v58  ;;  %v2200_v26 = vadd.f32 1.1283791, %v2199_v8  ;;  %v4779_v58 = vld [vmem:[#allocation2 + $0x108] sm:$0xff] }
 0x19f   : > { %v2135_v25 = vmul.f32 %v3350_v4, %v2134_v44  ;;  %3351 = vrcp.f32 %v4738_v18  ;;  %v1438_v22 = vmul.f32 %v4669_v14, %v4744_v50  ;;  %v759_v19 = vmul.f32 %v4495_v12, %v3625_v42  ;;  %vm2139_vm8 = vmor %vm2137_vm5, %vm2138_vm7 }
 0x1a0   : > { %v2153_v10 = vmul.f32 %v2152_v45, %v4718_v34  ;;  %v2164_v51 = vmul.f32 %v2163_v2, %v4718_v34  ;;  %v1276_v53 = vadd.f32 %v1244_v47, %v1178_v16  ;;  %v2221_v1 = vand.u32 2147483647, %v4738_v18 }
 0x1a1   : > { %v2136_v21 = vadd.f32 %v3350_v4, %v2135_v25  ;;  %v2223_v54 = vand.u32 2147483648, %v4738_v18  ;;  %v791_v3 = vadd.f32 %v759_v19, %v694_v35  ;;  %v856_v43 = vmul.f32 %v4503_v60, %v3632_v49 }
 0x1a2   : > { %v2154_v39 = vadd.f32 0.0036580483, %v2153_v10  ;;  %v2165_v12 = vadd.f32 0.014752088, %v2164_v51  ;;  %v1373_v57 = vadd.f32 %v1341_v23, %v1276_v53  ;;  %v2201_v55 = vmul.f32 %v2200_v26, %v4625_v20  ;;  %v4786_v23 = vld [vmem:[#allocation2 + $0x109] sm:$0xff] }
 0x1a3   : > { %v2140_v15 = vsel %vm2139_vm8, %v3350_v4, %v2136_v21  ;;  %v888_v8 = vadd.f32 %v856_v43, %v791_v3  ;;  %v953_v36 = vmul.f32 %v4574_v46, %v3637_v56  ;;  %vm2217_vm9 = vweird.f32 %v4738_v18 }
 0x1a4   : > { %v2145_v37 = vsel %vm4721_vm6, %v2144_v41, %v2140_v15  ;;  %v2155_v48 = vmul.f32 %v2154_v39, %v4718_v34  ;;  %v2166_v33 = vmul.f32 %v2165_v12, %v4718_v34  ;;  %v4767_v13 = vadd.f32 %v1438_v22, %v1373_v57  ;;  %v4799_v12 = vld [vmem:[#allocation2 + $0x10a] sm:$0xff] }
 0x1a5   : > { %v2146_v24 = vmul.f32 %v2145_v37, %v2121_v59  ;;  %v3352_v60 = vpop.eup %3351  ;;  %v2224_v4 = vor.u32 1.1754944e-38, %v2223_v54  ;;  %v985_v29 = vadd.f32 %v953_v36, %v888_v8  ;;  %v1050_v63 = vmul.f32 %v4582_v30, %v3648_v5 }
 0x1a6   : > { %v2213_v44 = vmul.f32 %v3352_v60, %v4738_v18  ;;  %vm4773_vm10 = vcmp.eq.f32.partialorder %v2221_v1, 8.507059e+37  ;;  %v2156_v59 = vadd.f32 0.05243302, %v2155_v48  ;;  %v1147_v47 = vmul.f32 %v4584_v32, %v3651_v6 }
 0x1a7   : > { %v3251_v20 = vclamps-f32 %v2146_v24, 1.0  ;;  %v2167_v45 = vadd.f32 0.112945676, %v2166_v33  ;;  %v4782_v2 = vmul.f32 0.70710677, %v4767_v13  ;;  %v1082_v16 = vadd.f32 %v1050_v63, %v985_v29 }
 0x1a8   : > { %v1245_v25 = vmul.f32 %v3654_v11, %v4779_v58  ;;  %v2214_v26 = vsub.f32 1.0, %v2213_v44  ;;  %v2157_v22 = vmul.f32 %v2156_v59, %v4718_v34  ;;  %v1342_v19 = vmul.f32 %v3667_v27, %v4786_v23 }
 0x1a9   : > { %v2843_v35 = vadd.f32 1.0, %v3251_v20  ;;  %v2168_v21 = vmul.f32 %v2167_v45, %v4718_v34  ;;  %v2229_v10 = vmul.f32 %v4782_v2, %v4782_v2  ;;  %v1179_v51 = vadd.f32 %v1147_v47, %v1082_v16 }
 0x1aa   : > { %v663_v53 = vmul.f32 %v4633_v7, %v3610_v38  ;;  %v2215_v54 = vmul.f32 %v3352_v60, %v2214_v26  ;;  %vm2218_vm11 = vweird.f32 %v3352_v60  ;;  %v2158_v3 = vadd.f32 0.18741608, %v2157_v22 }
 0x1ab   : > { %v2875_v1 = vmul.f32 %v2843_v35, %v4699_v52  ;;  %v2169_v43 = vadd.f32 0.4994258, %v2168_v21  ;;  %v4797_v15 = vmin.f32 %v2229_v10, 16.0  ;;  %v1277_v39 = vadd.f32 %v1245_v25, %v1179_v51  ;;  %vm2219_vm12 = vmor %vm2217_vm9, %vm2218_vm11  ;;  %v4837_v21 = vld [vmem:[#allocation2 + $0x110] sm:$0xff] }
 0x1ac   : > { %v695_v57 = vadd.f32 %v4605_v9, %v663_v53  ;;  %v2216_v37 = vadd.f32 %v3352_v60, %v2215_v54  ;;  %v2159_v8 = vmul.f32 %v2158_v3, %v4718_v34  ;;  %v1439_v7 = vmul.f32 %v4669_v14, %v4799_v12 }
 0x1ad   : > { %3283 = vmatmul.msk.f32.gmra.mxu1 %vm279_vm2, %v2875_v1  ;;  %v760_v52 = vmul.f32 %v4651_v28, %v3625_v42  ;;  %v2170_v36 = vmul.f32 %v2169_v43, %v4718_v34  ;;  %v2231_v24 = vmul.f32 2.1237322e-06, %v4797_v15  ;;  %v2242_v48 = vmul.f32 3.8918573e-05, %v4797_v15  ;;  %v4841_v1 = vld [vmem:[#allocation2 + $0x111] sm:$0xff] }
 0x1ae   : > { %v1374_v33 = vadd.f32 %v1342_v19, %v1277_v39  ;;  %v2220_v29 = vsel %vm2219_vm12, %v3352_v60, %v2216_v37  ;;  %v2160_v63 = vadd.f32 1.1283791, %v2159_v8  ;;  %v857_v44 = vmul.f32 %v4660_v40, %v3632_v49 }
 0x1af   : > { %v792_v20 = vadd.f32 %v760_v52, %v695_v57  ;;  %v2225_v59 = vsel %vm4773_vm10, %v2224_v4, %v2220_v29  ;;  %v4817_v28 = vadd.f32 1.0, %v2170_v36  ;;  %v2232_v18 = vadd.f32 0.00028619796, %v2231_v24  ;;  %v4849_v57 = vld [vmem:[#allocation2 + $0x112] sm:$0xff] }
 0x1b0   : > { %v2243_v47 = vadd.f32 0.001143296, %v2242_v48  ;;  %v2226_v45 = vmul.f32 %v2225_v59, %v2201_v55  ;;  %v4819_v34 = vadd.f32 %v1439_v7, %v1374_v33  ;;  %v1501_v25 = vmul.f32 0.5, %v4612_v31 }
 0x1b1   : > { %v889_v16 = vadd.f32 %v857_v44, %v792_v20  ;;  %3353 = vrcp.f32 %v4817_v28  ;;  %v954_v60 = vmul.f32 %v4732_v17, %v3637_v56  ;;  %v1051_v40 = vmul.f32 %v4740_v0, %v3648_v5 }
 0x1b2   : > { %v3253_v41 = vclamps-f32 %v2226_v45, 1.0  ;;  %v4828_v4 = vmul.f32 %v2160_v63, %v4702_v62  ;;  %v2233_v35 = vmul.f32 %v2232_v18, %v4797_v15  ;;  %v2244_v55 = vmul.f32 %v2243_v47, %v4797_v15 }
 0x1b3   : > { %v2181_v26 = vand.u32 2147483647, %v4817_v28  ;;  %v2183_v31 = vand.u32 2147483648, %v4817_v28  ;;  %v4835_v22 = vmul.f32 0.70710677, %v4819_v34  ;;  %v986_v19 = vadd.f32 %v954_v60, %v889_v16 }
 0x1b4   : > { %v2845_v10 = vadd.f32 1.0, %v3253_v41  ;;  %v2234_v51 = vadd.f32 0.0036580483, %v2233_v35  ;;  %v2245_v53 = vadd.f32 0.014752088, %v2244_v55  ;;  %v1148_v62 = vmul.f32 %v4744_v50, %v3651_v6  ;;  %v3012_v41 = vpop.f32.mrf.mxu1 }
 0x1b5   : > { %v2269_v54 = vmul.f32 %v4835_v22, %v4835_v22  ;;  %v1083_v3 = vadd.f32 %v1051_v40, %v986_v19  ;;  %v1246_v43 = vmul.f32 %v3654_v11, %v4837_v21  ;;  %v1343_v39 = vmul.f32 %v3667_v27, %v4841_v1  ;;  %v4878_v40 = vld [vmem:[%s5822_s6] ss:$0 sm:$0xff] }
 0x1b6   : > { %v2877_v37 = vmul.f32 %v2845_v10, %v1501_v25  ;;  %vm2177_vm13 = vweird.f32 %v4817_v28  ;;  %v2235_v8 = vmul.f32 %v2234_v51, %v4797_v15  ;;  %v2246_v7 = vmul.f32 %v2245_v53, %v4797_v15 }
 0x1b7   : > { %v1440_v52 = vmul.f32 %v4669_v14, %v4849_v57  ;;  %v3354_v36 = vpop.eup %3353  ;;  %v4856_v24 = vmin.f32 %v2269_v54, 16.0  ;;  %v1180_v48 = vadd.f32 %v1148_v62, %v1083_v3  ;;  %v664_v33 = vmul.f32 %v4574_v46, %v3610_v38 }
 0x1b8   : > { %v761_v29 = vmul.f32 %v4582_v30, %v3625_v42  ;;  %3285 = vmatmul.msk.f32.vlgmr.msra.gmra.mxu2 %vm279_vm2, %v2877_v37  ;;  %v2173_v63 = vmul.f32 %v3354_v36, %v4817_v28  ;;  %vm2178_vm14 = vweird.f32 %v3354_v36  ;;  %vm4864_vm15 = vcmp.eq.f32.partialorder %v2181_v26, 8.507059e+37 }
 0x1b9   : > { %v2236_v44 = vadd.f32 0.05243302, %v2235_v8  ;;  %v2247_v59 = vadd.f32 0.112945676, %v2246_v7  ;;  %v2271_v18 = vmul.f32 2.1237322e-06, %v4856_v24  ;;  %v1278_v46 = vadd.f32 %v1246_v43, %v1180_v48  ;;  %vm2179_vm0 = vmor %vm2177_vm13, %vm2178_vm14 }
 0x1ba   : > { %v2282_v47 = vmul.f32 3.8918573e-05, %v4856_v24  ;;  %v696_v45 = vadd.f32 %v4605_v9, %v664_v33  ;;  %v2174_v30 = vsub.f32 1.0, %v2173_v63  ;;  %v858_v60 = vmul.f32 %v4584_v32, %v3632_v49 }
 0x1bb   : > { %v2237_v16 = vmul.f32 %v2236_v44, %v4797_v15  ;;  %v2248_v25 = vmul.f32 %v2247_v59, %v4797_v15  ;;  %v2272_v35 = vadd.f32 0.00028619796, %v2271_v18  ;;  %v1375_v26 = vadd.f32 %v1343_v39, %v1278_v46 }
 0x1bc   : > { %v2283_v55 = vadd.f32 0.001143296, %v2282_v47  ;;  %v793_v19 = vadd.f32 %v761_v29, %v696_v45  ;;  %v2175_v10 = vmul.f32 %v3354_v36, %v2174_v30  ;;  %v955_v32 = vmul.f32 %v4779_v58, %v3637_v56 }
 0x1bd   : > { %v2238_v51 = vadd.f32 0.18741608, %v2237_v16  ;;  %v2249_v53 = vadd.f32 0.4994258, %v2248_v25  ;;  %v3013_v62 = vadd.f32 %v4878_v40, %v3012_v41  ;;  %v2273_v54 = vmul.f32 %v2272_v35, %v4856_v24  ;;  %v4923_v25 = vld [vmem:[#allocation2 + $0x120] sm:$0xff] }
 0x1be   : > { %v2284_v3 = vmul.f32 %v2283_v55, %v4856_v24  ;;  %v4892_v43 = vadd.f32 %v1440_v52, %v1375_v26  ;;  %v2176_v39 = vadd.f32 %v3354_v36, %v2175_v10  ;;  %v890_v7 = vadd.f32 %v858_v60, %v793_v19 }
 0x1bf   : > { %v2239_v37 = vmul.f32 %v2238_v51, %v4797_v15  ;;  %v2250_v8 = vmul.f32 %v2249_v53, %v4797_v15  ;;  %v2184_v48 = vor.u32 1.1754944e-38, %v2183_v31  ;;  %3108 = vst.msk [vmem:[%s4885_s15] sm:$0xff] %vm359_vm1, %v3013_v62  ;;  %v2274_v33 = vadd.f32 0.0036580483, %v2273_v54  ;;  %v3015_v54 = vpop.f32.mrf.mxu1 }
 0x1c0   : > { %v2285_v29 = vadd.f32 0.014752088, %v2284_v3  ;;  %v1052_v63 = vmul.f32 %v4786_v23, %v3648_v5  ;;  %v2180_v52 = vsel %vm2179_vm0, %v3354_v36, %v2176_v39  ;;  %v4906_v18 = vmul.f32 0.70710677, %v4892_v43 }
 0x1c1   : > { %v2240_v44 = vadd.f32 1.1283791, %v2239_v37  ;;  %v4903_v59 = vadd.f32 1.0, %v2250_v8  ;;  %v2185_v15 = vsel %vm4864_vm15, %v2184_v48, %v2180_v52  ;;  %v2275_v28 = vmul.f32 %v2274_v33, %v4856_v24 }
 0x1c2   : > { %v2286_v31 = vmul.f32 %v2285_v29, %v4856_v24  ;;  %v987_v47 = vadd.f32 %v955_v32, %v890_v7  ;;  %v1500_v46 = vmul.f32 0.5, %v4684_v61  ;;  %v2186_v45 = vmul.f32 %v2185_v15, %v4828_v4  ;;  %v4927_v4 = vld [vmem:[#allocation2 + $0x121] sm:$0xff] }
 0x1c3   : > { %3355 = vrcp.f32 %v4903_v59  ;;  %v4916_v36 = vmul.f32 0.5, %v4767_v13  ;;  %v4919_v30 = vmul.f32 0.5, %v4819_v34  ;;  %v2276_v16 = vadd.f32 0.05243302, %v2275_v28  ;;  %v4937_v32 = vld [vmem:[#allocation2 + $0x122] sm:$0xff] }
 0x1c4   : > { %v2309_v20 = vmul.f32 %v4906_v18, %v4906_v18  ;;  %v3252_v60 = vclamps-f32 %v2186_v45, 1.0  ;;  %v2287_v41 = vadd.f32 0.112945676, %v2286_v31  ;;  %v1084_v35 = vadd.f32 %v1052_v63, %v987_v47 }
 0x1c5   : > { %v1149_v61 = vmul.f32 %v4799_v12, %v3651_v6  ;;  %v2241_v13 = vmul.f32 %v2240_v44, %v4782_v2  ;;  %v2261_v55 = vand.u32 2147483647, %v4903_v59  ;;  %v2277_v34 = vmul.f32 %v2276_v16, %v4856_v24 }
 0x1c6   : > { %v4932_v26 = vmin.f32 %v2309_v20, 16.0  ;;  %v2844_v19 = vadd.f32 1.0, %v3252_v60  ;;  %v2288_v10 = vmul.f32 %v2287_v41, %v4856_v24  ;;  %v1247_v53 = vmul.f32 %v3654_v11, %v4923_v25 }
 0x1c7   : > { %v1181_v51 = vadd.f32 %v1149_v61, %v1084_v35  ;;  %v2278_v62 = vadd.f32 0.18741608, %v2277_v34  ;;  %v1344_v39 = vmul.f32 %v3667_v27, %v4927_v4  ;;  %v3016_v48 = vadd.f32 %v4878_v40, %v3015_v54 }
 0x1c8   : > { %v2311_v2 = vmul.f32 2.1237322e-06, %v4932_v26  ;;  %v2322_v3 = vmul.f32 3.8918573e-05, %v4932_v26  ;;  %v2876_v8 = vmul.f32 %v2844_v19, %v1500_v46  ;;  %v2289_v7 = vadd.f32 0.4994258, %v2288_v10 }
 0x1c9   : > { %v3356_v37 = vpop.eup %3355  ;;  %v1279_v33 = vadd.f32 %v1247_v53, %v1181_v51  ;;  %v2263_v63 = vand.u32 2147483648, %v4903_v59  ;;  %v2279_v52 = vmul.f32 %v2278_v62, %v4856_v24  ;;  %3109 = vst.msk [vmem:[%s4885_s15 + $0x8] sm:$0xff] %vm359_vm1, %v3016_v48  ;;  %v1441_v47 = vmul.f32 %v4669_v14, %v4937_v32 }
 0x1ca   : > { %v2253_v29 = vmul.f32 %v3356_v37, %v4903_v59  ;;  %v2312_v44 = vadd.f32 0.00028619796, %v2311_v2  ;;  %3284 = vmatmul.msk.f32.gmra.mxu1 %vm279_vm2, %v2876_v8  ;;  %v2290_v15 = vmul.f32 %v2289_v7, %v4856_v24  ;;  %v2323_v28 = vadd.f32 0.001143296, %v2322_v3 }
 0x1cb   : > { %v1376_v31 = vadd.f32 %v1344_v39, %v1279_v33  ;;  %v2280_v45 = vadd.f32 1.1283791, %v2279_v52  ;;  %v665_v20 = vmul.f32 %v4732_v17, %v3610_v38  ;;  %v762_v24 = vmul.f32 %v4740_v0, %v3625_v42 }
 0x1cc   : > { %v2254_v46 = vsub.f32 1.0, %v2253_v29  ;;  %v2313_v16 = vmul.f32 %v2312_v44, %v4932_v26  ;;  %v4956_v60 = vadd.f32 1.0, %v2290_v15  ;;  %v2324_v41 = vmul.f32 %v2323_v28, %v4932_v26 }
 0x1cd   : > { %v4959_v35 = vadd.f32 %v1441_v47, %v1376_v31  ;;  %vm2258_vm3 = vweird.f32 %v3356_v37  ;;  %v697_v19 = vadd.f32 %v4605_v9, %v665_v20  ;;  %vm2257_vm4 = vweird.f32 %v4903_v59  ;;  %v4994_v47 = vld [vmem:[#allocation2 + $0x128] sm:$0xff] }
 0x1ce   : > { %v2255_v61 = vmul.f32 %v3356_v37, %v2254_v46  ;;  %v2314_v34 = vadd.f32 0.0036580483, %v2313_v16  ;;  %vm4965_vm5 = vcmp.eq.f32.partialorder %v2261_v55, 8.507059e+37  ;;  %v2264_v17 = vor.u32 1.1754944e-38, %v2263_v63  ;;  %vm2259_vm6 = vmor %vm2257_vm4, %vm2258_vm3  ;;  %v4996_v46 = vld [vmem:[#allocation2 + $0x129] sm:$0xff] }
 0x1cf   : > { %3357 = vrcp.f32 %v4956_v60  ;;  %v2325_v62 = vadd.f32 0.014752088, %v2324_v41  ;;  %v4972_v0 = vmul.f32 0.70710677, %v4959_v35  ;;  %v4975_v54 = vmul.f32 %v2280_v45, %v4835_v22 }
 0x1d0   : > { %v2256_v51 = vadd.f32 %v3356_v37, %v2255_v61  ;;  %v2315_v53 = vmul.f32 %v2314_v34, %v4932_v26  ;;  %v2303_v59 = vand.u32 2147483648, %v4956_v60  ;;  %v794_v55 = vadd.f32 %v762_v24, %v697_v19 }
 0x1d1   : > { %v859_v2 = vmul.f32 %v4744_v50, %v3632_v49  ;;  %v2326_v8 = vmul.f32 %v2325_v62, %v4932_v26  ;;  %v2349_v7 = vmul.f32 %v4972_v0, %v4972_v0  ;;  %v956_v22 = vmul.f32 %v4837_v21, %v3637_v56  ;;  %v5008_v62 = vld [vmem:[#allocation2 + $0x12a] sm:$0xff] }
 0x1d2   : > { %v2260_v3 = vsel %vm2259_vm6, %v3356_v37, %v2256_v51  ;;  %v2316_v39 = vadd.f32 0.05243302, %v2315_v53  ;;  %v1053_v29 = vmul.f32 %v4841_v1, %v3648_v5  ;;  %vm2297_vm7 = vweird.f32 %v4956_v60 }
 0x1d3   : > { %v2265_v48 = vsel %vm4965_vm5, %v2264_v17, %v2260_v3  ;;  %v891_v33 = vadd.f32 %v859_v2, %v794_v55  ;;  %v2327_v37 = vadd.f32 0.112945676, %v2326_v8  ;;  %v4990_v52 = vmin.f32 %v2349_v7, 16.0  ;;  %v3018_v17 = vpop.f32.mrf.mxu1 }
 0x1d4   : > { %v2266_v63 = vmul.f32 %v2265_v48, %v2241_v13  ;;  %v2317_v50 = vmul.f32 %v2316_v39, %v4932_v26  ;;  %v2301_v15 = vand.u32 2147483647, %v4956_v60  ;;  %v2304_v28 = vor.u32 1.1754944e-38, %v2303_v59 }
 0x1d5   : > { %v3358_v44 = vpop.eup %3357  ;;  %v988_v31 = vadd.f32 %v956_v22, %v891_v33  ;;  %v1150_v20 = vmul.f32 %v4849_v57, %v3651_v6  ;;  %v2328_v41 = vmul.f32 %v2327_v37, %v4932_v26  ;;  %v2351_v24 = vmul.f32 2.1237322e-06, %v4990_v52 }
 0x1d6   : > { %v3254_v45 = vclamps-f32 %v2266_v63, 1.0  ;;  %v2293_v16 = vmul.f32 %v3358_v44, %v4956_v60  ;;  %v2318_v13 = vadd.f32 0.18741608, %v2317_v50  ;;  %v2362_v61 = vmul.f32 3.8918573e-05, %v4990_v52 }
 0x1d7   : > { %v1085_v34 = vadd.f32 %v1053_v29, %v988_v31  ;;  %v1248_v51 = vmul.f32 %v3654_v11, %v4994_v47  ;;  %v1345_v53 = vmul.f32 %v3667_v27, %v4996_v46  ;;  %v2329_v59 = vadd.f32 0.4994258, %v2328_v41 }
 0x1d8   : > { %v2846_v19 = vadd.f32 1.0, %v3254_v45  ;;  %v2294_v10 = vsub.f32 1.0, %v2293_v16  ;;  %v3019_v55 = vadd.f32 %v4878_v40, %v3018_v17  ;;  %v2352_v2 = vadd.f32 0.00028619796, %v2351_v24 }
 0x1d9   : > { %v2363_v3 = vadd.f32 0.001143296, %v2362_v61  ;;  %vm2298_vm8 = vweird.f32 %v3358_v44  ;;  %v1182_v7 = vadd.f32 %v1150_v20, %v1085_v34  ;;  %v2319_v48 = vmul.f32 %v2318_v13, %v4932_v26 }
 0x1da   : > { %v2878_v39 = vmul.f32 %v2846_v19, %v4916_v36  ;;  %v2295_v8 = vmul.f32 %v3358_v44, %v2294_v10  ;;  %v2330_v33 = vmul.f32 %v2329_v59, %v4932_v26  ;;  %3110 = vst.msk [vmem:[%s4885_s15 + $0x10] sm:$0xff] %vm359_vm1, %v3019_v55  ;;  %v2353_v22 = vmul.f32 %v2352_v2, %v4990_v52  ;;  %vm2299_vm9 = vmor %vm2297_vm7, %vm2298_vm8  ;;  %v5051_v2 = vld [vmem:[#allocation2 + $0x139] sm:$0xff] }
 0x1db   : > { %v2364_v29 = vmul.f32 %v2363_v3, %v4990_v52  ;;  %v1280_v50 = vadd.f32 %v1248_v51, %v1182_v7  ;;  %v1442_v36 = vmul.f32 %v4669_v14, %v5008_v62  ;;  %v666_v37 = vmul.f32 %v4779_v58, %v3610_v38 }
 0x1dc   : > { %3286 = vmatmul.msk.f32.gmra.mxu2 %vm279_vm2, %v2878_v39  ;;  %v2296_v63 = vadd.f32 %v3358_v44, %v2295_v8  ;;  %v5025_v26 = vadd.f32 1.0, %v2330_v33  ;;  %v2354_v31 = vadd.f32 0.0036580483, %v2353_v22  ;;  %v763_v16 = vmul.f32 %v4786_v23, %v3625_v42 }
 0x1dd   : > { %v2365_v45 = vadd.f32 0.014752088, %v2364_v29  ;;  %vm2302_vm10 = vcmp.eq.f32.partialorder %v2301_v15, 8.507059e+37  ;;  %v1377_v20 = vadd.f32 %v1345_v53, %v1280_v50  ;;  %v698_v41 = vadd.f32 %v4605_v9, %v666_v37  ;;  %v5044_v53 = vld [vmem:[#allocation2 + $0x138] sm:$0xff] }
 0x1de   : > { %v2300_v13 = vsel %vm2299_vm9, %v3358_v44, %v2296_v63  ;;  %v2320_v61 = vadd.f32 1.1283791, %v2319_v48  ;;  %3359 = vrcp.f32 %v5025_v26  ;;  %v860_v58 = vmul.f32 %v4799_v12, %v3632_v49 }
 0x1df   : > { %v2305_v24 = vsel %vm2302_vm10, %v2304_v28, %v2300_v13  ;;  %v5035_v34 = vmul.f32 0.5, %v4892_v43  ;;  %v2355_v19 = vmul.f32 %v2354_v31, %v4990_v52  ;;  %v2366_v23 = vmul.f32 %v2365_v45, %v4990_v52  ;;  %v3021_v31 = vpop.f32.mrf.mxu1 }
 0x1e0   : > { %v2306_v60 = vmul.f32 %v2305_v24, %v4975_v54  ;;  %v2341_v44 = vand.u32 2147483647, %v5025_v26  ;;  %v5040_v15 = vadd.f32 %v1442_v36, %v1377_v20  ;;  %v795_v28 = vadd.f32 %v763_v16, %v698_v41 }
 0x1e1   : > { %v957_v10 = vmul.f32 %v4923_v25, %v3637_v56  ;;  %v2356_v51 = vadd.f32 0.05243302, %v2355_v19  ;;  %v2367_v12 = vadd.f32 0.112945676, %v2366_v23  ;;  %v2321_v43 = vmul.f32 %v2320_v61, %v4906_v18  ;;  %v5084_v23 = vld [vmem:[#allocation2 + $0x13a] sm:$0xff] }
 0x1e2   : > { %v3255_v17 = vclamps-f32 %v2306_v60, 1.0  ;;  %v2343_v54 = vand.u32 2147483648, %v5025_v26  ;;  %v5049_v59 = vmul.f32 0.70710677, %v5040_v15  ;;  %v892_v55 = vadd.f32 %v860_v58, %v795_v28 }
 0x1e3   : > { %vm2337_vm11 = vweird.f32 %v5025_v26  ;;  %v2357_v39 = vmul.f32 %v2356_v51, %v4990_v52  ;;  %v2368_v8 = vmul.f32 %v2367_v12, %v4990_v52  ;;  %v1054_v7 = vmul.f32 %v4927_v4, %v3648_v5 }
 0x1e4   : > { %v2847_v3 = vadd.f32 1.0, %v3255_v17  ;;  %v3360_v48 = vpop.eup %3359  ;;  %v2389_v18 = vmul.f32 %v5049_v59, %v5049_v59  ;;  %v989_v33 = vadd.f32 %v957_v10, %v892_v55  ;;  %v1151_v22 = vmul.f32 %v4937_v32, %v3651_v6 }
 0x1e5   : > { %v1249_v29 = vmul.f32 %v3654_v11, %v5044_v53  ;;  %v2333_v50 = vmul.f32 %v3360_v48, %v5025_v26  ;;  %vm5066_vm12 = vcmp.eq.f32.partialorder %v2341_v44, 8.507059e+37  ;;  %v2358_v37 = vadd.f32 0.18741608, %v2357_v39 }
 0x1e6   : > { %v2879_v63 = vmul.f32 %v2847_v3, %v4919_v30  ;;  %v1346_v45 = vmul.f32 %v3667_v27, %v5051_v2  ;;  %vm2338_vm13 = vweird.f32 %v3360_v48  ;;  %v2369_v16 = vadd.f32 0.4994258, %v2368_v8 }
 0x1e7   : > { %v3022_v13 = vadd.f32 %v4878_v40, %v3021_v31  ;;  %v5073_v20 = vmin.f32 %v2389_v18, 16.0  ;;  %v2334_v30 = vsub.f32 1.0, %v2333_v50  ;;  %v2359_v41 = vmul.f32 %v2358_v37, %v4990_v52  ;;  %vm2339_vm14 = vmor %vm2337_vm11, %vm2338_vm13 }
 0x1e8   : > { %3287 = vmatmul.msk.f32.gmra.mxu2 %vm279_vm2, %v2879_v63  ;;  %v1086_v24 = vadd.f32 %v1054_v7, %v989_v33  ;;  %v667_v61 = vmul.f32 %v4837_v21, %v3610_v38  ;;  %v2370_v58 = vmul.f32 %v2369_v16, %v4990_v52  ;;  %v764_v44 = vmul.f32 %v4841_v1, %v3625_v42 }
 0x1e9   : > { %3111 = vst.msk [vmem:[%s4885_s15 + $0x18] sm:$0xff] %vm359_vm1, %v3022_v13  ;;  %v2391_v60 = vmul.f32 2.1237322e-06, %v5073_v20  ;;  %v2402_v19 = vmul.f32 3.8918573e-05, %v5073_v20  ;;  %v2335_v28 = vmul.f32 %v3360_v48, %v2334_v30  ;;  %v861_v55 = vmul.f32 %v4849_v57, %v3632_v49  ;;  %v5113_v13 = vld [vmem:[#allocation2 + $0x141] sm:$0xff] }
 0x1ea   : > { %v2360_v10 = vadd.f32 1.1283791, %v2359_v41  ;;  %v1183_v17 = vadd.f32 %v1151_v22, %v1086_v24  ;;  %v699_v51 = vadd.f32 %v4605_v9, %v667_v61  ;;  %v5089_v12 = vadd.f32 1.0, %v2370_v58 }
 0x1eb   : > { %v2392_v21 = vadd.f32 0.00028619796, %v2391_v60  ;;  %v2403_v52 = vadd.f32 0.001143296, %v2402_v19  ;;  %v2336_v3 = vadd.f32 %v3360_v48, %v2335_v28  ;;  %v1443_v8 = vmul.f32 %v4669_v14, %v5084_v23 }
 0x1ec   : > { %v1281_v39 = vadd.f32 %v1249_v29, %v1183_v17  ;;  %v796_v7 = vadd.f32 %v764_v44, %v699_v51  ;;  %v2344_v1 = vor.u32 1.1754944e-38, %v2343_v54  ;;  %3361 = vrcp.f32 %v5089_v12 }
 0x1ed   : > { %v2381_v9 = vand.u32 2147483647, %v5089_v12  ;;  %v2383_v18 = vand.u32 2147483648, %v5089_v12  ;;  %v2340_v33 = vsel %vm2339_vm14, %v3360_v48, %v2336_v3  ;;  %v2393_v57 = vmul.f32 %v2392_v21, %v5073_v20  ;;  %v5111_v48 = vld [vmem:[#allocation2 + $0x140] sm:$0xff] }
 0x1ee   : > { %v2404_v22 = vmul.f32 %v2403_v52, %v5073_v20  ;;  %v1378_v29 = vadd.f32 %v1346_v45, %v1281_v39  ;;  %v2345_v63 = vsel %vm5066_vm12, %v2344_v1, %v2340_v33  ;;  %v5106_v50 = vmul.f32 %v2360_v10, %v4972_v0  ;;  %v5139_v39 = vld [vmem:[#allocation2 + $0x142] sm:$0xff] }
 0x1ef   : > { %vm2377_vm15 = vweird.f32 %v5089_v12  ;;  %v893_v26 = vadd.f32 %v861_v55, %v796_v7  ;;  %v2346_v54 = vmul.f32 %v2345_v63, %v2321_v43  ;;  %v2394_v37 = vadd.f32 0.0036580483, %v2393_v57 }
 0x1f0   : > { %v2405_v31 = vadd.f32 0.014752088, %v2404_v22  ;;  %v5109_v16 = vadd.f32 %v1443_v8, %v1378_v29  ;;  %v2384_v30 = vor.u32 1.1754944e-38, %v2383_v18  ;;  %v958_v36 = vmul.f32 %v4994_v47, %v3637_v56  ;;  %v5144_v8 = vld [vmem:[%s5820_s4] ss:$0 sm:$0xff] }
 0x1f1   : > { %v1055_v0 = vmul.f32 %v4996_v46, %v3648_v5  ;;  %v1152_v45 = vmul.f32 %v5008_v62, %v3651_v6  ;;  %v3256_v41 = vclamps-f32 %v2346_v54, 1.0  ;;  %vm5121_vm0 = vcmp.eq.f32.partialorder %v2381_v9, 8.507059e+37 }
 0x1f2   : > { %v2395_v24 = vmul.f32 %v2394_v37, %v5073_v20  ;;  %v2406_v61 = vmul.f32 %v2405_v31, %v5073_v20  ;;  %v5128_v58 = vmul.f32 0.70710677, %v5109_v16  ;;  %v3362_v60 = vpop.eup %3361  ;;  %v990_v19 = vadd.f32 %v958_v36, %v893_v26 }
 0x1f3   : > { %v1250_v44 = vmul.f32 %v3654_v11, %v5111_v48  ;;  %v1347_v28 = vmul.f32 %v3667_v27, %v5113_v13  ;;  %v668_v10 = vmul.f32 %v4923_v25, %v3610_v38  ;;  %v2848_v17 = vadd.f32 1.0, %v3256_v41 }
 0x1f4   : > { %v2373_v51 = vmul.f32 %v3362_v60, %v5089_v12  ;;  %vm2378_vm3 = vweird.f32 %v3362_v60  ;;  %v2396_v21 = vadd.f32 0.05243302, %v2395_v24  ;;  %v2407_v52 = vadd.f32 0.112945676, %v2406_v61 }
 0x1f5   : > { %v2429_v55 = vmul.f32 %v5128_v58, %v5128_v58  ;;  %v1087_v3 = vadd.f32 %v1055_v0, %v990_v19  ;;  %v700_v7 = vadd.f32 %v5144_v8, %v668_v10  ;;  %v2880_v25 = vmul.f32 %v2848_v17, %v5035_v34  ;;  %v3024_v34 = vpop.f32.mrf.mxu1  ;;  %vm5162_vm4 = vmor %vm2377_vm15, %vm2378_vm3 }
 0x1f6   : > { %v2374_v1 = vsub.f32 1.0, %v2373_v51  ;;  %v2397_v9 = vmul.f32 %v2396_v21, %v5073_v20  ;;  %v765_v18 = vmul.f32 %v4927_v4, %v3625_v42  ;;  %v2408_v33 = vmul.f32 %v2407_v52, %v5073_v20 }
 0x1f7   : > { %v5152_v57 = vmin.f32 %v2429_v55, 16.0  ;;  %v1184_v22 = vadd.f32 %v1152_v45, %v1087_v3  ;;  %v862_v29 = vmul.f32 %v4937_v32, %v3632_v49  ;;  %3288 = vmatmul.msk.f32.gmra.mxu2 %vm279_vm2, %v2880_v25  ;;  %v1444_v54 = vmul.f32 %v4669_v14, %v5139_v39 }
 0x1f8   : > { %v2375_v63 = vmul.f32 %v3362_v60, %v2374_v1  ;;  %v2398_v26 = vadd.f32 0.18741608, %v2397_v9  ;;  %v797_v37 = vadd.f32 %v765_v18, %v700_v7  ;;  %v2409_v31 = vadd.f32 0.4994258, %v2408_v33  ;;  %v5187_v9 = vld [vmem:[#allocation2 + $0x150] sm:$0xff] }
 0x1f9   : > { %v3025_v32 = vadd.f32 %v4878_v40, %v3024_v34  ;;  %v2431_v36 = vmul.f32 2.1237322e-06, %v5152_v57  ;;  %v2442_v0 = vmul.f32 3.8918573e-05, %v5152_v57  ;;  %v1282_v24 = vadd.f32 %v1250_v44, %v1184_v22  ;;  %v5189_v22 = vld [vmem:[#allocation2 + $0x151] sm:$0xff] }
 0x1fa   : > { %v2376_v45 = vadd.f32 %v3362_v60, %v2375_v63  ;;  %v2399_v41 = vmul.f32 %v2398_v26, %v5073_v20  ;;  %v894_v14 = vadd.f32 %v862_v29, %v797_v37  ;;  %v2410_v61 = vmul.f32 %v2409_v31, %v5073_v20  ;;  %v5199_v63 = vld [vmem:[#allocation2 + $0x152] sm:$0xff] }
 0x1fb   : > { %3112 = vst.msk [vmem:[%s4885_s15 + $0x20] sm:$0xff] %vm359_vm1, %v3025_v32  ;;  %v2432_v12 = vadd.f32 0.00028619796, %v2431_v36  ;;  %v2443_v19 = vadd.f32 0.001143296, %v2442_v0  ;;  %v959_v10 = vmul.f32 %v5044_v53, %v3637_v56  ;;  %v1379_v21 = vadd.f32 %v1347_v28, %v1282_v24 }
 0x1fc   : > { %v2380_v17 = vsel %vm5162_vm4, %v3362_v60, %v2376_v45  ;;  %v2400_v51 = vadd.f32 1.1283791, %v2399_v41  ;;  %v1056_v52 = vmul.f32 %v5051_v2, %v3648_v5  ;;  %v2411_v55 = vadd.f32 1.0, %v2410_v61  ;;  %v5216_v24 = vld [vmem:[%s5819_s3 + $0x8] ss:$0 sm:$0xff] }
 0x1fd   : > { %v2385_v44 = vsel %vm5121_vm0, %v2384_v30, %v2380_v17  ;;  %v2433_v20 = vmul.f32 %v2432_v12, %v5152_v57  ;;  %v2444_v3 = vmul.f32 %v2443_v19, %v5152_v57  ;;  %v5184_v25 = vadd.f32 %v1444_v54, %v1379_v21 }
 0x1fe   : > { %v2386_v7 = vmul.f32 %v2385_v44, %v5106_v50  ;;  %v991_v1 = vadd.f32 %v959_v10, %v894_v14  ;;  %v1505_v60 = vmul.f32 0.5, %v4959_v35  ;;  %3363 = vrcp.f32 %v2411_v55 }
 0x1ff   : > { %v2421_v28 = vand.u32 2147483647, %v2411_v55  ;;  %v2434_v33 = vadd.f32 0.0036580483, %v2433_v20  ;;  %v2445_v43 = vadd.f32 0.014752088, %v2444_v3  ;;  %v5192_v29 = vmul.f32 %v2400_v51, %v5049_v59  ;;  %v3027_v20 = vpop.f32.mrf.mxu1 }
 0x200   : > { %v3257_v18 = vclamps-f32 %v2386_v7, 1.0  ;;  %v1088_v30 = vadd.f32 %v1056_v52, %v991_v1  ;;  %vm2417_vm5 = vweird.f32 %v2411_v55  ;;  %v5195_v50 = vmul.f32 0.70710677, %v5184_v25 }
 0x201   : > { %v1153_v35 = vmul.f32 %v5084_v23, %v3651_v6  ;;  %v2435_v34 = vmul.f32 %v2434_v33, %v5152_v57  ;;  %v2446_v54 = vmul.f32 %v2445_v43, %v5152_v57  ;;  %v1251_v37 = vmul.f32 %v3654_v11, %v5187_v9 }
 0x202   : > { %v2849_v26 = vadd.f32 1.0, %v3257_v18  ;;  %v2423_v4 = vand.u32 2147483648, %v2411_v55  ;;  %v2469_v59 = vmul.f32 %v5195_v50, %v5195_v50  ;;  %v1348_v32 = vmul.f32 %v3667_v27, %v5189_v22 }
 0x203   : > { %v1185_v31 = vadd.f32 %v1153_v35, %v1088_v30  ;;  %vm5209_vm6 = vcmp.eq.f32.partialorder %v2421_v28, 8.507059e+37  ;;  %v2436_v45 = vadd.f32 0.05243302, %v2435_v34  ;;  %v2447_v41 = vadd.f32 0.112945676, %v2446_v54 }
 0x204   : > { %v2881_v36 = vmul.f32 %v2849_v26, %v1505_v60  ;;  %v1445_v14 = vmul.f32 %v5216_v24, %v5199_v63  ;;  %v3364_v61 = vpop.eup %3363  ;;  %v5220_v12 = vmin.f32 %v2469_v59, 16.0  ;;  %v669_v10 = vmul.f32 %v4994_v47, %v3610_v38 }
 0x205   : > { %v1283_v19 = vadd.f32 %v1251_v37, %v1185_v31  ;;  %v766_v17 = vmul.f32 %v4996_v46, %v3625_v42  ;;  %v2413_v51 = vmul.f32 %v3364_v61, %v2411_v55  ;;  %v2437_v21 = vmul.f32 %v2436_v45, %v5152_v57 }
 0x206   : > { %3289 = vmatmul.msk.f32.gmra.mxu2 %vm279_vm2, %v2881_v36  ;;  %v2448_v52 = vmul.f32 %v2447_v41, %v5152_v57  ;;  %v863_v44 = vmul.f32 %v5008_v62, %v3632_v49  ;;  %vm2418_vm7 = vweird.f32 %v3364_v61  ;;  %v2471_v3 = vmul.f32 2.1237322e-06, %v5220_v12 }
 0x207   : > { %v2482_v47 = vmul.f32 3.8918573e-05, %v5220_v12  ;;  %v1380_v7 = vadd.f32 %v1348_v32, %v1283_v19  ;;  %v2414_v1 = vsub.f32 1.0, %v2413_v51  ;;  %v2438_v46 = vadd.f32 0.18741608, %v2437_v21  ;;  %vm5243_vm8 = vmor %vm2417_vm5, %vm2418_vm7 }
 0x208   : > { %v2449_v60 = vadd.f32 0.4994258, %v2448_v52  ;;  %v3028_v28 = vadd.f32 %v4878_v40, %v3027_v20  ;;  %v2472_v18 = vadd.f32 0.00028619796, %v2471_v3  ;;  %v701_v30 = vadd.f32 %v5144_v8, %v669_v10 }
 0x209   : > { %v2483_v33 = vadd.f32 0.001143296, %v2482_v47  ;;  %v5234_v43 = vadd.f32 %v1445_v14, %v1380_v7  ;;  %v2415_v62 = vmul.f32 %v3364_v61, %v2414_v1  ;;  %v2424_v35 = vor.u32 1.1754944e-38, %v2423_v4  ;;  %v5274_v7 = vld [vmem:[#allocation2 + $0x158] sm:$0xff] }
 0x20a   : > { %v2439_v26 = vmul.f32 %v2438_v46, %v5152_v57  ;;  %v2450_v34 = vmul.f32 %v2449_v60, %v5152_v57  ;;  %3113 = vst.msk [vmem:[%s4885_s15 + $0x28] sm:$0xff] %vm359_vm1, %v3028_v28  ;;  %v2473_v37 = vmul.f32 %v2472_v18, %v5220_v12  ;;  %v798_v4 = vadd.f32 %v766_v17, %v701_v30  ;;  %v5281_v28 = vld [vmem:[#allocation2 + $0x159] sm:$0xff] }
 0x20b   : > { %v2484_v59 = vmul.f32 %v2483_v33, %v5220_v12  ;;  %v5250_v31 = vmul.f32 0.70710677, %v5234_v43  ;;  %v2416_v32 = vadd.f32 %v3364_v61, %v2415_v62  ;;  %v960_v57 = vmul.f32 %v5111_v48, %v3637_v56 }
 0x20c   : > { %v2440_v36 = vadd.f32 1.1283791, %v2439_v26  ;;  %v5252_v45 = vadd.f32 1.0, %v2450_v34  ;;  %v2474_v55 = vadd.f32 0.0036580483, %v2473_v37  ;;  %v895_v19 = vadd.f32 %v863_v44, %v798_v4 }
 0x20d   : > { %v2485_v41 = vadd.f32 0.014752088, %v2484_v59  ;;  %v2509_v14 = vmul.f32 %v5250_v31, %v5250_v31  ;;  %v2420_v10 = vsel %vm5243_vm8, %v3364_v61, %v2416_v32  ;;  %v1057_v17 = vmul.f32 %v5113_v13, %v3648_v5  ;;  %v3030_v32 = vpop.f32.mrf.mxu1 }
 0x20e   : > { %3365 = vrcp.f32 %v5252_v45  ;;  %v1506_v51 = vmul.f32 0.5, %v5040_v15  ;;  %v2425_v21 = vsel %vm5209_vm6, %v2424_v35, %v2420_v10  ;;  %v5267_v52 = vmul.f32 %v2440_v36, %v5128_v58 }
 0x20f   : > { %v2475_v20 = vmul.f32 %v2474_v55, %v5220_v12  ;;  %v2426_v44 = vmul.f32 %v2425_v21, %v5192_v29  ;;  %v2486_v3 = vmul.f32 %v2485_v41, %v5220_v12  ;;  %v5272_v61 = vmin.f32 %v2509_v14, 16.0 }
 0x210   : > { %v992_v47 = vadd.f32 %v960_v57, %v895_v19  ;;  %vm2457_vm9 = vweird.f32 %v5252_v45  ;;  %v2461_v15 = vand.u32 2147483647, %v5252_v45  ;;  %v1154_v58 = vmul.f32 %v5139_v39, %v3651_v6  ;;  %v5292_v57 = vld [vmem:[#allocation2 + $0x15a] sm:$0xff] }
 0x211   : > { %v2476_v0 = vadd.f32 0.05243302, %v2475_v20  ;;  %v3258_v1 = vclamps-f32 %v2426_v44, 1.0  ;;  %v2487_v46 = vadd.f32 0.112945676, %v2486_v3  ;;  %v2463_v18 = vand.u32 2147483648, %v5252_v45 }
 0x212   : > { %v2511_v60 = vmul.f32 2.1237322e-06, %v5272_v61  ;;  %v1089_v29 = vadd.f32 %v1057_v17, %v992_v47  ;;  %v2522_v30 = vmul.f32 3.8918573e-05, %v5272_v61  ;;  %v1252_v62 = vmul.f32 %v3654_v11, %v5274_v7 }
 0x213   : > { %v2477_v33 = vmul.f32 %v2476_v0, %v5220_v12  ;;  %v2850_v26 = vadd.f32 1.0, %v3258_v1  ;;  %v2488_v34 = vmul.f32 %v2487_v46, %v5220_v12  ;;  %v1349_v36 = vmul.f32 %v3667_v27, %v5281_v28 }
 0x214   : > { %v3366_v35 = vpop.eup %3365  ;;  %v2512_v54 = vadd.f32 0.00028619796, %v2511_v60  ;;  %v1186_v37 = vadd.f32 %v1154_v58, %v1089_v29  ;;  %v3031_v14 = vadd.f32 %v4878_v40, %v3030_v32  ;;  %v2523_v21 = vadd.f32 0.001143296, %v2522_v30 }
 0x215   : > { %v2453_v59 = vmul.f32 %v3366_v35, %v5252_v45  ;;  %vm2458_vm10 = vweird.f32 %v3366_v35  ;;  %v2478_v4 = vadd.f32 0.18741608, %v2477_v33  ;;  %v2882_v55 = vmul.f32 %v2850_v26, %v1506_v51 }
 0x216   : > { %v2489_v41 = vadd.f32 0.4994258, %v2488_v34  ;;  %v2513_v19 = vmul.f32 %v2512_v54, %v5272_v61  ;;  %v1284_v20 = vadd.f32 %v1252_v62, %v1186_v37  ;;  %3114 = vst.msk [vmem:[%s4885_s15 + $0x30] sm:$0xff] %vm359_vm1, %v3031_v14  ;;  %v1446_v51 = vmul.f32 %v5216_v24, %v5292_v57  ;;  %vm5309_vm11 = vmor %vm2457_vm9, %vm2458_vm10 }
 0x217   : > { %v2454_v10 = vsub.f32 1.0, %v2453_v59  ;;  %v2479_v17 = vmul.f32 %v2478_v4, %v5220_v12  ;;  %3290 = vmatmul.msk.f32.gmra.mxu2 %vm279_vm2, %v2882_v55  ;;  %v670_v47 = vmul.f32 %v5044_v53, %v3610_v38  ;;  %v2464_v58 = vor.u32 1.1754944e-38, %v2463_v18 }
 0x218   : > { %v2490_v44 = vmul.f32 %v2489_v41, %v5220_v12  ;;  %v2514_v3 = vadd.f32 0.0036580483, %v2513_v19  ;;  %v2524_v1 = vmul.f32 %v2523_v21, %v5272_v61  ;;  %v1381_v46 = vadd.f32 %v1349_v36, %v1284_v20 }
 0x219   : > { %v2455_v0 = vmul.f32 %v3366_v35, %v2454_v10  ;;  %v702_v33 = vadd.f32 %v5144_v8, %v670_v47  ;;  %v767_v53 = vmul.f32 %v5051_v2, %v3625_v42  ;;  %vm2462_vm12 = vcmp.eq.f32.partialorder %v2461_v15, 8.507059e+37 }
 0x21a   : > { %v5313_v12 = vadd.f32 1.0, %v2490_v44  ;;  %v2515_v29 = vmul.f32 %v2514_v3, %v5272_v61  ;;  %v2525_v30 = vadd.f32 0.014752088, %v2524_v1  ;;  %v5319_v62 = vadd.f32 %v1446_v51, %v1381_v46 }
 0x21b   : > { %v2456_v18 = vadd.f32 %v3366_v35, %v2455_v0  ;;  %v1507_v45 = vmul.f32 0.5, %v5109_v16  ;;  %v5323_v26 = vmul.f32 0.5, %v5184_v25  ;;  %v2480_v34 = vadd.f32 1.1283791, %v2479_v17  ;;  %v3033_v0 = vpop.f32.mrf.mxu1 }
 0x21c   : > { %3367 = vrcp.f32 %v5313_v12  ;;  %v2516_v37 = vadd.f32 0.05243302, %v2515_v29  ;;  %v2526_v59 = vmul.f32 %v2525_v30, %v5272_v61  ;;  %v5330_v2 = vmul.f32 0.70710677, %v5319_v62 }
 0x21d   : > { %v2460_v54 = vsel %vm5309_vm11, %v3366_v35, %v2456_v18  ;;  %v2501_v4 = vand.u32 2147483647, %v5313_v12  ;;  %v2503_v16 = vand.u32 2147483648, %v5313_v12  ;;  %v799_v32 = vadd.f32 %v767_v53, %v702_v33 }
 0x21e   : > { %v2465_v15 = vsel %vm2462_vm12, %v2464_v58, %v2460_v54  ;;  %v2517_v36 = vmul.f32 %v2516_v37, %v5272_v61  ;;  %v2527_v55 = vadd.f32 0.112945676, %v2526_v59  ;;  %v2549_v35 = vmul.f32 %v5330_v2, %v5330_v2  ;;  %v5366_v37 = vld [vmem:[#allocation2 + $0x168] sm:$0xff] }
 0x21f   : > { %v2466_v25 = vmul.f32 %v2465_v15, %v5267_v52  ;;  %v2481_v41 = vmul.f32 %v2480_v34, %v5195_v50  ;;  %vm2497_vm13 = vweird.f32 %v5313_v12  ;;  %v5341_v14 = vmul.f32 0.5, %v5234_v43  ;;  %v5368_v59 = vld [vmem:[#allocation2 + $0x169] sm:$0xff] }
 0x220   : > { %v864_v19 = vmul.f32 %v5084_v23, %v3632_v49  ;;  %v2518_v17 = vadd.f32 0.18741608, %v2517_v36  ;;  %v2528_v52 = vmul.f32 %v2527_v55, %v5272_v61  ;;  %v5346_v21 = vmin.f32 %v2549_v35, 16.0 }
 0x221   : > { %v3259_v10 = vclamps-f32 %v2466_v25, 1.0  ;;  %vm5348_vm14 = vcmp.eq.f32.partialorder %v2501_v4, 8.507059e+37  ;;  %v2504_v50 = vor.u32 1.1754944e-38, %v2503_v16  ;;  %v961_v43 = vmul.f32 %v5187_v9, %v3637_v56  ;;  %v5373_v16 = vld [vmem:[#allocation2 + $0x16a] sm:$0xff] }
 0x222   : > { %v3368_v20 = vpop.eup %3367  ;;  %v896_v3 = vadd.f32 %v864_v19, %v799_v32  ;;  %v2519_v47 = vmul.f32 %v2518_v17, %v5272_v61  ;;  %v1058_v58 = vmul.f32 %v5189_v22, %v3648_v5  ;;  %v2529_v1 = vadd.f32 0.4994258, %v2528_v52 }
 0x223   : > { %v2851_v51 = vadd.f32 1.0, %v3259_v10  ;;  %v2493_v23 = vmul.f32 %v3368_v20, %v5313_v12  ;;  %v3034_v46 = vadd.f32 %v4878_v40, %v3033_v0  ;;  %v2551_v60 = vmul.f32 2.1237322e-06, %v5346_v21 }
 0x224   : > { %v1155_v29 = vmul.f32 %v5199_v63, %v3651_v6  ;;  %vm2498_vm15 = vweird.f32 %v3368_v20  ;;  %v2562_v18 = vmul.f32 3.8918573e-05, %v5346_v21  ;;  %v2530_v30 = vmul.f32 %v2529_v1, %v5272_v61 }
 0x225   : > { %v2883_v33 = vmul.f32 %v2851_v51, %v1507_v45  ;;  %v2494_v53 = vsub.f32 1.0, %v2493_v23  ;;  %3115 = vst.msk [vmem:[%s4885_s15 + $0x38] sm:$0xff] %vm359_vm1, %v3034_v46  ;;  %v2552_v34 = vadd.f32 0.00028619796, %v2551_v60  ;;  %v993_v54 = vadd.f32 %v961_v43, %v896_v3  ;;  %vm5380_vm0 = vmor %vm2497_vm13, %vm2498_vm15 }
 0x226   : > { %v671_v40 = vmul.f32 %v5111_v48, %v3610_v38  ;;  %v2520_v15 = vadd.f32 1.1283791, %v2519_v47  ;;  %v2563_v4 = vadd.f32 0.001143296, %v2562_v18  ;;  %v768_v61 = vmul.f32 %v5113_v13, %v3625_v42 }
 0x227   : > { %3291 = vmatmul.msk.f32.gmra.mxu2 %vm279_vm2, %v2883_v33  ;;  %v2495_v45 = vmul.f32 %v3368_v20, %v2494_v53  ;;  %v5384_v25 = vadd.f32 1.0, %v2530_v30  ;;  %v2553_v48 = vmul.f32 %v2552_v34, %v5346_v21  ;;  %v1090_v36 = vadd.f32 %v1058_v58, %v993_v54 }
 0x228   : > { %v703_v55 = vadd.f32 %v5144_v8, %v671_v40  ;;  %v2564_v19 = vmul.f32 %v2563_v4, %v5346_v21  ;;  %v1253_v13 = vmul.f32 %v3654_v11, %v5366_v37  ;;  %v1350_v12 = vmul.f32 %v3667_v27, %v5368_v59 }
 0x229   : > { %v2496_v35 = vadd.f32 %v3368_v20, %v2495_v45  ;;  %3369 = vrcp.f32 %v5384_v25  ;;  %v2541_v10 = vand.u32 2147483647, %v5384_v25  ;;  %v1447_v17 = vmul.f32 %v5216_v24, %v5373_v16 }
 0x22a   : > { %v865_v52 = vmul.f32 %v5139_v39, %v3632_v49  ;;  %v2554_v43 = vadd.f32 0.0036580483, %v2553_v48  ;;  %v2565_v51 = vadd.f32 0.014752088, %v2564_v19  ;;  %v1187_v23 = vadd.f32 %v1155_v29, %v1090_v36  ;;  %v5428_v48 = vld [vmem:[#allocation2 + $0x171] sm:$0xff] }
 0x22b   : > { %v2500_v3 = vsel %vm5380_vm0, %v3368_v20, %v2496_v35  ;;  %v5404_v0 = vmul.f32 %v2520_v15, %v5250_v31  ;;  %v800_v58 = vadd.f32 %v768_v61, %v703_v55  ;;  %v962_v1 = vmul.f32 %v5274_v7, %v3637_v56  ;;  %v5410_v20 = vld [vmem:[#allocation2 + $0x170] sm:$0xff] }
 0x22c   : > { %v2505_v47 = vsel %vm5348_vm14, %v2504_v50, %v2500_v3  ;;  %v2555_v60 = vmul.f32 %v2554_v43, %v5346_v21  ;;  %v2566_v39 = vmul.f32 %v2565_v51, %v5346_v21  ;;  %v1285_v33 = vadd.f32 %v1253_v13, %v1187_v23  ;;  %v5440_v43 = vld [vmem:[%s5822_s6] ss:$0 sm:$0xff]  ;;  %v5448_v23 = vld [vmem:[#allocation2 + $0x172] sm:$0xff] }
 0x22d   : > { %v2506_v46 = vmul.f32 %v2505_v47, %v2481_v41  ;;  %vm2537_vm3 = vweird.f32 %v5384_v25  ;;  %v2543_v44 = vand.u32 2147483648, %v5384_v25  ;;  %v897_v50 = vadd.f32 %v865_v52, %v800_v58 }
 0x22e   : > { %v1059_v31 = vmul.f32 %v5281_v28, %v3648_v5  ;;  %vm5416_vm4 = vcmp.eq.f32.partialorder %v2541_v10, 8.507059e+37  ;;  %v2556_v41 = vadd.f32 0.05243302, %v2555_v60  ;;  %v2567_v18 = vadd.f32 0.112945676, %v2566_v39 }
 0x22f   : > { %v3260_v29 = vclamps-f32 %v2506_v46, 1.0  ;;  %v1382_v30 = vadd.f32 %v1350_v12, %v1285_v33  ;;  %v3370_v34 = vpop.eup %3369  ;;  %v994_v54 = vadd.f32 %v962_v1, %v897_v50  ;;  %v1156_v40 = vmul.f32 %v5292_v57, %v3651_v6 }
 0x230   : > { %v1254_v45 = vmul.f32 %v3654_v11, %v5410_v20  ;;  %v672_v15 = vmul.f32 %v5187_v9, %v3610_v38  ;;  %v2533_v61 = vmul.f32 %v3370_v34, %v5384_v25  ;;  %vm2538_vm5 = vweird.f32 %v3370_v34  ;;  %v3036_v9 = vpop.f32.mrf.mxu1 }
 0x231   : > { %v2852_v4 = vadd.f32 1.0, %v3260_v29  ;;  %v2557_v32 = vmul.f32 %v2556_v41, %v5346_v21  ;;  %v2568_v36 = vmul.f32 %v2567_v18, %v5346_v21  ;;  %v5431_v55 = vadd.f32 %v1447_v17, %v1382_v30  ;;  %vm5455_vm6 = vmor %vm2537_vm3, %vm2538_vm5 }
 0x232   : > { %v1091_v35 = vadd.f32 %v1059_v31, %v994_v54  ;;  %v704_v19 = vadd.f32 %v5144_v8, %v672_v15  ;;  %v2534_v12 = vsub.f32 1.0, %v2533_v61  ;;  %v769_v52 = vmul.f32 %v5189_v22, %v3625_v42  ;;  %v5478_v15 = vld [vmem:[#allocation2 + $0x180] sm:$0xff] }
 0x233   : > { %v2884_v13 = vmul.f32 %v2852_v4, %v5323_v26  ;;  %v2558_v10 = vadd.f32 0.18741608, %v2557_v32  ;;  %v2569_v3 = vadd.f32 0.4994258, %v2568_v36  ;;  %v3037_v17 = vadd.f32 %v5440_v43, %v3036_v9  ;;  %v5485_v36 = vld [vmem:[#allocation2 + $0x181] sm:$0xff] }
 0x234   : > { %v5444_v51 = vmul.f32 0.70710677, %v5431_v55  ;;  %v1351_v26 = vmul.f32 %v3667_v27, %v5428_v48  ;;  %v2535_v47 = vmul.f32 %v3370_v34, %v2534_v12  ;;  %v1188_v58 = vadd.f32 %v1156_v40, %v1091_v35 }
 0x235   : > { %3292 = vmatmul.msk.f32.gmra.mxu2 %vm279_vm2, %v2884_v13  ;;  %v2559_v22 = vmul.f32 %v2558_v10, %v5346_v21  ;;  %v801_v1 = vadd.f32 %v769_v52, %v704_v19  ;;  %v2544_v60 = vor.u32 1.1754944e-38, %v2543_v44  ;;  %v2570_v39 = vmul.f32 %v2569_v3, %v5346_v21  ;;  %3116 = vst.msk [vmem:[%s4885_s15 + $0x40] sm:$0xff] %vm359_vm1, %v3037_v17  ;;  %v5496_v17 = vld [vmem:[#allocation2 + $0x182] sm:$0xff] }
 0x236   : > { %v2589_v33 = vmul.f32 %v5444_v51, %v5444_v51  ;;  %v866_v50 = vmul.f32 %v5199_v63, %v3632_v49  ;;  %v2536_v31 = vadd.f32 %v3370_v34, %v2535_v47  ;;  %v1286_v41 = vadd.f32 %v1254_v45, %v1188_v58 }
 0x237   : > { %v2560_v29 = vadd.f32 1.1283791, %v2559_v22  ;;  %v1448_v25 = vmul.f32 %v5216_v24, %v5448_v23  ;;  %v2571_v18 = vadd.f32 1.0, %v2570_v39  ;;  %v963_v21 = vmul.f32 %v5366_v37, %v3637_v56 }
 0x238   : > { %v5468_v30 = vmin.f32 %v2589_v33, 16.0  ;;  %v898_v44 = vadd.f32 %v866_v50, %v801_v1  ;;  %v2540_v54 = vsel %vm5455_vm6, %v3370_v34, %v2536_v31  ;;  %v1383_v40 = vadd.f32 %v1351_v26, %v1286_v41 }
 0x239   : > { %v1060_v63 = vmul.f32 %v5368_v59, %v3648_v5  ;;  %v1157_v45 = vmul.f32 %v5373_v16, %v3651_v6  ;;  %v2545_v4 = vsel %vm5416_vm4, %v2544_v60, %v2540_v54  ;;  %v5483_v61 = vmul.f32 %v2560_v29, %v5330_v2 }
 0x23a   : > { %3371 = vrcp.f32 %v2571_v18  ;;  %v2581_v32 = vand.u32 2147483647, %v2571_v18  ;;  %v2546_v34 = vmul.f32 %v2545_v4, %v5404_v0  ;;  %v2583_v35 = vand.u32 2147483648, %v2571_v18 }
 0x23b   : > { %v2591_v19 = vmul.f32 2.1237322e-06, %v5468_v30  ;;  %v2602_v13 = vmul.f32 3.8918573e-05, %v5468_v30  ;;  %vm2577_vm7 = vweird.f32 %v2571_v18  ;;  %v5490_v12 = vadd.f32 %v1448_v25, %v1383_v40 }
 0x23c   : > { %v995_v10 = vadd.f32 %v963_v21, %v898_v44  ;;  %v1255_v53 = vmul.f32 %v3654_v11, %v5478_v15  ;;  %v3261_v2 = vclamps-f32 %v2546_v34, 1.0  ;;  %v1352_v3 = vmul.f32 %v3667_v27, %v5485_v36 }
 0x23d   : > { %v2592_v9 = vadd.f32 0.00028619796, %v2591_v19  ;;  %v2603_v52 = vadd.f32 0.001143296, %v2602_v13  ;;  %v2584_v0 = vor.u32 1.1754944e-38, %v2583_v35  ;;  %v673_v22 = vmul.f32 %v5274_v7, %v3610_v38 }
 0x23e   : > { %v5499_v26 = vmul.f32 0.70710677, %v5490_v12  ;;  %v1092_v47 = vadd.f32 %v1060_v63, %v995_v10  ;;  %v2853_v58 = vadd.f32 1.0, %v3261_v2  ;;  %vm5503_vm8 = vcmp.eq.f32.partialorder %v2581_v32, 8.507059e+37 }
 0x23f   : > { %v2593_v46 = vmul.f32 %v2592_v9, %v5468_v30  ;;  %v2604_v60 = vmul.f32 %v2603_v52, %v5468_v30  ;;  %v770_v39 = vmul.f32 %v5281_v28, %v3625_v42  ;;  %v1449_v7 = vmul.f32 %v5216_v24, %v5496_v17 }
 0x240   : > { %v3372_v33 = vpop.eup %3371  ;;  %v2629_v50 = vmul.f32 %v5499_v26, %v5499_v26  ;;  %v1189_v31 = vadd.f32 %v1157_v45, %v1092_v47  ;;  %v705_v29 = vadd.f32 %v5144_v8, %v673_v22  ;;  %v2885_v41 = vmul.f32 %v2853_v58, %v5341_v14 }
 0x241   : > { %v2573_v25 = vmul.f32 %v3372_v33, %v2571_v18  ;;  %v2594_v44 = vadd.f32 0.0036580483, %v2593_v46  ;;  %v867_v21 = vmul.f32 %v5292_v57, %v3632_v49  ;;  %v2605_v54 = vadd.f32 0.014752088, %v2604_v60 }
 0x242   : > { %v5519_v40 = vmin.f32 %v2629_v50, 16.0  ;;  %v1287_v28 = vadd.f32 %v1255_v53, %v1189_v31  ;;  %v802_v63 = vadd.f32 %v770_v39, %v705_v29  ;;  %3293 = vmatmul.msk.f32.gmra.mxu2 %vm279_vm2, %v2885_v41  ;;  %vm2578_vm9 = vweird.f32 %v3372_v33  ;;  %v3039_v41 = vpop.f32.mrf.mxu1 }
 0x243   : > { %v2574_v45 = vsub.f32 1.0, %v2573_v25  ;;  %v2595_v4 = vmul.f32 %v2594_v44, %v5468_v30  ;;  %v964_v32 = vmul.f32 %v5410_v20, %v3637_v56  ;;  %v2606_v14 = vmul.f32 %v2605_v54, %v5468_v30  ;;  %vm5531_vm10 = vmor %vm2577_vm7, %vm2578_vm9  ;;  %v5548_v44 = vld [vmem:[#allocation2 + $0x188] sm:$0xff] }
 0x244   : > { %v2631_v34 = vmul.f32 2.1237322e-06, %v5519_v40  ;;  %v2642_v57 = vmul.f32 3.8918573e-05, %v5519_v40  ;;  %v1384_v35 = vadd.f32 %v1352_v3, %v1287_v28  ;;  %v899_v10 = vadd.f32 %v867_v21, %v802_v63 }
 0x245   : > { %v2575_v19 = vmul.f32 %v3372_v33, %v2574_v45  ;;  %v2596_v13 = vadd.f32 0.05243302, %v2595_v4  ;;  %v1061_v53 = vmul.f32 %v5428_v48, %v3648_v5  ;;  %v2607_v9 = vadd.f32 0.112945676, %v2606_v14 }
 0x246   : > { %v2632_v52 = vadd.f32 0.00028619796, %v2631_v34  ;;  %v2643_v47 = vadd.f32 0.001143296, %v2642_v57  ;;  %v5535_v22 = vadd.f32 %v1449_v7, %v1384_v35  ;;  %v996_v3 = vadd.f32 %v964_v32, %v899_v10 }
 0x247   : > { %v2576_v58 = vadd.f32 %v3372_v33, %v2575_v19  ;;  %v2597_v46 = vmul.f32 %v2596_v13, %v5468_v30  ;;  %v1158_v60 = vmul.f32 %v5448_v23, %v3651_v6  ;;  %v2608_v39 = vmul.f32 %v2607_v9, %v5468_v30  ;;  %v5566_v19 = vld [vmem:[#allocation2 + $0x189] sm:$0xff] }
 0x248   : > { %v2633_v18 = vmul.f32 %v2632_v52, %v5519_v40  ;;  %v2644_v50 = vmul.f32 %v2643_v47, %v5519_v40  ;;  %v5544_v31 = vmul.f32 0.70710677, %v5535_v22  ;;  %v1093_v25 = vadd.f32 %v1061_v53, %v996_v3  ;;  %v5570_v47 = vld [vmem:[#allocation2 + $0x18a] sm:$0xff] }
 0x249   : > { %v2580_v7 = vsel %vm5531_vm10, %v3372_v33, %v2576_v58  ;;  %v2598_v29 = vadd.f32 0.18741608, %v2597_v46  ;;  %v2609_v54 = vadd.f32 0.4994258, %v2608_v39  ;;  %v3040_v28 = vadd.f32 %v5440_v43, %v3039_v41 }
 0x24a   : > { %v2585_v21 = vsel %vm5503_vm8, %v2584_v0, %v2580_v7  ;;  %v2634_v63 = vadd.f32 0.0036580483, %v2633_v18  ;;  %v2645_v4 = vadd.f32 0.014752088, %v2644_v50  ;;  %v2669_v32 = vmul.f32 %v5544_v31, %v5544_v31  ;;  %v3042_v50 = vpop.f32.mrf.mxu1 }
 0x24b   : > { %v2586_v45 = vmul.f32 %v2585_v21, %v5483_v61  ;;  %v2610_v33 = vmul.f32 %v2609_v54, %v5468_v30  ;;  %3117 = vst.msk [vmem:[%s4885_s15 + $0x48] sm:$0xff] %vm359_vm1, %v3040_v28  ;;  %v1190_v34 = vadd.f32 %v1158_v60, %v1093_v25  ;;  %v1256_v0 = vmul.f32 %v3654_v11, %v5548_v44 }
 0x24c   : > { %v2635_v14 = vmul.f32 %v2634_v63, %v5519_v40  ;;  %v1510_v1 = vmul.f32 0.5, %v5319_v62  ;;  %v2646_v35 = vmul.f32 %v2645_v4, %v5519_v40  ;;  %v5564_v61 = vmin.f32 %v2669_v32, 16.0 }
 0x24d   : > { %v3262_v57 = vclamps-f32 %v2586_v45, 1.0  ;;  %v2599_v13 = vmul.f32 %v2598_v29, %v5468_v30  ;;  %v2611_v10 = vadd.f32 1.0, %v2610_v33  ;;  %v5573_v58 = vmul.f32 0.5, %v5431_v55 }
 0x24e   : > { %v2636_v53 = vadd.f32 0.05243302, %v2635_v14  ;;  %v2647_v9 = vadd.f32 0.112945676, %v2646_v35  ;;  %v2671_v52 = vmul.f32 2.1237322e-06, %v5564_v61  ;;  %v1288_v62 = vadd.f32 %v1256_v0, %v1190_v34 }
 0x24f   : > { %v2854_v2 = vadd.f32 1.0, %v3262_v57  ;;  %3373 = vrcp.f32 %v2611_v10  ;;  %v1353_v46 = vmul.f32 %v3667_v27, %v5566_v19  ;;  %v2600_v18 = vadd.f32 1.1283791, %v2599_v13 }
 0x250   : > { %v2637_v60 = vmul.f32 %v2636_v53, %v5519_v40  ;;  %v2648_v30 = vmul.f32 %v2647_v9, %v5519_v40  ;;  %v2672_v39 = vadd.f32 0.00028619796, %v2671_v52  ;;  %vm2617_vm11 = vweird.f32 %v2611_v10 }
 0x251   : > { %v2886_v3 = vmul.f32 %v2854_v2, %v1510_v1  ;;  %v2682_v7 = vmul.f32 3.8918573e-05, %v5564_v61  ;;  %v1450_v55 = vmul.f32 %v5216_v24, %v5570_v47  ;;  %v3043_v25 = vadd.f32 %v5440_v43, %v3042_v50 }
 0x252   : > { %v2638_v29 = vadd.f32 0.18741608, %v2637_v60  ;;  %v2649_v41 = vadd.f32 0.4994258, %v2648_v30  ;;  %v2673_v21 = vmul.f32 %v2672_v39, %v5564_v61  ;;  %v1385_v28 = vadd.f32 %v1353_v46, %v1288_v62 }
 0x253   : > { %3294 = vmatmul.msk.f32.gmra.mxu2 %vm279_vm2, %v2886_v3  ;;  %v2683_v54 = vadd.f32 0.001143296, %v2682_v7  ;;  %v674_v63 = vmul.f32 %v5366_v37, %v3610_v38  ;;  %v771_v45 = vmul.f32 %v5368_v59, %v3625_v42  ;;  %v2621_v4 = vand.u32 2147483647, %v2611_v10  ;;  %3118 = vst.msk [vmem:[%s4885_s15 + $0x50] sm:$0xff] %vm359_vm1, %v3043_v25 }
 0x254   : > { %v2639_v32 = vmul.f32 %v2638_v29, %v5519_v40  ;;  %v2650_v33 = vmul.f32 %v2649_v41, %v5519_v40  ;;  %v2674_v14 = vadd.f32 0.0036580483, %v2673_v21  ;;  %v2623_v0 = vand.u32 2147483648, %v2611_v10 }
 0x255   : > { %v3374_v34 = vpop.eup %3373  ;;  %v2684_v1 = vmul.f32 %v2683_v54, %v5564_v61  ;;  %v5594_v57 = vadd.f32 %v1450_v55, %v1385_v28  ;;  %v706_v35 = vadd.f32 %v5144_v8, %v674_v63  ;;  %v868_v59 = vmul.f32 %v5373_v16, %v3632_v49  ;;  %v1224_v54 = vld [vmem:[#allocation2 + $0x198] sm:$0xff] }
 0x256   : > { %v2613_v37 = vmul.f32 %v3374_v34, %v2611_v10  ;;  %v2640_v13 = vadd.f32 1.1283791, %v2639_v32  ;;  %v5597_v53 = vadd.f32 1.0, %v2650_v33  ;;  %v2675_v40 = vmul.f32 %v2674_v14, %v5564_v61 }
 0x257   : > { %v2685_v2 = vadd.f32 0.014752088, %v2684_v1  ;;  %v5603_v9 = vmul.f32 0.70710677, %v5594_v57  ;;  %v803_v52 = vadd.f32 %v771_v45, %v706_v35  ;;  %vm2618_vm12 = vweird.f32 %v3374_v34 }
 0x258   : > { %v2614_v62 = vsub.f32 1.0, %v2613_v37  ;;  %3375 = vrcp.f32 %v5597_v53  ;;  %v965_v8 = vmul.f32 %v5478_v15, %v3637_v56  ;;  %v2601_v46 = vmul.f32 %v2600_v18, %v5444_v51  ;;  %vm5619_vm14 = vmor %vm2617_vm11, %vm2618_vm12  ;;  %v3045_v37 = vpop.f32.mrf.mxu1 }
 0x259   : > { %vm5609_vm13 = vcmp.eq.f32.partialorder %v2621_v4, 8.507059e+37  ;;  %v2676_v16 = vadd.f32 0.05243302, %v2675_v40  ;;  %v2686_v60 = vmul.f32 %v2685_v2, %v5564_v61  ;;  %v2709_v39 = vmul.f32 %v5603_v9, %v5603_v9  ;;  %v1418_v2 = vld [vmem:[#allocation2 + $0x19a] sm:$0xff] }
 0x25a   : > { %v2615_v30 = vmul.f32 %v3374_v34, %v2614_v62  ;;  %v900_v50 = vadd.f32 %v868_v59, %v803_v52  ;;  %v1062_v7 = vmul.f32 %v5485_v36, %v3648_v5  ;;  %v2624_v51 = vor.u32 1.1754944e-38, %v2623_v0 }
 0x25b   : > { %v2641_v18 = vmul.f32 %v2640_v13, %v5499_v26  ;;  %v2663_v55 = vand.u32 2147483648, %v5597_v53  ;;  %v2687_v29 = vadd.f32 0.112945676, %v2686_v60  ;;  %vm2657_vm15 = vweird.f32 %v5597_v53  ;;  %v1321_v26 = vld [vmem:[#allocation2 + $0x199] sm:$0xff] }
 0x25c   : > { %v2616_v41 = vadd.f32 %v3374_v34, %v2615_v30  ;;  %v5626_v25 = vmin.f32 %v2709_v39, 16.0  ;;  %v997_v21 = vadd.f32 %v965_v8, %v900_v50  ;;  %v2661_v36 = vand.u32 2147483647, %v5597_v53 }
 0x25d   : > { %v2677_v10 = vmul.f32 %v2676_v16, %v5564_v61  ;;  %v2688_v28 = vmul.f32 %v2687_v29, %v5564_v61  ;;  %v1159_v63 = vmul.f32 %v5496_v17, %v3651_v6  ;;  %v2664_v35 = vor.u32 1.1754944e-38, %v2663_v55 }
 0x25e   : > { %v3376_v45 = vpop.eup %3375  ;;  %v2620_v4 = vsel %vm5619_vm14, %v3374_v34, %v2616_v41  ;;  %v2711_v32 = vmul.f32 2.1237322e-06, %v5626_v25  ;;  %v2722_v33 = vmul.f32 3.8918573e-05, %v5626_v25  ;;  %v1094_v14 = vadd.f32 %v1062_v7, %v997_v21 }
 0x25f   : > { %v2625_v0 = vsel %vm5609_vm13, %v2624_v51, %v2620_v4  ;;  %v2653_v1 = vmul.f32 %v3376_v45, %v5597_v53  ;;  %v1257_v17 = vmul.f32 %v3654_v11, %v1224_v54  ;;  %v2689_v59 = vadd.f32 0.4994258, %v2688_v28 }
 0x260   : > { %v2626_v13 = vmul.f32 %v2625_v0, %v2601_v46  ;;  %v3046_v40 = vadd.f32 %v5440_v43, %v3045_v37  ;;  %v1354_v34 = vmul.f32 %v3667_v27, %v1321_v26  ;;  %vm2658_vm0 = vweird.f32 %v3376_v45 }
 0x261   : > { %v2654_v52 = vsub.f32 1.0, %v2653_v1  ;;  %v2712_v62 = vadd.f32 0.00028619796, %v2711_v32  ;;  %v1191_v8 = vadd.f32 %v1159_v63, %v1094_v14  ;;  %v2678_v16 = vadd.f32 0.18741608, %v2677_v10  ;;  %vm5650_vm3 = vmor %vm2657_vm15, %vm2658_vm0 }
 0x262   : > { %v3263_v3 = vclamps-f32 %v2626_v13, 1.0  ;;  %v2690_v60 = vmul.f32 %v2689_v59, %v5564_v61  ;;  %3119 = vst.msk [vmem:[%s4885_s15 + $0x58] sm:$0xff] %vm359_vm1, %v3046_v40  ;;  %v2723_v30 = vadd.f32 0.001143296, %v2722_v33  ;;  %v1451_v7 = vmul.f32 %v5216_v24, %v1418_v2  ;;  %v1225_v2 = vld [vmem:[#allocation2 + $0x1a0] sm:$0xff] }
 0x263   : > { %v2655_v39 = vmul.f32 %v3376_v45, %v2654_v52  ;;  %v2713_v46 = vmul.f32 %v2712_v62, %v5626_v25  ;;  %v1289_v50 = vadd.f32 %v1257_v17, %v1191_v8  ;;  %v675_v41 = vmul.f32 %v5410_v20, %v3610_v38  ;;  %v3048_v8 = vpop.f32.mrf.mxu1 }
 0x264   : > { %v2855_v15 = vadd.f32 1.0, %v3263_v3  ;;  %v5654_v55 = vadd.f32 1.0, %v2690_v60  ;;  %v2724_v29 = vmul.f32 %v2723_v30, %v5626_v25  ;;  %vm2662_vm4 = vcmp.eq.f32.partialorder %v2661_v36, 8.507059e+37 }
 0x265   : > { %v2656_v21 = vadd.f32 %v3376_v45, %v2655_v39  ;;  %v2714_v54 = vadd.f32 0.0036580483, %v2713_v46  ;;  %v1386_v10 = vadd.f32 %v1354_v34, %v1289_v50  ;;  %v772_v53 = vmul.f32 %v5428_v48, %v3625_v42 }
 0x266   : > { %v2887_v24 = vmul.f32 %v2855_v15, %v5573_v58  ;;  %3377 = vrcp.f32 %v5654_v55  ;;  %v2679_v63 = vmul.f32 %v2678_v16, %v5564_v61  ;;  %v2725_v26 = vadd.f32 0.014752088, %v2724_v29  ;;  %v3393_v58 = vld [vmem:[%s5820_s4] ss:$0 sm:$0xff] }
 0x267   : > { %v2660_v28 = vsel %vm5650_vm3, %v3376_v45, %v2656_v21  ;;  %v5667_v20 = vadd.f32 %v1451_v7, %v1386_v10  ;;  %v707_v36 = vadd.f32 %v3393_v58, %v675_v41  ;;  %v2715_v32 = vmul.f32 %v2714_v54, %v5626_v25  ;;  %v1322_v7 = vld [vmem:[#allocation2 + $0x1a1] sm:$0xff] }
 0x268   : > { %3295 = vmatmul.msk.f32.gmra.mxu2 %vm279_vm2, %v2887_v24  ;;  %v2665_v38 = vsel %vm2662_vm4, %v2664_v35, %v2660_v28  ;;  %v2726_v42 = vmul.f32 %v2725_v26, %v5626_v25  ;;  %v869_v45 = vmul.f32 %v5448_v23, %v3632_v49  ;;  %v966_v33 = vmul.f32 %v5548_v44, %v3637_v56  ;;  %v1419_v54 = vld [vmem:[#allocation2 + $0x1a2] sm:$0xff] }
 0x269   : > { %v2666_v4 = vmul.f32 %v2665_v38, %v2641_v18  ;;  %v5675_v48 = vmul.f32 0.70710677, %v5667_v20  ;;  %v804_v61 = vadd.f32 %v772_v53, %v707_v36  ;;  %v1512_v14 = vmul.f32 0.5, %v5490_v12 }
 0x26a   : > { %v2680_v1 = vadd.f32 1.1283791, %v2679_v63  ;;  %v2727_v35 = vadd.f32 0.112945676, %v2726_v42  ;;  %vm2697_vm5 = vweird.f32 %v5654_v55  ;;  %v2701_v37 = vand.u32 2147483647, %v5654_v55 }
 0x26b   : > { %v3264_v0 = vclamps-f32 %v2666_v4, 1.0  ;;  %v2749_v17 = vmul.f32 %v5675_v48, %v5675_v48  ;;  %v901_v13 = vadd.f32 %v869_v45, %v804_v61  ;;  %v2703_v23 = vand.u32 2147483648, %v5654_v55 }
 0x26c   : > { %v3378_v18 = vpop.eup %3377  ;;  %v1063_v56 = vmul.f32 %v5566_v19, %v3648_v5  ;;  %v2716_v12 = vadd.f32 0.05243302, %v2715_v32  ;;  %v2728_v44 = vmul.f32 %v2727_v35, %v5626_v25  ;;  %v1160_v3 = vmul.f32 %v5570_v47, %v3651_v6 }
 0x26d   : > { %v2856_v59 = vadd.f32 1.0, %v3264_v0  ;;  %v2693_v49 = vmul.f32 %v3378_v18, %v5654_v55  ;;  %v5691_v40 = vmin.f32 %v2749_v17, 16.0  ;;  %v998_v34 = vadd.f32 %v966_v33, %v901_v13 }
 0x26e   : > { %vm2698_vm6 = vweird.f32 %v3378_v18  ;;  %v2729_v16 = vadd.f32 0.4994258, %v2728_v44  ;;  %v3049_v60 = vadd.f32 %v5440_v43, %v3048_v8  ;;  %v2704_v39 = vor.u32 1.1754944e-38, %v2703_v23  ;;  %v3051_v44 = vpop.f32.mrf.mxu1 }
 0x26f   : > { %v2888_v52 = vmul.f32 %v2856_v59, %v1512_v14  ;;  %v2694_v62 = vsub.f32 1.0, %v2693_v49  ;;  %v2751_v5 = vmul.f32 2.1237322e-06, %v5691_v40  ;;  %v2762_v19 = vmul.f32 3.8918573e-05, %v5691_v40  ;;  %vm5702_vm7 = vmor %vm2697_vm5, %vm2698_vm6 }
 0x270   : > { %v1095_v46 = vadd.f32 %v1063_v56, %v998_v34  ;;  %v1258_v50 = vmul.f32 %v3654_v11, %v1225_v2  ;;  %v2717_v6 = vmul.f32 %v2716_v12, %v5626_v25  ;;  %v2730_v47 = vmul.f32 %v2729_v16, %v5626_v25  ;;  %3120 = vst.msk [vmem:[%s4885_s15 + $0x60] sm:$0xff] %vm359_vm1, %v3049_v60 }
 0x271   : > { %3296 = vmatmul.msk.f32.gmra.mxu2 %vm279_vm2, %v2888_v52  ;;  %v2695_v30 = vmul.f32 %v3378_v18, %v2694_v62  ;;  %v2752_v51 = vadd.f32 0.00028619796, %v2751_v5  ;;  %v2763_v29 = vadd.f32 0.001143296, %v2762_v19  ;;  %v2681_v41 = vmul.f32 %v2680_v1, %v5544_v31  ;;  %v3394_v31 = vld [vmem:[%s5819_s3 + $0x8] ss:$0 sm:$0xff] }
 0x272   : > { %vm2702_vm8 = vcmp.eq.f32.partialorder %v2701_v37, 8.507059e+37  ;;  %v1192_v11 = vadd.f32 %v1160_v3, %v1095_v46  ;;  %v2731_v10 = vadd.f32 1.0, %v2730_v47  ;;  %v1355_v53 = vmul.f32 %v3667_v27, %v1322_v7 }
 0x273   : > { %v2696_v21 = vadd.f32 %v3378_v18, %v2695_v30  ;;  %v2753_v55 = vmul.f32 %v2752_v51, %v5691_v40  ;;  %v2764_v24 = vmul.f32 %v2763_v29, %v5691_v40  ;;  %v2718_v38 = vadd.f32 0.18741608, %v2717_v6 }
 0x274   : > { %v1290_v63 = vadd.f32 %v1258_v50, %v1192_v11  ;;  %3379 = vrcp.f32 %v2731_v10  ;;  %v1452_v58 = vmul.f32 %v3394_v31, %v1419_v54  ;;  %v1513_v61 = vmul.f32 0.5, %v5535_v22 }
 0x275   : > { %v2700_v28 = vsel %vm5702_vm7, %v3378_v18, %v2696_v21  ;;  %v2754_v4 = vadd.f32 0.0036580483, %v2753_v55  ;;  %v2765_v32 = vadd.f32 0.014752088, %v2764_v24  ;;  %v2719_v33 = vmul.f32 %v2718_v38, %v5626_v25 }
 0x276   : > { %v2705_v26 = vsel %vm2702_vm8, %v2704_v39, %v2700_v28  ;;  %v1387_v42 = vadd.f32 %v1355_v53, %v1290_v63  ;;  %v2743_v59 = vand.u32 2147483648, %v2731_v10  ;;  %vm2737_vm9 = vweird.f32 %v2731_v10 }
 0x277   : > { %v2706_v36 = vmul.f32 %v2705_v26, %v2681_v41  ;;  %v2766_v27 = vmul.f32 %v2765_v32, %v5691_v40  ;;  %v2755_v14 = vmul.f32 %v2754_v4, %v5691_v40  ;;  %v2720_v49 = vadd.f32 1.1283791, %v2719_v33  ;;  %v3054_v32 = vpop.f32.mrf.mxu1 }
 0x278   : > { %v5723_v0 = vadd.f32 %v1452_v58, %v1387_v42  ;;  %v2741_v12 = vand.u32 2147483647, %v2731_v10  ;;  %v3052_v2 = vadd.f32 %v5440_v43, %v3051_v44  ;;  %v2744_v8 = vor.u32 1.1754944e-38, %v2743_v59  ;;  %v3060_v42 = vpop.f32.mrf.mxu2 }
 0x279   : > { %v3265_v45 = vclamps-f32 %v2706_v36, 1.0  ;;  %v2767_v35 = vadd.f32 0.112945676, %v2766_v27  ;;  %v2756_v22 = vadd.f32 0.05243302, %v2755_v14  ;;  %v2721_v19 = vmul.f32 %v2720_v49, %v5603_v9 }
 0x27a   : > { %v3380_v18 = vpop.eup %3379  ;;  %v5726_v37 = vmul.f32 0.70710677, %v5723_v0  ;;  %3121 = vst.msk [vmem:[%s4885_s15 + $0x68] sm:$0xff] %vm359_vm1, %v3052_v2  ;;  %vm2742_vm12 = vcmp.eq.f32.partialorder %v2741_v12, 8.507059e+37  ;;  %v1514_v41 = vmul.f32 0.5, %v5594_v57  ;;  %v3055_v27 = vadd.f32 %v5440_v43, %v3054_v32 }
 0x27b   : > { %v2857_v1 = vadd.f32 1.0, %v3265_v45  ;;  %v2733_v13 = vmul.f32 %v3380_v18, %v2731_v10  ;;  %v2768_v23 = vmul.f32 %v2767_v35, %v5691_v40  ;;  %vm2738_vm10 = vweird.f32 %v3380_v18 }
 0x27c   : > { %v2789_v25 = vmul.f32 %v5726_v37, %v5726_v37  ;;  %vm2739_vm11 = vmor %vm2737_vm9, %vm2738_vm10  ;;  %v2757_v3 = vmul.f32 %v2756_v22, %v5691_v40  ;;  %v3061_v33 = vadd.f32 %v5440_v43, %v3060_v42  ;;  %3122 = vst.msk [vmem:[%s4885_s15 + $0x70] sm:$0xff] %vm359_vm1, %v3055_v27 }
 0x27d   : > { %v2889_v17 = vmul.f32 %v2857_v1, %v1513_v61  ;;  %v2734_v56 = vsub.f32 1.0, %v2733_v13  ;;  %v2769_v34 = vadd.f32 0.4994258, %v2768_v23 }
 0x27e   : > { %v5733_v52 = vmin.f32 %v2789_v25, 16.0  ;;  %v2758_v6 = vadd.f32 0.18741608, %v2757_v3  ;;  %3124 = vst.msk [vmem:[%s4885_s15 + $0x80] sm:$0xff] %vm359_vm1, %v3061_v33 }
 0x27f   : > { %3297 = vmatmul.msk.f32.gmra.mxu2 %vm279_vm2, %v2889_v17  ;;  %v2735_v62 = vmul.f32 %v3380_v18, %v2734_v56  ;;  %v2770_v16 = vmul.f32 %v2769_v34, %v5691_v40  ;;  %v3057_v25 = vpop.f32.mrf.mxu1 }
 0x280   : > { %v2791_v60 = vmul.f32 2.1237322e-06, %v5733_v52  ;;  %v2802_v5 = vmul.f32 3.8918573e-05, %v5733_v52  ;;  %v2759_v9 = vmul.f32 %v2758_v6, %v5691_v40  ;;  %v3063_v56 = vpop.f32.mrf.mxu2  ;;  %v3058_v12 = vadd.f32 %v5440_v43, %v3057_v25 }
 0x281   : > { %v2736_v30 = vadd.f32 %v3380_v18, %v2735_v62  ;;  %v2771_v39 = vadd.f32 1.0, %v2770_v16  ;;  %v3064_v44 = vadd.f32 %v5440_v43, %v3063_v56 }
 0x282   : > { %v2792_v46 = vadd.f32 0.00028619796, %v2791_v60  ;;  %v2803_v50 = vadd.f32 0.001143296, %v2802_v5  ;;  %v2760_v26 = vadd.f32 1.1283791, %v2759_v9 }
 0x283   : > { %v2740_v7 = vsel %vm2739_vm11, %v3380_v18, %v2736_v30  ;;  %3381 = vrcp.f32 %v2771_v39  ;;  %v2783_v38 = vand.u32 2147483648, %v2771_v39  ;;  %vm2777_vm13 = vweird.f32 %v2771_v39  ;;  %3123 = vst.msk [vmem:[%s4885_s15 + $0x78] sm:$0xff] %vm359_vm1, %v3058_v12 }
 0x284   : > { %v2745_v15 = vsel %vm2742_vm12, %v2744_v8, %v2740_v7  ;;  %v2793_v51 = vmul.f32 %v2792_v46, %v5733_v52  ;;  %v2804_v29 = vmul.f32 %v2803_v50, %v5733_v52  ;;  %v2781_v57 = vand.u32 2147483647, %v2771_v39  ;;  %3125 = vst.msk [vmem:[%s4885_s15 + $0x88] sm:$0xff] %vm359_vm1, %v3064_v44 }
 0x285   : > { %v2746_v47 = vmul.f32 %v2745_v15, %v2721_v19  ;;  %v2784_v61 = vor.u32 1.1754944e-38, %v2783_v38  ;;  %v2761_v14 = vmul.f32 %v2760_v26, %v5675_v48  ;;  %v1515_v48 = vmul.f32 0.5, %v5667_v20 }
 0x286   : > { %v2794_v11 = vadd.f32 0.0036580483, %v2793_v51  ;;  %v2805_v54 = vadd.f32 0.014752088, %v2804_v29  ;;  %vm2782_vm0 = vcmp.eq.f32.partialorder %v2781_v57, 8.507059e+37  ;;  %v1516_v29 = vmul.f32 0.5, %v5723_v0 }
 0x287   : > { %v3266_v21 = vclamps-f32 %v2746_v47, 1.0 }
 0x288   : > { %v2806_v55 = vmul.f32 %v2805_v54, %v5733_v52  ;;  %v2795_v53 = vmul.f32 %v2794_v11, %v5733_v52  ;;  %v3066_v19 = vpop.f32.mrf.mxu2 }
 0x289   : > { %v2858_v10 = vadd.f32 1.0, %v3266_v21  ;;  %v3382_v24 = vpop.eup %3381 }
 0x28a   : > { %v2773_v63 = vmul.f32 %v3382_v24, %v2771_v39  ;;  %v2807_v31 = vadd.f32 0.112945676, %v2806_v55  ;;  %vm2778_vm14 = vweird.f32 %v3382_v24  ;;  %v2796_v36 = vadd.f32 0.05243302, %v2795_v53 }
 0x28b   : > { %v2890_v28 = vmul.f32 %v2858_v10, %v1514_v41  ;;  %vm2779_vm15 = vmor %vm2777_vm13, %vm2778_vm14 }
 0x28c   : > { %v2774_v58 = vsub.f32 1.0, %v2773_v63  ;;  %v2808_v40 = vmul.f32 %v2807_v31, %v5733_v52  ;;  %v2797_v35 = vmul.f32 %v2796_v36, %v5733_v52 }
 0x28d   : > { %3298 = vmatmul.msk.f32.gmra.mxu2 %vm279_vm2, %v2890_v28 }
 0x28e   : > { %v2775_v4 = vmul.f32 %v3382_v24, %v2774_v58  ;;  %v2809_v45 = vadd.f32 0.4994258, %v2808_v40  ;;  %v2798_v22 = vadd.f32 0.18741608, %v2797_v35 }
 0x290   : > { %v2776_v1 = vadd.f32 %v3382_v24, %v2775_v4  ;;  %v2810_v18 = vmul.f32 %v2809_v45, %v5733_v52  ;;  %v2799_v2 = vmul.f32 %v2798_v22, %v5733_v52  ;;  %v3067_v52 = vadd.f32 %v5440_v43, %v3066_v19  ;;  %v3069_v47 = vpop.f32.mrf.mxu2 }
 0x291   : > { %v3070_v51 = vadd.f32 %v5440_v43, %v3069_v47 }
 0x292   : > { %v2780_v17 = vsel %vm2779_vm15, %v3382_v24, %v2776_v1  ;;  %v2811_v59 = vadd.f32 1.0, %v2810_v18  ;;  %v2800_v3 = vadd.f32 1.1283791, %v2799_v2  ;;  %3126 = vst.msk [vmem:[%s4885_s15 + $0x90] sm:$0xff] %vm359_vm1, %v3067_v52 }
 0x293   : > { %v2785_v13 = vsel %vm2782_vm0, %v2784_v61, %v2780_v17  ;;  %3127 = vst.msk [vmem:[%s4885_s15 + $0x98] sm:$0xff] %vm359_vm1, %v3070_v51 }
 0x294   : > { %v2786_v49 = vmul.f32 %v2785_v13, %v2761_v14  ;;  %3383 = vrcp.f32 %v2811_v59  ;;  %v2823_v16 = vand.u32 2147483648, %v2811_v59  ;;  %vm2817_vm3 = vweird.f32 %v2811_v59 }
 0x295   : > { %v2821_v5 = vand.u32 2147483647, %v2811_v59  ;;  %v2801_v46 = vmul.f32 %v2800_v3, %v5726_v37 }
 0x296   : > { %v3267_v23 = vclamps-f32 %v2786_v49, 1.0  ;;  %v2824_v39 = vor.u32 1.1754944e-38, %v2823_v16 }
 0x297   : > { %vm2822_vm6 = vcmp.eq.f32.partialorder %v2821_v5, 8.507059e+37 }
 0x298   : > { %v2859_v34 = vadd.f32 1.0, %v3267_v23  ;;  %v3072_v37 = vpop.f32.mrf.mxu2 }
 0x299   : > { %v3073_v54 = vadd.f32 %v5440_v43, %v3072_v37 }
 0x29a   : > { %v2891_v62 = vmul.f32 %v2859_v34, %v1515_v48  ;;  %v3384_v8 = vpop.eup %3383 }
 0x29b   : > { %v2813_v20 = vmul.f32 %v3384_v8, %v2811_v59  ;;  %vm2818_vm4 = vweird.f32 %v3384_v8  ;;  %3128 = vst.msk [vmem:[%s4885_s15 + $0xa0] sm:$0xff] %vm359_vm1, %v3073_v54 }
 0x29c   : > { %3299 = vmatmul.msk.f32.gmra.mxu2 %vm279_vm2, %v2891_v62  ;;  %vm2819_vm5 = vmor %vm2817_vm3, %vm2818_vm4 }
 0x29d   : > { %v2814_v60 = vsub.f32 1.0, %v2813_v20 }
 0x29f   : > { %v2815_v30 = vmul.f32 %v3384_v8, %v2814_v60 }
 0x2a0   : > { %v3075_v9 = vpop.f32.mrf.mxu2 }
 0x2a1   : > { %v2816_v50 = vadd.f32 %v3384_v8, %v2815_v30  ;;  %v3076_v10 = vadd.f32 %v5440_v43, %v3075_v9 }
 0x2a3   : > { %v2820_v7 = vsel %vm2819_vm5, %v3384_v8, %v2816_v50  ;;  %3129 = vst.msk [vmem:[%s4885_s15 + $0xa8] sm:$0xff] %vm359_vm1, %v3076_v10 }
 0x2a4   : > { %v2825_v15 = vsel %vm2822_vm6, %v2824_v39, %v2820_v7 }
 0x2a5   : > { %v2826_v6 = vmul.f32 %v2825_v15, %v2801_v46 }
 0x2a7   : > { %v3268_v41 = vclamps-f32 %v2826_v6, 1.0 }
 0x2a9   : > { %v2860_v21 = vadd.f32 1.0, %v3268_v41 }
 0x2aa   : > { %v3078_v0 = vpop.f32.mrf.mxu2 }
 0x2ab   : > { %v2892_v11 = vmul.f32 %v2860_v21, %v1516_v29  ;;  %v3079_v55 = vadd.f32 %v5440_v43, %v3078_v0 }
 0x2ad   : > { %3300 = vmatmul.msk.f32.gmra.mxu2 %vm279_vm2, %v2892_v11  ;;  %3130 = vst.msk [vmem:[%s4885_s15 + $0xb0] sm:$0xff] %vm359_vm1, %v3079_v55 }
 0x2b8   : > { %v3081_v24 = vpop.f32.mrf.mxu2 }
 0x2b9   : > { %v3082_v53 = vadd.f32 %v5440_v43, %v3081_v24 }
 0x2bb   : > { %3131 = vst.msk [vmem:[%s4885_s15 + $0xb8] sm:$0xff] %vm359_vm1, %v3082_v53 }
 0x2c5   : > { %v3084_v28 = vpop.f32.mrf.mxu2 }
 0x2c6   : > { %v3085_v63 = vadd.f32 %v5440_v43, %v3084_v28 }
 0x2c8   : > { %3132 = vst.msk [vmem:[%s4885_s15 + $0xc0] sm:$0xff] %vm359_vm1, %v3085_v63 }
 0x2d6   : > { %v3087_v26 = vpop.f32.mrf.mxu2 }
 0x2d7   : > { %v3088_v38 = vadd.f32 %v5440_v43, %v3087_v26 }
 0x2d9   : > { %3133 = vst.msk [vmem:[%s4885_s15 + $0xc8] sm:$0xff] %vm359_vm1, %v3088_v38 }
 0x2eb   : > { %v3090_v31 = vpop.f32.mrf.mxu2 }
 0x2ec   : > { %v3091_v58 = vadd.f32 %v5440_v43, %v3090_v31 }
 0x2ee   : > { %3134 = vst.msk [vmem:[%s4885_s15 + $0xd0] sm:$0xff] %vm359_vm1, %v3091_v58 }
 0x2f4   : > { %v3093_v57 = vpop.f32.mrf.mxu2 }
 0x2f5   : > { %v3094_v36 = vadd.f32 %v5440_v43, %v3093_v57 }
 0x2f7   : > { %3135 = vst.msk [vmem:[%s4885_s15 + $0xd8] sm:$0xff] %vm359_vm1, %v3094_v36 }
 0x302   : > { %v3096_v40 = vpop.f32.mrf.mxu2 }
 0x303   : > { %v3097_v4 = vadd.f32 %v5440_v43, %v3096_v40 }
 0x305   : > { %3136 = vst.msk [vmem:[%s4885_s15 + $0xe0] sm:$0xff] %vm359_vm1, %v3097_v4 }
 0x310   : > { %v3099_v32 = vpop.f32.mrf.mxu2 }
 0x311   : > { %v3100_v42 = vadd.f32 %v5440_v43, %v3099_v32 }
 0x313   : > { %3137 = vst.msk [vmem:[%s4885_s15 + $0xe8] sm:$0xff] %vm359_vm1, %v3100_v42 }
 0x31f   : > { %v3102_v61 = vpop.f32.mrf.mxu2 }
 0x320   : > { %v3103_v45 = vadd.f32 %v5440_v43, %v3102_v61 }
 0x322   : > { %3138 = vst.msk [vmem:[%s4885_s15 + $0xf0] sm:$0xff] %vm359_vm1, %v3103_v45 }
 0x330   : > { %v3105_v27 = vpop.f32.mrf.mxu2 }
 0x331   : > { %v3106_v33 = vadd.f32 %v5440_v43, %v3105_v27 }
 0x333   : > { %3139 = vst.msk [vmem:[%s4885_s15 + $0xf8] sm:$0xff] %vm359_vm1, %v3106_v33 }
 0x334 PF: > { %s17_s24 = sadd.s32 1, %s3401_s24  }
 0x335   : > { %p14_p4 = scmp.ge.s32.totalorder %s17_s24, 4  }
 0x337   :  { %16 = sbr.rel (!%p14_p4) target bundleno = 1 (0x1), region = 81 }

</bundles_post_ra>
